<compile_context>
chip_gen: v5e
topology: v5e:2x2
jax: 0.10.0
libtpu: 0.0.40
codegen_flags: <defaults>
</compile_context>

<pallas_src>
import functools

import jax
import jax.numpy as jnp
from jax.experimental import pallas as pl
from jax.experimental.pallas import tpu as pltpu

DIM = 64          # `dim`
MULT = 2          # `mult` -> inner_dim = 128
TILE_N_MAX = 4096 # max spatial (lane) tile


# ------------------------------------------------------------------
# Cheap GELU (tanh form): 0.5*x*(1 + tanh(sqrt(2/pi)*(x + 0.044715 x^3)))
# ------------------------------------------------------------------
_SQRT_2_OVER_PI = 0.7978845608028654
_GELU_C = 0.044715


def _gelu_tanh(x):
    x3 = x * x * x
    inner = _SQRT_2_OVER_PI * (x + _GELU_C * x3)
    return 0.5 * x * (1.0 + jnp.tanh(inner))


# ------------------------------------------------------------------
# Fused kernel: 1x1 conv -> GELU -> 1x1 conv on one (Bb, C, tn) tile
# ------------------------------------------------------------------
def _ffn_kernel(x_ref, w1_ref, b1_ref, w2_ref, b2_ref, o_ref, *, gelu_dtype):
    w1 = w1_ref[...]            # (inner, C)  bf16, VMEM-resident
    w2 = w2_ref[...]            # (C, inner)  bf16, VMEM-resident
    b1 = b1_ref[...]            # (inner, 1)  f32
    b2 = b2_ref[...]            # (C, 1)      f32
    # Static unroll over the (small) batch block.
    for b in range(x_ref.shape[0]):
        x = x_ref[b].astype(jnp.bfloat16)                      # in-kernel cast
        # conv1 (1x1): (inner, C) @ (C, tn) -> (inner, tn), f32 acc on MXU
        h = jnp.dot(w1, x, preferred_element_type=jnp.float32)
        h = h + b1
        h = _gelu_tanh(h.astype(gelu_dtype))                   # bf16 on v6e/v7x, f32 on v5e
        # conv2 (1x1): (C, inner) @ (inner, tn) -> (C, tn)
        y = jnp.dot(w2, h.astype(jnp.bfloat16),
                    preferred_element_type=jnp.float32)
        o_ref[b] = (y + b2).astype(o_ref.dtype)


# ------------------------------------------------------------------
# Tiling helpers
# ------------------------------------------------------------------
def _choose_tn(HW, cap):
    """Largest multiple-of-128 divisor of HW (capped).  Avoids padding."""
    best = 0
    d = 128
    lim = min(HW, cap)
    while d <= lim:
        if HW % d == 0:
            best = d
        d += 128
    if best:
        return best, False
    if HW <= cap:
        return HW, False          # full-extent lane block (ragged width is legal)
    return cap, True              # rare fallback: pad HW up to a multiple of cap


def _choose_bb(B, n_tiles, tn, lane_budget):
    """Batch block size: fold batches only when spatial tiling leaves 1 tile."""
    if n_tiles >= 2 or B == 1:
        return 1
    max_bb = max(1, lane_budget // tn)
    target = max(1, min(B // 2, max_bb))   # keep >= 2 grid steps for megacore
    for bb in range(target, 0, -1):
        if B % bb == 0:
            return bb
    return 1


def _default_gelu_dtype():
    # v6e / v7x have bf16 VPU & EUP -> bf16 GELU; v5e (and older) keep f32.
    try:
        kind = jax.devices()[0].device_kind.lower()
    except Exception:
        return jnp.float32
    if "v6" in kind or "v7" in kind:
        return jnp.bfloat16
    return jnp.float32


# ------------------------------------------------------------------
# Wrapper
# ------------------------------------------------------------------
def conv_feedforward(x, params, *, tile_n_max=TILE_N_MAX, out_dtype=None,
                     gelu_dtype=None):
    """x: (B, C, H, W) NCHW.  Returns (B, C, H, W) in `out_dtype` (default x.dtype)."""
    B, C, H, W = x.shape
    inner = params["w1"].shape[0]
    HW = H * W
    out_dtype = x.dtype if out_dtype is None else out_dtype
    if gelu_dtype is None:
        gelu_dtype = _default_gelu_dtype()

    tn, needs_pad = _choose_tn(HW, tile_n_max)
    xt = x.reshape(B, C, HW)
    HW_run = HW
    if needs_pad:
        # TODO(synk): ragged last tile via masked store would avoid this extra pass.
        HW_run = pl.cdiv(HW, tn) * tn
        xt = jnp.pad(xt, ((0, 0), (0, 0), (0, HW_run - HW)))

    n_tiles = HW_run // tn
    Bb = _choose_bb(B, n_tiles, tn, tile_n_max)
    grid = (B // Bb, n_tiles)

    # Weights are tiny; pre-cast once (negligible), stay VMEM-resident.
    w1 = params["w1"].astype(jnp.bfloat16)                 # (inner, C)
    w2 = params["w2"].astype(jnp.bfloat16)                 # (C, inner)
    b1 = params["b1"].reshape(inner, 1).astype(jnp.float32)
    b2 = params["b2"].reshape(C, 1).astype(jnp.float32)

    # VMEM budget: double-buffered in/out blocks + f32 intermediate + weights.
    x_bytes = jnp.dtype(x.dtype).itemsize
    o_bytes = jnp.dtype(out_dtype).itemsize
    est = (2 * Bb * C * tn * x_bytes
           + 2 * Bb * C * tn * o_bytes
           + Bb * inner * tn * 4
           + 4 * inner * C)
    vmem_limit = int(min(max(2 * est, 32 * 1024 * 1024), 48 * 1024 * 1024))

    flops = 4 * B * HW_run * C * inner                     # two 1x1 convs
    transcendentals = B * HW_run * inner                   # one tanh per hidden elem
    bytes_accessed = B * HW_run * C * (x_bytes + o_bytes) + 4 * inner * C

    kernel = functools.partial(_ffn_kernel, gelu_dtype=gelu_dtype)

    out = pl.pallas_call(
        kernel,
        grid=grid,
        in_specs=[
            pl.BlockSpec((Bb, C, tn), lambda b, j: (b, 0, j)),
            pl.BlockSpec((inner, C), lambda b, j: (0, 0)),   # resident weights
            pl.BlockSpec((inner, 1), lambda b, j: (0, 0)),
            pl.BlockSpec((C, inner), lambda b, j: (0, 0)),
            pl.BlockSpec((C, 1), lambda b, j: (0, 0)),
        ],
        out_specs=pl.BlockSpec((Bb, C, tn), lambda b, j: (b, 0, j)),
        out_shape=jax.ShapeDtypeStruct((B, C, HW_run), out_dtype),
        compiler_params=pltpu.CompilerParams(
            dimension_semantics=("parallel", "parallel"),
            vmem_limit_bytes=vmem_limit,
        ),
        cost_estimate=pl.CostEstimate(
            flops=flops,
            transcendentals=transcendentals,
            bytes_accessed=bytes_accessed,
        ),
    )(xt, w1, b1, w2, b2)

    if needs_pad:
        out = out[:, :, :HW]
    return out.reshape(B, C, H, W)


# ------------------------------------------------------------------
# Plain-JAX reference (exact-erf GELU, f32) for a loose sanity check.
# The Pallas kernel uses bf16 matmuls + tanh-GELU, so small deviations
# (~1e-2 abs) vs this reference are expected.
# ------------------------------------------------------------------
def conv_feedforward_ref(x, params):
    B, C, H, W = x.shape
    xt = x.reshape(B, C, H * W)
    h = jnp.einsum("id,bdn->bin", params["w1"], xt) + params["b1"][None, :, None]
    h = jax.nn.gelu(h, approximate=False)
    y = jnp.einsum("di,bin->bdn", params["w2"], h) + params["b2"][None, :, None]
    return y.reshape(B, C, H, W)


# ------------------------------------------------------------------
# Parameters (deterministic, synthetic; PyTorch Conv2d 1x1 == (Cout, Cin) matrix)
# ------------------------------------------------------------------
def init_params(key, dim=DIM, mult=MULT):
    inner = int(dim * mult)
    k1, k2, k3, k4 = jax.random.split(key, 4)
    s = 0.05
    return {
        "w1": jax.random.normal(k1, (inner, dim), jnp.float32) * s,  # Conv2d(dim, inner, 1)
        "b1": jax.random.normal(k2, (inner,), jnp.float32) * s,
        "w2": jax.random.normal(k3, (dim, inner), jnp.float32) * s,  # Conv2d(inner, dim, 1)
        "b2": jax.random.normal(k4, (dim,), jnp.float32) * s,
    }


# ------------------------------------------------------------------
if __name__ == "__main__":
    key = jax.random.PRNGKey(0)
    pkey, xkey1, xkey2 = jax.random.split(key, 3)
    params = init_params(pkey)

    fwd = jax.jit(conv_feedforward)

    # Test 1: spatial tiling path (grid = (B, HW/tn), Bb = 1).
    B1, H1, W1 = 2, 32, 32
    x1 = jax.random.normal(xkey1, (B1, DIM, H1, W1), jnp.float32)
    out1 = fwd(x1, params)
    jax.block_until_ready(out1)
    assert out1.shape == (B1, DIM, H1, W1), out1.shape
    assert bool(jnp.all(jnp.isfinite(out1)))
    err1 = float(jnp.max(jnp.abs(out1 - conv_feedforward_ref(x1, params))))
    assert err1 < 5e-2, f"test1 max abs error too large: {err1}"

    # Test 2: small-HW path (single spatial tile, batch-blocked grid steps).
    B2, H2, W2 = 8, 16, 16
    x2 = jax.random.normal(xkey2, (B2, DIM, H2, W2), jnp.float32)
    out2 = fwd(x2, params)
    jax.block_until_ready(out2)
    assert out2.shape == (B2, DIM, H2, W2), out2.shape
    assert bool(jnp.all(jnp.isfinite(out2)))
    err2 = float(jnp.max(jnp.abs(out2 - conv_feedforward_ref(x2, params))))
    assert err2 < 5e-2, f"test2 max abs error too large: {err2}"

    print("KERNEL_OK")
</pallas_src>

<mosaic_0001>
module attributes {stable_mosaic.version = 11 : i64} {
  func.func @_ffn_kernel(%arg0: i32, %arg1: i32, %arg2: memref<1x64x1024xf32, #tpu.memory_space<vmem>>, %arg3: memref<128x64xbf16, #tpu.memory_space<vmem>>, %arg4: memref<128x1xf32, #tpu.memory_space<vmem>>, %arg5: memref<64x128xbf16, #tpu.memory_space<vmem>>, %arg6: memref<64x1xf32, #tpu.memory_space<vmem>>, %arg7: memref<1x64x1024xf32, #tpu.memory_space<vmem>>) attributes {dimension_semantics = [#tpu.dimension_semantics<parallel>, #tpu.dimension_semantics<parallel>], iteration_bounds = array<i64: 2, 1>, scalar_prefetch = 0 : i64, scratch_operands = 0 : i64, tpu.core_type = #tpu.core_type<tc>, window_params = [{transform_indices = @transform_0, window_bounds = array<i64: 1, 64, 1024>}, {pipeline_mode = #tpu.pipeline_mode<synchronous>, transform_indices = @transform_1, window_bounds = array<i64: 128, 64>}, {pipeline_mode = #tpu.pipeline_mode<synchronous>, transform_indices = @transform_2, window_bounds = array<i64: 128, 1>}, {pipeline_mode = #tpu.pipeline_mode<synchronous>, transform_indices = @transform_3, window_bounds = array<i64: 64, 128>}, {pipeline_mode = #tpu.pipeline_mode<synchronous>, transform_indices = @transform_4, window_bounds = array<i64: 64, 1>}, {transform_indices = @transform_5, window_bounds = array<i64: 1, 64, 1024>}]} {
    %c0 = arith.constant 0 : index
    %c0_0 = arith.constant 0 : index
    %0 = vector.load %arg3[%c0, %c0_0] : memref<128x64xbf16, #tpu.memory_space<vmem>>, vector<128x64xbf16>
    %c0_1 = arith.constant 0 : index
    %c0_2 = arith.constant 0 : index
    %1 = vector.load %arg5[%c0_1, %c0_2] : memref<64x128xbf16, #tpu.memory_space<vmem>>, vector<64x128xbf16>
    %c0_3 = arith.constant 0 : index
    %c0_4 = arith.constant 0 : index
    %2 = vector.load %arg4[%c0_3, %c0_4] : memref<128x1xf32, #tpu.memory_space<vmem>>, vector<128x1xf32>
    %c0_5 = arith.constant 0 : index
    %c0_6 = arith.constant 0 : index
    %3 = vector.load %arg6[%c0_5, %c0_6] : memref<64x1xf32, #tpu.memory_space<vmem>>, vector<64x1xf32>
    %c0_7 = arith.constant 0 : index
    %c0_8 = arith.constant 0 : index
    %c0_9 = arith.constant 0 : index
    %4 = vector.load %arg2[%c0_7, %c0_8, %c0_9] : memref<1x64x1024xf32, #tpu.memory_space<vmem>>, vector<1x64x1024xf32>
    %5 = vector.shape_cast %4 : vector<1x64x1024xf32> to vector<64x1024xf32>
    %6 = arith.truncf %5 : vector<64x1024xf32> to vector<64x1024xbf16>
    %cst = arith.constant dense<0.000000e+00> : vector<128x1024xf32>
    %7 = tpu.matmul %0, %6, %cst {dimension_numbers = #tpu.dot_dimension_numbers<[1], [0], [0], [1], [0, 0, 1, 1], [], []>} : vector<128x64xbf16>, vector<64x1024xbf16>, vector<128x1024xf32> -> vector<128x1024xf32>
    %8 = vector.broadcast %2 : vector<128x1xf32> to vector<128x1024xf32>
    %9 = arith.addf %7, %8 : vector<128x1024xf32>
    %10 = arith.mulf %9, %9 : vector<128x1024xf32>
    %11 = arith.mulf %10, %9 : vector<128x1024xf32>
    %cst_10 = arith.constant 4.471500e-02 : f32
    %12 = vector.broadcast %cst_10 : f32 to vector<128x1024xf32>
    %13 = arith.mulf %12, %11 : vector<128x1024xf32>
    %14 = arith.addf %9, %13 : vector<128x1024xf32>
    %cst_11 = arith.constant 0.797884583 : f32
    %15 = vector.broadcast %cst_11 : f32 to vector<128x1024xf32>
    %16 = arith.mulf %15, %14 : vector<128x1024xf32>
    %cst_12 = arith.constant 5.000000e-01 : f32
    %17 = vector.broadcast %cst_12 : f32 to vector<128x1024xf32>
    %18 = arith.mulf %17, %9 : vector<128x1024xf32>
    %19 = math.tanh %16 : vector<128x1024xf32>
    %cst_13 = arith.constant 1.000000e+00 : f32
    %20 = vector.broadcast %cst_13 : f32 to vector<128x1024xf32>
    %21 = arith.addf %20, %19 : vector<128x1024xf32>
    %22 = arith.mulf %18, %21 : vector<128x1024xf32>
    %23 = arith.truncf %22 : vector<128x1024xf32> to vector<128x1024xbf16>
    %cst_14 = arith.constant dense<0.000000e+00> : vector<64x1024xf32>
    %24 = tpu.matmul %1, %23, %cst_14 {dimension_numbers = #tpu.dot_dimension_numbers<[1], [0], [0], [1], [0, 0, 1, 1], [], []>} : vector<64x128xbf16>, vector<128x1024xbf16>, vector<64x1024xf32> -> vector<64x1024xf32>
    %25 = vector.broadcast %3 : vector<64x1xf32> to vector<64x1024xf32>
    %26 = arith.addf %24, %25 : vector<64x1024xf32>
    %c0_15 = arith.constant 0 : index
    %c0_16 = arith.constant 0 : index
    %c0_17 = arith.constant 0 : index
    %27 = vector.load %arg7[%c0_15, %c0_16, %c0_17] : memref<1x64x1024xf32, #tpu.memory_space<vmem>>, vector<1x64x1024xf32>
    %28 = vector.shape_cast %27 : vector<1x64x1024xf32> to vector<64x1024xf32>
    %29 = vector.shape_cast %26 : vector<64x1024xf32> to vector<1x64x1024xf32>
    tpu.vector_store %arg7[%c0_15, %c0_16, %c0_17], %29 {strides = array<i32>} : memref<1x64x1024xf32, #tpu.memory_space<vmem>>, vector<1x64x1024xf32>,
    return
  }
  func.func @transform_0(%arg0: i32, %arg1: i32) -> (i32, i32, i32) {
    %c0_i32 = arith.constant 0 : i32
    %c0_i32_0 = arith.constant 0 : i32
    return %arg0, %c0_i32, %arg1 : i32, i32, i32
  }
  func.func @transform_1(%arg0: i32, %arg1: i32) -> (i32, i32) {
    %c0_i32 = arith.constant 0 : i32
    %c0_i32_0 = arith.constant 0 : i32
    %c0_i32_1 = arith.constant 0 : i32
    return %c0_i32, %c0_i32_0 : i32, i32
  }
  func.func @transform_2(%arg0: i32, %arg1: i32) -> (i32, i32) {
    %c0_i32 = arith.constant 0 : i32
    %c0_i32_0 = arith.constant 0 : i32
    %c0_i32_1 = arith.constant 0 : i32
    return %c0_i32, %c0_i32_0 : i32, i32
  }
  func.func @transform_3(%arg0: i32, %arg1: i32) -> (i32, i32) {
    %c0_i32 = arith.constant 0 : i32
    %c0_i32_0 = arith.constant 0 : i32
    %c0_i32_1 = arith.constant 0 : i32
    return %c0_i32, %c0_i32_0 : i32, i32
  }
  func.func @transform_4(%arg0: i32, %arg1: i32) -> (i32, i32) {
    %c0_i32 = arith.constant 0 : i32
    %c0_i32_0 = arith.constant 0 : i32
    %c0_i32_1 = arith.constant 0 : i32
    return %c0_i32, %c0_i32_0 : i32, i32
  }
  func.func @transform_5(%arg0: i32, %arg1: i32) -> (i32, i32, i32) {
    %c0_i32 = arith.constant 0 : i32
    %c0_i32_0 = arith.constant 0 : i32
    return %arg0, %c0_i32, %arg1 : i32, i32, i32
  }
}

</mosaic_0001>

<bundles_post_ra>
// kernel: conv_feedforward.1
= control target key start
LH: loop header
LB: loop body
LE: loop exit
PB: predicated region body
PF: predicated region fallthrough
CT: control target
= control target key end

     0   :  { %s3089_s18 = smov 0   ;;  %s3091_s19 = smov 0   ;;  %s5093_s0 = inlined_call_operand.vmem [shape: f32[2,64,1024], index: 0, kind: input, shape index: {}]   ;;  %s5094_s1 = inlined_call_operand.vmem [shape: bf16[128,64], index: 1, kind: input, shape index: {}]   ;;  %s5095_s2 = inlined_call_operand.vmem [shape: f32[128,1], index: 2, kind: input, shape index: {}]   ;;  %s5096_s3 = inlined_call_operand.vmem [shape: bf16[64,128], index: 3, kind: input, shape index: {}]   ;;  %s5097_s4 = inlined_call_operand.vmem [shape: f32[64,1], index: 4, kind: input, shape index: {}]   ;;  %s5098_s5 = inlined_call_operand.vmem [shape: f32[2,64,1024], index: 5, kind: output, shape index: {}]  }
   0x1   :  { %s3093_s20 = smov 0  }
   0x2 LB: > { %s27_s21 = sadd.s32 1, %s3052_s19  ;;  %p2613_p0 = scmp.ge.s32.totalorder %s3056_s20, 1  ;;  %s3056_s20 = sphi %s3093_s20, %s15_s20   ;;  %s3052_s19 = sphi %s3091_s19, %s5561_s19   ;;  %s3048_s18 = sphi %s3089_s18, %s5560_s18  }
   0x3   : > { %p29_p1 = scmp.ge.s32.totalorder %s27_s21, 2  ;;  %p208_p2 = scmp.lt.s32.totalorder %s3056_s20, 3 }
   0x5   : > { %s5563_s21 = smov (%p29_p1, %s27_s21), 0  ;;  %p209_p3 = pnand %p2613_p0, %p208_p2 }
   0x7   : > { %212 = sbr.rel (%p209_p3) target bundleno = 731 (0x2db), region = 40 }
   0xc   : > { %v303_v0 = vld [vmem:[%s5095_s2 + $0x70] sm:$0xff]  ;;  %p245_p4 = scmp.lt.s32.totalorder %s3048_s18, 1  ;;  %v3058_v1 = vmov 0   ;;  %v301_v2 = vld [vmem:[%s5095_s2 + $0x60] sm:$0xff]  ;;  %v304_v7 = vld [vmem:[%s5095_s2 + $0x78] sm:$0xff]  ;;  %vm529_vm0 = vcmask 523264  }
   0xd   : > { %2771 = vset.pattern.permute.xlu0 %v3058_v1  ;;  %2773 = vset.pattern.permute.xlu2 %v3058_v1  ;;  %v299_v3 = vld [vmem:[%s5095_s2 + $0x50] sm:$0xff]  ;;  %v302_v12 = vld [vmem:[%s5095_s2 + $0x68] sm:$0xff]  ;;  %v300_v13 = vld [vmem:[%s5095_s2 + $0x58] sm:$0xff] }
   0xe   : > { %481 = vperm.xlu0 %2771, %v303_v0   ;;  %s5565_s18 = smov (!%p245_p4, %s3048_s18), 1  ;;  %2772 = vset.pattern.permute.xlu1 %v3058_v1  ;;  %v297_v49 = vld [vmem:[%s5095_s2 + $0x40] sm:$0xff]  ;;  %v298_v53 = vld [vmem:[%s5095_s2 + $0x48] sm:$0xff]  ;;  %v295_v54 = vld [vmem:[%s5095_s2 + $0x30] sm:$0xff] }
   0xf   : > { %471 = vperm.xlu1 %2772, %v301_v2   ;;  %461 = vperm.xlu2 %2773, %v299_v3   ;;  %s2732_s28 = sshll.u32 %s5565_s18, 9  ;;  %v3179_v58 = vld [vmem:[%s5094_s1] sm:$0xff]  ;;  %v296_v59 = vld [vmem:[%s5095_s2 + $0x38] sm:$0xff]  ;;  %v294_v60 = vld [vmem:[%s5095_s2 + $0x28] sm:$0xff] }
  0x10   : > { %s3124_s6 = scalar_lea.vmem %s5093_s0, %s2732_s28  ;;  %v293_v61 = vld [vmem:[%s5095_s2 + $0x20] sm:$0xff]  ;;  %s4912_s16 = scalar_lea.vmem %s5098_s5, %s2732_s28 }
  0x11   : > { %v361_v4 = vld [vmem:[%s3124_s6 + $0x180] sm:$0xff]  ;;  %v362_v6 = vld [vmem:[%s3124_s6 + $0x188] sm:$0xff]  ;;  %v363_v10 = vld [vmem:[%s3124_s6 + $0x190] sm:$0xff] }
  0x12   : > { %v369_v5 = vld [vmem:[%s3124_s6 + $0x1c0] sm:$0xff]  ;;  %v370_v9 = vld [vmem:[%s3124_s6 + $0x1c8] sm:$0xff]  ;;  %v371_v11 = vld [vmem:[%s3124_s6 + $0x1d0] sm:$0xff] }
  0x13   : > { %v401_v8 = vpack.c.bf16 %v369_v5, %v361_v4  ;;  %v402_v14 = vpack.c.bf16 %v370_v9, %v362_v6  ;;  %v403_v15 = vpack.c.bf16 %v371_v11, %v363_v10  ;;  %v364_v16 = vld [vmem:[%s3124_s6 + $0x198] sm:$0xff]  ;;  %v345_v18 = vld [vmem:[%s3124_s6 + $0x100] sm:$0xff]  ;;  %v346_v21 = vld [vmem:[%s3124_s6 + $0x108] sm:$0xff] }
  0x14   : > { %v372_v17 = vld [vmem:[%s3124_s6 + $0x1d8] sm:$0xff]  ;;  %v353_v20 = vld [vmem:[%s3124_s6 + $0x140] sm:$0xff]  ;;  %v354_v22 = vld [vmem:[%s3124_s6 + $0x148] sm:$0xff] }
  0x15   : > { %558 = vmatpush.bf16.msra.mxu0 %v401_v8  ;;  %v404_v19 = vpack.c.bf16 %v372_v17, %v364_v16  ;;  %607 = vmatpush.bf16.msra.mxu1 %v402_v14  ;;  %v393_v23 = vpack.c.bf16 %v353_v20, %v345_v18  ;;  %v394_v24 = vpack.c.bf16 %v354_v22, %v346_v21  ;;  %v347_v25 = vld [vmem:[%s3124_s6 + $0x110] sm:$0xff]  ;;  %v348_v27 = vld [vmem:[%s3124_s6 + $0x118] sm:$0xff]  ;;  %v329_v30 = vld [vmem:[%s3124_s6 + $0x80] sm:$0xff] }
  0x16   : > { %656 = vmatpush.bf16.msra.mxu2 %v403_v15  ;;  %v355_v26 = vld [vmem:[%s3124_s6 + $0x150] sm:$0xff]  ;;  %486 = vperm.xlu0 %2771, %v304_v7   ;;  %v356_v29 = vld [vmem:[%s3124_s6 + $0x158] sm:$0xff]  ;;  %v337_v31 = vld [vmem:[%s3124_s6 + $0xc0] sm:$0xff] }
  0x17   : > { %705 = vmatpush.bf16.msra.mxu3 %v404_v19  ;;  %v395_v28 = vpack.c.bf16 %v355_v26, %v347_v25  ;;  %v396_v32 = vpack.c.bf16 %v356_v29, %v348_v27  ;;  %v330_v33 = vld [vmem:[%s3124_s6 + $0x88] sm:$0xff]  ;;  %v331_v35 = vld [vmem:[%s3124_s6 + $0x90] sm:$0xff]  ;;  %476 = vperm.xlu1 %2772, %v302_v12   ;;  %v385_v36 = vpack.c.bf16 %v337_v31, %v329_v30  ;;  %v332_v38 = vld [vmem:[%s3124_s6 + $0x98] sm:$0xff] }
  0x18   : > { %v338_v34 = vld [vmem:[%s3124_s6 + $0xc8] sm:$0xff]  ;;  %466 = vperm.xlu2 %2773, %v300_v13   ;;  %v339_v37 = vld [vmem:[%s3124_s6 + $0xd0] sm:$0xff]  ;;  %v340_v39 = vld [vmem:[%s3124_s6 + $0xd8] sm:$0xff] }
  0x19   : > { %559 = vmatpush.bf16.msra.mxu0 %v393_v23  ;;  %608 = vmatpush.bf16.msra.mxu1 %v394_v24  ;;  %v386_v40 = vpack.c.bf16 %v338_v34, %v330_v33  ;;  %v387_v41 = vpack.c.bf16 %v339_v37, %v331_v35  ;;  %v313_v42 = vld [vmem:[%s3124_s6] sm:$0xff]  ;;  %v314_v44 = vld [vmem:[%s3124_s6 + $0x8] sm:$0xff]  ;;  %v388_v45 = vpack.c.bf16 %v340_v39, %v332_v38  ;;  %v315_v47 = vld [vmem:[%s3124_s6 + $0x10] sm:$0xff] }
  0x1a   : > { %657 = vmatpush.bf16.msra.mxu2 %v395_v28  ;;  %v321_v43 = vld [vmem:[%s3124_s6 + $0x40] sm:$0xff]  ;;  %v322_v46 = vld [vmem:[%s3124_s6 + $0x48] sm:$0xff]  ;;  %v323_v48 = vld [vmem:[%s3124_s6 + $0x50] sm:$0xff] }
  0x1b   : > { %706 = vmatpush.bf16.msra.mxu3 %v396_v32  ;;  %v316_v50 = vld [vmem:[%s3124_s6 + $0x18] sm:$0xff]  ;;  %v377_v52 = vpack.c.bf16 %v321_v43, %v313_v42  ;;  %v378_v55 = vpack.c.bf16 %v322_v46, %v314_v44  ;;  %v379_v56 = vpack.c.bf16 %v323_v48, %v315_v47  ;;  %v367_v62 = vld [vmem:[%s3124_s6 + $0x1b0] sm:$0xff]  ;;  %v365_v4 = vld [vmem:[%s3124_s6 + $0x1a0] sm:$0xff] }
  0x1c   : > { %v324_v51 = vld [vmem:[%s3124_s6 + $0x58] sm:$0xff]  ;;  %v375_v63 = vld [vmem:[%s3124_s6 + $0x1f0] sm:$0xff]  ;;  %v373_v5 = vld [vmem:[%s3124_s6 + $0x1e0] sm:$0xff] }
  0x1d   : > { %560 = vmatpush.bf16.msra.mxu0 %v385_v36  ;;  %609 = vmatpush.bf16.msra.mxu1 %v386_v40  ;;  %v380_v57 = vpack.c.bf16 %v324_v51, %v316_v50  ;;  %v368_v0 = vld [vmem:[%s3124_s6 + $0x1b8] sm:$0xff]  ;;  %v407_v1 = vpack.c.bf16 %v375_v63, %v367_v62  ;;  %v366_v6 = vld [vmem:[%s3124_s6 + $0x1a8] sm:$0xff]  ;;  %v405_v7 = vpack.c.bf16 %v373_v5, %v365_v4  ;;  %v291_v10 = vld [vmem:[%s5095_s2 + $0x10] sm:$0xff] }
  0x1e   : > { %658 = vmatpush.bf16.msra.mxu2 %v387_v41  ;;  %451 = vperm.xlu0 %2771, %v297_v49   ;;  %v376_v2 = vld [vmem:[%s3124_s6 + $0x1f8] sm:$0xff]  ;;  %v374_v8 = vld [vmem:[%s3124_s6 + $0x1e8] sm:$0xff]  ;;  %v289_v12 = vld [vmem:[%s5095_s2] sm:$0xff] }
  0x1f   : > { %707 = vmatpush.bf16.msra.mxu3 %v388_v45  ;;  %456 = vperm.xlu1 %2772, %v298_v53   ;;  %v408_v3 = vpack.c.bf16 %v376_v2, %v368_v0  ;;  %v406_v9 = vpack.c.bf16 %v374_v8, %v366_v6  ;;  %v292_v11 = vld [vmem:[%s5095_s2 + $0x18] sm:$0xff]  ;;  %v3218_v13 = vld [vmem:[%s5094_s1 + $0x8] sm:$0xff]  ;;  %v3234_v15 = vld [vmem:[%s5094_s1 + $0x10] sm:$0xff] }
  0x20   : > { %441 = vperm.xlu2 %2773, %v295_v54   ;;  %v290_v14 = vld [vmem:[%s5095_s2 + $0x8] sm:$0xff]  ;;  %v351_v16 = vld [vmem:[%s3124_s6 + $0x130] sm:$0xff]  ;;  %v352_v18 = vld [vmem:[%s3124_s6 + $0x138] sm:$0xff] }
  0x21   : > { %561 = vmatpush.bf16.msra.mxu0 %v377_v52  ;;  %610 = vmatpush.bf16.msra.mxu1 %v378_v55  ;;  %v359_v17 = vld [vmem:[%s3124_s6 + $0x170] sm:$0xff]  ;;  %v360_v20 = vld [vmem:[%s3124_s6 + $0x178] sm:$0xff]  ;;  %v349_v21 = vld [vmem:[%s3124_s6 + $0x120] sm:$0xff] }
  0x22   : > { %659 = vmatpush.bf16.msra.mxu2 %v379_v56  ;;  %v399_v19 = vpack.c.bf16 %v359_v17, %v351_v16  ;;  %v357_v22 = vld [vmem:[%s3124_s6 + $0x160] sm:$0xff]  ;;  %v400_v23 = vpack.c.bf16 %v360_v20, %v352_v18  ;;  %v350_v25 = vld [vmem:[%s3124_s6 + $0x128] sm:$0xff]  ;;  %v3255_v28 = vld [vmem:[%s5094_s1 + $0x18] sm:$0xff] }
  0x23   : > { %708 = vmatpush.bf16.msra.mxu3 %v380_v57  ;;  %v397_v24 = vpack.c.bf16 %v357_v22, %v349_v21  ;;  %v358_v26 = vld [vmem:[%s3124_s6 + $0x168] sm:$0xff]  ;;  %v3268_v29 = vld [vmem:[%s5094_s1 + $0x20] sm:$0xff]  ;;  %v335_v30 = vld [vmem:[%s3124_s6 + $0xb0] sm:$0xff] }
  0x24   : > { %2650 = vmatmul.msk.bf16.vlgmr.msra.gmra.mxu0 %vm529_vm0, %v3179_v58  ;;  %2658 = vmatmul.msk.bf16.vlgmr.msra.gmra.mxu1 %vm529_vm0, %v3179_v58  ;;  %v398_v27 = vpack.c.bf16 %v358_v26, %v350_v25  ;;  %v343_v31 = vld [vmem:[%s3124_s6 + $0xf0] sm:$0xff]  ;;  %v336_v32 = vld [vmem:[%s3124_s6 + $0xb8] sm:$0xff]  ;;  %v3285_v36 = vld [vmem:[%s5094_s1 + $0x28] sm:$0xff] }
  0x25   : > { %2666 = vmatmul.msk.bf16.vlgmr.msra.gmra.mxu2 %vm529_vm0, %v3179_v58  ;;  %754 = vmatpush.bf16.msrb.mxu0 %v405_v7  ;;  %v391_v33 = vpack.c.bf16 %v343_v31, %v335_v30  ;;  %v344_v34 = vld [vmem:[%s3124_s6 + $0xf8] sm:$0xff]  ;;  %v333_v37 = vld [vmem:[%s3124_s6 + $0xa0] sm:$0xff]  ;;  %v334_v39 = vld [vmem:[%s3124_s6 + $0xa8] sm:$0xff] }
  0x26   : > { %2674 = vmatmul.msk.bf16.vlgmr.msra.gmra.mxu3 %vm529_vm0, %v3179_v58  ;;  %446 = vperm.xlu0 %2771, %v296_v59   ;;  %v392_v35 = vpack.c.bf16 %v344_v34, %v336_v32  ;;  %v341_v38 = vld [vmem:[%s3124_s6 + $0xe0] sm:$0xff]  ;;  %v342_v41 = vld [vmem:[%s3124_s6 + $0xe8] sm:$0xff]  ;;  %v307_v43 = vld [vmem:[%s5097_s4 + $0x10] sm:$0xff] }
  0x27   : > { %431 = vperm.xlu1 %2772, %v293_v61   ;;  %852 = vmatpush.bf16.msrb.mxu2 %v407_v1  ;;  %v389_v40 = vpack.c.bf16 %v341_v38, %v333_v37  ;;  %v390_v42 = vpack.c.bf16 %v342_v41, %v334_v39  ;;  %v3305_v44 = vld [vmem:[%s5094_s1 + $0x30] sm:$0xff]  ;;  %v317_v45 = vld [vmem:[%s3124_s6 + $0x20] sm:$0xff]  ;;  %v318_v47 = vld [vmem:[%s3124_s6 + $0x28] sm:$0xff] }
  0x28   : > { %436 = vperm.xlu2 %2773, %v294_v60   ;;  %901 = vmatpush.bf16.msrb.mxu3 %v408_v3  ;;  %v325_v46 = vld [vmem:[%s3124_s6 + $0x60] sm:$0xff]  ;;  %v326_v49 = vld [vmem:[%s3124_s6 + $0x68] sm:$0xff]  ;;  %v319_v50 = vld [vmem:[%s3124_s6 + $0x30] sm:$0xff] }
  0x29   : > { %803 = vmatpush.bf16.msrb.mxu1 %v406_v9  ;;  %755 = vmatpush.bf16.msrb.mxu0 %v397_v24  ;;  %v381_v48 = vpack.c.bf16 %v325_v46, %v317_v45  ;;  %v327_v51 = vld [vmem:[%s3124_s6 + $0x70] sm:$0xff]  ;;  %v382_v52 = vpack.c.bf16 %v326_v49, %v318_v47  ;;  %v320_v54 = vld [vmem:[%s3124_s6 + $0x38] sm:$0xff]  ;;  %v305_v60 = vld [vmem:[%s5097_s4] sm:$0xff] }
  0x2a   : > { %v383_v53 = vpack.c.bf16 %v327_v51, %v319_v50  ;;  %v328_v55 = vld [vmem:[%s3124_s6 + $0x78] sm:$0xff]  ;;  %v310_v61 = vld [vmem:[%s5097_s4 + $0x28] sm:$0xff]  ;;  %v311_v6 = vld [vmem:[%s5097_s4 + $0x30] sm:$0xff] }
  0x2b   : > { %853 = vmatpush.bf16.msrb.mxu2 %v399_v19  ;;  %v384_v56 = vpack.c.bf16 %v328_v55, %v320_v54  ;;  %v3336_v62 = vld [vmem:[%s5094_s1 + $0x38] sm:$0xff]  ;;  %v309_v45 = vld [vmem:[%s5097_s4 + $0x20] sm:$0xff] }
  0x2c   : > { %902 = vmatpush.bf16.msrb.mxu3 %v400_v23  ;;  %v308_v0 = vld [vmem:[%s5097_s4 + $0x18] sm:$0xff]  ;;  %v306_v23 = vld [vmem:[%s5097_s4 + $0x8] sm:$0xff] }
  0x2d   : > { %804 = vmatpush.bf16.msrb.mxu1 %v398_v27  ;;  %756 = vmatpush.bf16.msrb.mxu0 %v389_v40 }
  0x2e   : > { %421 = vperm.xlu0 %2771, %v291_v10  }
  0x2f   : > { %426 = vperm.xlu1 %2772, %v292_v11   ;;  %854 = vmatpush.bf16.msrb.mxu2 %v391_v33 }
  0x30   : > { %411 = vperm.xlu2 %2773, %v289_v12   ;;  %903 = vmatpush.bf16.msrb.mxu3 %v392_v35 }
  0x31   : > { %805 = vmatpush.bf16.msrb.mxu1 %v390_v42  ;;  %757 = vmatpush.bf16.msrb.mxu0 %v381_v48 }
  0x33   : > { %855 = vmatpush.bf16.msrb.mxu2 %v383_v53 }
  0x34   : > { %2651 = vmatmul.msk.bf16.gmra.mxu0 %vm529_vm0, %v3218_v13  ;;  %2659 = vmatmul.msk.bf16.gmra.mxu1 %vm529_vm0, %v3218_v13 }
  0x35   : > { %2667 = vmatmul.msk.bf16.gmra.mxu2 %vm529_vm0, %v3218_v13  ;;  %806 = vmatpush.bf16.msrb.mxu1 %v382_v52 }
  0x36   : > { %2675 = vmatmul.msk.bf16.gmra.mxu3 %vm529_vm0, %v3218_v13  ;;  %416 = vperm.xlu0 %2771, %v290_v14  }
  0x37   : > { %904 = vmatpush.bf16.msrb.mxu3 %v384_v56  ;;  %2164 = vperm.xlu1 %2772, %v305_v60  }
  0x38   : > { %2169 = vperm.xlu2 %2773, %v306_v23  }
  0x3e   : > { %2174 = vperm.xlu0 %2771, %v307_v43  }
  0x3f   : > { %2179 = vperm.xlu1 %2772, %v308_v0  }
  0x40   : > { %2184 = vperm.xlu2 %2773, %v309_v45  }
  0x44   : > { %2652 = vmatmul.msk.bf16.gmra.mxu0 %vm529_vm0, %v3234_v15  ;;  %2660 = vmatmul.msk.bf16.gmra.mxu1 %vm529_vm0, %v3234_v15 }
  0x45   : > { %2668 = vmatmul.msk.bf16.gmra.mxu2 %vm529_vm0, %v3234_v15 }
  0x46   : > { %2676 = vmatmul.msk.bf16.gmra.mxu3 %vm529_vm0, %v3234_v15  ;;  %2189 = vperm.xlu0 %2771, %v310_v61  }
  0x47   : > { %2194 = vperm.xlu1 %2772, %v311_v6  }
  0x54   : > { %2653 = vmatmul.msk.bf16.gmra.mxu0 %vm529_vm0, %v3255_v28  ;;  %2661 = vmatmul.msk.bf16.gmra.mxu1 %vm529_vm0, %v3255_v28 }
  0x55   : > { %2669 = vmatmul.msk.bf16.gmra.mxu2 %vm529_vm0, %v3255_v28 }
  0x56   : > { %2677 = vmatmul.msk.bf16.gmra.mxu3 %vm529_vm0, %v3255_v28 }
  0x64   : > { %2654 = vmatmul.msk.bf16.gmra.mxu0 %vm529_vm0, %v3268_v29  ;;  %2662 = vmatmul.msk.bf16.gmra.mxu1 %vm529_vm0, %v3268_v29 }
  0x65   : > { %2670 = vmatmul.msk.bf16.gmra.mxu2 %vm529_vm0, %v3268_v29 }
  0x66   : > { %2678 = vmatmul.msk.bf16.gmra.mxu3 %vm529_vm0, %v3268_v29 }
  0x69   : > { %v3323_v57 = vpop.permute.xlu2 %461 }
  0x6a   : > { %5210 = vst [vmem:[#allocation2_spill] sm:$0xff] %v3323_v57 }
  0x72   : > { %v3340_v63 = vpop.permute.xlu2 %466 }
  0x73   : > { %5212 = vst [vmem:[#allocation4_spill] sm:$0xff] %v3340_v63 }
  0x74   : > { %2655 = vmatmul.msk.bf16.gmra.mxu0 %vm529_vm0, %v3285_v36  ;;  %2663 = vmatmul.msk.bf16.gmra.mxu1 %vm529_vm0, %v3285_v36 }
  0x75   : > { %2671 = vmatmul.msk.bf16.gmra.mxu2 %vm529_vm0, %v3285_v36 }
  0x76   : > { %2679 = vmatmul.msk.bf16.gmra.mxu3 %vm529_vm0, %v3285_v36 }
  0x7a   : > { %v3353_v2 = vpop.permute.xlu2 %441 }
  0x7b   : > { %5214 = vst [vmem:[#allocation6_spill] sm:$0xff] %v3353_v2 }
  0x80   : > { %v3325_v59 = vpop.permute.xlu0 %481 }
  0x81   : > { %5211 = vst [vmem:[#allocation3_spill] sm:$0xff] %v3325_v59  ;;  %v3355_v3 = vpop.permute.xlu1 %471 }
  0x82   : > { %5215 = vst [vmem:[#allocation7_spill] sm:$0xff] %v3355_v3  ;;  %v3370_v9 = vpop.permute.xlu2 %436 }
  0x83   : > { %5217 = vst [vmem:[#allocation9_spill] sm:$0xff] %v3370_v9 }
  0x84   : > { %2656 = vmatmul.msk.bf16.gmra.mxu0 %vm529_vm0, %v3305_v44  ;;  %2664 = vmatmul.msk.bf16.gmra.mxu1 %vm529_vm0, %v3305_v44 }
  0x85   : > { %2672 = vmatmul.msk.bf16.gmra.mxu2 %vm529_vm0, %v3305_v44 }
  0x86   : > { %2680 = vmatmul.msk.bf16.gmra.mxu3 %vm529_vm0, %v3305_v44 }
  0x88   : > { %v3351_v1 = vpop.permute.xlu0 %486 }
  0x89   : > { %5213 = vst [vmem:[#allocation5_spill] sm:$0xff] %v3351_v1  ;;  %v3374_v16 = vpop.permute.xlu1 %476 }
  0x8a   : > { %5219 = vst [vmem:[#allocation11_spill] sm:$0xff] %v3374_v16  ;;  %v3376_v21 = vpop.permute.xlu2 %411 }
  0x90   : > { %v3357_v4 = vpop.permute.xlu0 %451 }
  0x91   : > { %5216 = vst [vmem:[#allocation8_spill] sm:$0xff] %v3357_v4  ;;  %v3382_v22 = vpop.permute.xlu1 %456 }
  0x92   : > { %5220 = vst [vmem:[#allocation12_spill] sm:$0xff] %v3382_v22 }
  0x94   : > { %2657 = vmatmul.msk.bf16.gmra.mxu0 %vm529_vm0, %v3336_v62  ;;  %2665 = vmatmul.msk.bf16.gmra.mxu1 %vm529_vm0, %v3336_v62 }
  0x95   : > { %2673 = vmatmul.msk.bf16.gmra.mxu2 %vm529_vm0, %v3336_v62 }
  0x96   : > { %2681 = vmatmul.msk.bf16.gmra.mxu3 %vm529_vm0, %v3336_v62 }
  0x98   : > { %v3372_v14 = vpop.permute.xlu0 %446 }
  0x99   : > { %5218 = vst [vmem:[#allocation10_spill] sm:$0xff] %v3372_v14  ;;  %v3416_v39 = vpop.permute.xlu1 %431 }
  0x9a   : > { %5225 = vst [vmem:[#allocation17_spill] sm:$0xff] %v3416_v39 }
  0xa1   : > { %v563_v5 = vpop.f32.mrf.mxu0  ;;  %v612_v7 = vpop.f32.mrf.mxu1 }
  0xa2   : > { %v3394_v24 = vadd.f32 %v563_v5, %v3376_v21  ;;  %v3397_v25 = vadd.f32 %v612_v7, %v3376_v21 }
  0xa4   : > { %2682 = vmatmul.msk.bf16.vlgmr.msrb.gmra.mxu0 %vm529_vm0, %v3179_v58  ;;  %2690 = vmatmul.msk.bf16.vlgmr.msrb.gmra.mxu1 %vm529_vm0, %v3179_v58  ;;  %5221 = vst [vmem:[#allocation13_spill] sm:$0xff] %v3394_v24  ;;  %v946_v32 = vmul.f32 %v3394_v24, %v3394_v24  ;;  %v947_v33 = vmul.f32 %v3397_v25, %v3397_v25 }
  0xa5   : > { %2698 = vmatmul.msk.bf16.vlgmr.msrb.gmra.mxu2 %vm529_vm0, %v3179_v58  ;;  %5222 = vst [vmem:[#allocation14_spill] sm:$0xff] %v3397_v25 }
  0xa6   : > { %2706 = vmatmul.msk.bf16.vlgmr.msrb.gmra.mxu3 %vm529_vm0, %v3179_v58  ;;  %v3380_v58 = vpop.permute.xlu0 %421  ;;  %v1074_v35 = vmul.f32 %v946_v32, %v3394_v24  ;;  %v1075_v40 = vmul.f32 %v947_v33, %v3397_v25 }
  0xa8   : > { %v661_v8 = vpop.f32.mrf.mxu2  ;;  %v1202_v50 = vmul.f32 0.044715, %v1074_v35  ;;  %v1203_v53 = vmul.f32 0.044715, %v1075_v40 }
  0xa9   : > { %v710_v10 = vpop.f32.mrf.mxu3  ;;  %v565_v11 = vpop.f32.mrf.mxu0 }
  0xaa   : > { %v614_v12 = vpop.f32.mrf.mxu1  ;;  %v3409_v34 = vadd.f32 %v710_v10, %v3376_v21  ;;  %v1330_v5 = vadd.f32 %v1202_v50, %v3394_v24  ;;  %v312_v10 = vld [vmem:[%s5097_s4 + $0x38] sm:$0xff] }
  0xab   : > { %2199 = vperm.xlu2 %2773, %v312_v10  }
  0xac   : > { %5224 = vst [vmem:[#allocation16_spill] sm:$0xff] %v3409_v34  ;;  %v949_v46 = vmul.f32 %v3409_v34, %v3409_v34  ;;  %v1458_v40 = vmul.f32 0.7978846, %v1330_v5 }
  0xae   : > { %v3414_v38 = vpop.permute.xlu0 %416  ;;  %v1077_v60 = vmul.f32 %v949_v46, %v3409_v34  ;;  %2774 = vtanh.f32 %v1458_v40 }
  0xaf   : > { %v3432_v47 = vadd.f32 %v565_v11, %v3414_v38  ;;  %v3439_v54 = vadd.f32 %v614_v12, %v3414_v38  ;;  %v1331_v11 = vadd.f32 %v1203_v53, %v3397_v25 }
  0xb0   : > { %v663_v17 = vpop.f32.mrf.mxu2 }
  0xb1   : > { %v712_v18 = vpop.f32.mrf.mxu3  ;;  %v568_v19 = vpop.f32.mrf.mxu0  ;;  %5227 = vst [vmem:[#allocation19_spill] sm:$0xff] %v3432_v47  ;;  %v954_v61 = vmul.f32 %v3432_v47, %v3432_v47  ;;  %v3456_v0 = vadd.f32 %v663_v17, %v3414_v38  ;;  %v955_v12 = vmul.f32 %v3439_v54, %v3439_v54  ;;  %v1459_v50 = vmul.f32 0.7978846, %v1331_v11 }
  0xb2   : > { %v617_v20 = vpop.f32.mrf.mxu1  ;;  %v3422_v42 = vadd.f32 %v568_v19, %v3380_v58  ;;  %5229 = vst [vmem:[#allocation21_spill] sm:$0xff] %v3439_v54  ;;  %v3462_v7 = vadd.f32 %v712_v18, %v3414_v38 }
  0xb3   : > { %v3436_v52 = vadd.f32 %v617_v20, %v3380_v58  ;;  %5231 = vst [vmem:[#allocation23_spill] sm:$0xff] %v3456_v0  ;;  %v3478_v20 = vpop.permute.xlu1 %426  ;;  %v1082_v32 = vmul.f32 %v954_v61, %v3432_v47  ;;  %v956_v33 = vmul.f32 %v3456_v0, %v3456_v0  ;;  %2776 = vtanh.f32 %v1459_v50 }
  0xb4   : > { %2683 = vmatmul.msk.bf16.gmra.mxu0 %vm529_vm0, %v3218_v13  ;;  %2691 = vmatmul.msk.bf16.gmra.mxu1 %vm529_vm0, %v3218_v13  ;;  %5226 = vst [vmem:[#allocation18_spill] sm:$0xff] %v3422_v42  ;;  %v962_v55 = vmul.f32 %v3422_v42, %v3422_v42 }
  0xb5   : > { %2699 = vmatmul.msk.bf16.gmra.mxu2 %vm529_vm0, %v3218_v13  ;;  %5228 = vst [vmem:[#allocation20_spill] sm:$0xff] %v3436_v52  ;;  %v1210_v10 = vmul.f32 0.044715, %v1082_v32 }
  0xb6   : > { %2707 = vmatmul.msk.bf16.gmra.mxu3 %vm529_vm0, %v3218_v13  ;;  %v3404_v13 = vadd.f32 %v661_v8, %v3376_v21  ;;  %5232 = vst [vmem:[#allocation24_spill] sm:$0xff] %v3462_v7  ;;  %v963_v8 = vmul.f32 %v3436_v52, %v3436_v52 }
  0xb8   : > { %v666_v26 = vpop.f32.mrf.mxu2  ;;  %5223 = vst [vmem:[#allocation15_spill] sm:$0xff] %v3404_v13  ;;  %v948_v37 = vmul.f32 %v3404_v13, %v3404_v13  ;;  %v1091_v46 = vmul.f32 %v963_v8, %v3436_v52  ;;  %v1084_v8 = vmul.f32 %v956_v33, %v3456_v0 }
  0xb9   : > { %v715_v27 = vpop.f32.mrf.mxu3  ;;  %v570_v30 = vpop.f32.mrf.mxu0  ;;  %v3446_v56 = vadd.f32 %v666_v26, %v3380_v58  ;;  %v1205_v26 = vmul.f32 0.044715, %v1077_v60 }
  0xba   : > { %v3399_v31 = vpop.f32.mrf.mxu1  ;;  %v1076_v51 = vmul.f32 %v948_v37, %v3404_v13  ;;  %v3476_v18 = vadd.f32 %v715_v27, %v3380_v58  ;;  %v957_v27 = vmul.f32 %v3462_v7, %v3462_v7  ;;  %v3495_v53 = vadd.f32 %v570_v30, %v3478_v20 }
  0xbb   : > { %5230 = vst [vmem:[#allocation22_spill] sm:$0xff] %v3446_v56  ;;  %v964_v19 = vmul.f32 %v3446_v56, %v3446_v56  ;;  %v1212_v50 = vmul.f32 0.044715, %v1084_v8 }
  0xbc   : > { %v1204_v6 = vmul.f32 0.044715, %v1076_v51  ;;  %5233 = vst [vmem:[#allocation25_spill] sm:$0xff] %v3476_v18  ;;  %v1083_v51 = vmul.f32 %v955_v12, %v3439_v54  ;;  %v965_v61 = vmul.f32 %v3476_v18, %v3476_v18  ;;  %v1085_v12 = vmul.f32 %v957_v27, %v3462_v7 }
  0xbd   : > { %5234 = vst [vmem:[#allocation26_spill] sm:$0xff] %v3495_v53  ;;  %v1092_v60 = vmul.f32 %v964_v19, %v3446_v56 }
  0xbe   : > { %v1332_v45 = vadd.f32 %v1204_v6, %v3404_v13  ;;  %v1333_v6 = vadd.f32 %v1205_v26, %v3409_v34  ;;  %v1211_v19 = vmul.f32 0.044715, %v1083_v51  ;;  %v970_v13 = vmul.f32 %v3495_v53, %v3495_v53 }
  0xbf   : > { %v1093_v33 = vmul.f32 %v965_v61, %v3476_v18 }
  0xc0   : > { %v3419_v41 = vpop.f32.mrf.mxu2  ;;  %v1460_v30 = vmul.f32 0.7978846, %v1332_v45  ;;  %v1461_v27 = vmul.f32 0.7978846, %v1333_v6  ;;  %v1098_v25 = vmul.f32 %v970_v13, %v3495_v53 }
  0xc1   : > { %v3424_v43 = vpop.f32.mrf.mxu3  ;;  %v573_v48 = vpop.f32.mrf.mxu0  ;;  %v3531_v61 = vadd.f32 %v3419_v41, %v3478_v20 }
  0xc2   : > { %v622_v49 = vpop.f32.mrf.mxu1  ;;  %v3501_v5 = vadd.f32 %v573_v48, %v3416_v39  ;;  %v3513_v48 = vadd.f32 %v3399_v31, %v3478_v20  ;;  %2778 = vtanh.f32 %v1460_v30  ;;  %v3545_v30 = vpop.eup %2774 }
  0xc3   : > { %v3506_v11 = vadd.f32 %v622_v49, %v3416_v39  ;;  %v1220_v49 = vmul.f32 0.044715, %v1092_v60  ;;  %5239 = vst [vmem:[#allocation31_spill] sm:$0xff] %v3531_v61  ;;  %2780 = vtanh.f32 %v1461_v27 }
  0xc4   : > { %2684 = vmatmul.msk.bf16.gmra.mxu0 %vm529_vm0, %v3234_v15  ;;  %2692 = vmatmul.msk.bf16.gmra.mxu1 %vm529_vm0, %v3234_v15  ;;  %5235 = vst [vmem:[#allocation27_spill] sm:$0xff] %v3501_v5  ;;  %v978_v40 = vmul.f32 %v3501_v5, %v3501_v5  ;;  %v971_v6 = vmul.f32 %v3513_v48, %v3513_v48 }
  0xc5   : > { %2700 = vmatmul.msk.bf16.gmra.mxu2 %vm529_vm0, %v3234_v15  ;;  %5236 = vst [vmem:[#allocation28_spill] sm:$0xff] %v3506_v11  ;;  %v979_v31 = vmul.f32 %v3506_v11, %v3506_v11  ;;  %v1348_v41 = vadd.f32 %v1220_v49, %v3446_v56 }
  0xc6   : > { %2708 = vmatmul.msk.bf16.gmra.mxu3 %vm529_vm0, %v3234_v15  ;;  %v1090_v15 = vmul.f32 %v962_v55, %v3422_v42  ;;  %5237 = vst [vmem:[#allocation29_spill] sm:$0xff] %v3513_v48  ;;  %v1106_v13 = vmul.f32 %v978_v40, %v3501_v5  ;;  %v972_v40 = vmul.f32 %v3531_v61, %v3531_v61 }
  0xc7   : > { %5242 = vst [vmem:[#allocation34_spill] sm:$0xff] %v3545_v30 }
  0xc8   : > { %v671_v17 = vpop.f32.mrf.mxu2  ;;  %v1218_v55 = vmul.f32 0.044715, %v1090_v15  ;;  %v1219_v15 = vmul.f32 0.044715, %v1091_v46  ;;  %v3524_v46 = vadd.f32 %v1210_v10, %v3432_v47  ;;  %v3538_v10 = vadd.f32 %v3424_v43, %v3478_v20  ;;  %v3553_v43 = vpop.eup %2776 }
  0xc9   : > { %v3480_v23 = vpop.f32.mrf.mxu3  ;;  %v3485_v35 = vpop.f32.mrf.mxu0  ;;  %v3541_v8 = vadd.f32 %v671_v17, %v3416_v39  ;;  %5243 = vst [vmem:[#allocation35_spill] sm:$0xff] %v3553_v43  ;;  %v3556_v17 = vadd.f32 %v1211_v19, %v3439_v54  ;;  %v3559_v47 = vadd.f32 %v1212_v50, %v3456_v0  ;;  %v1226_v19 = vmul.f32 0.044715, %v1098_v25 }
  0xca   : > { %v3487_v37 = vpop.f32.mrf.mxu1  ;;  %v1346_v32 = vadd.f32 %v1218_v55, %v3422_v42  ;;  %5238 = vst [vmem:[#allocation30_spill] sm:$0xff] %v3524_v46  ;;  %v1213_v55 = vmul.f32 0.044715, %v1085_v12  ;;  %v1347_v60 = vadd.f32 %v1219_v15, %v3436_v52  ;;  %v1221_v15 = vmul.f32 0.044715, %v1093_v33 }
  0xcb   : > { %5240 = vst [vmem:[#allocation32_spill] sm:$0xff] %v3538_v10  ;;  %v3571_v27 = vadd.f32 %v3480_v23, %v3416_v39  ;;  %v1099_v50 = vmul.f32 %v971_v6, %v3513_v48  ;;  %v3583_v25 = vadd.f32 %v3485_v35, %v3370_v9  ;;  %v3587_v6 = vadd.f32 %v3487_v37, %v3370_v9 }
  0xcc   : > { %5241 = vst [vmem:[#allocation33_spill] sm:$0xff] %v3541_v8  ;;  %v1474_v12 = vmul.f32 0.7978846, %v1346_v32  ;;  %v1107_v32 = vmul.f32 %v979_v31, %v3506_v11  ;;  %v3565_v49 = vadd.f32 %v1213_v55, %v3462_v7  ;;  %v1475_v33 = vmul.f32 0.7978846, %v1347_v60  ;;  %v3578_v55 = vpop.eup %2778 }
  0xcd   : > { %5244 = vst [vmem:[#allocation36_spill] sm:$0xff] %v3556_v17  ;;  %v973_v31 = vmul.f32 %v3538_v10, %v3538_v10  ;;  %v1476_v60 = vmul.f32 0.7978846, %v1348_v41  ;;  %v1349_v7 = vadd.f32 %v1221_v15, %v3476_v18  ;;  %v981_v41 = vmul.f32 %v3571_v27, %v3571_v27  ;;  %v3600_v35 = vpop.eup %2780 }
  0xce   : > { %5245 = vst [vmem:[#allocation37_spill] sm:$0xff] %v3559_v47  ;;  %2782 = vtanh.f32 %v1474_v12  ;;  %v1235_v23 = vmul.f32 0.044715, %v1107_v32  ;;  %v1100_v12 = vmul.f32 %v972_v40, %v3531_v61  ;;  %v3603_v37 = vadd.f32 %v1226_v19, %v3495_v53 }
  0xcf   : > { %5246 = vst [vmem:[#allocation38_spill] sm:$0xff] %v3565_v49  ;;  %v1234_v49 = vmul.f32 0.044715, %v1106_v13  ;;  %2784 = vtanh.f32 %v1475_v33  ;;  %v1227_v13 = vmul.f32 0.044715, %v1099_v50  ;;  %v987_v19 = vmul.f32 %v3587_v6, %v3587_v6 }
  0xd0   : > { %v3515_v26 = vpop.f32.mrf.mxu2  ;;  %5247 = vst [vmem:[#allocation39_spill] sm:$0xff] %v3571_v27  ;;  %2786 = vtanh.f32 %v1476_v60  ;;  %v1477_v33 = vmul.f32 0.7978846, %v1349_v7  ;;  %v1109_v7 = vmul.f32 %v981_v41, %v3571_v27 }
  0xd1   : > { %v3521_v45 = vpop.f32.mrf.mxu3  ;;  %v578_v51 = vpop.f32.mrf.mxu0  ;;  %5248 = vst [vmem:[#allocation40_spill] sm:$0xff] %v3578_v55  ;;  %v1362_v40 = vadd.f32 %v1234_v49, %v3501_v5  ;;  %v3628_v43 = vadd.f32 %v3515_v26, %v3370_v9  ;;  %v3637_v41 = vadd.f32 %v1227_v13, %v3513_v48 }
  0xd2   : > { %v627_v34 = vpop.f32.mrf.mxu1  ;;  %5249 = vst [vmem:[#allocation41_spill] sm:$0xff] %v3583_v25  ;;  %v3590_v47 = vadd.f32 %v578_v51, %v3353_v2  ;;  %v1101_v51 = vmul.f32 %v973_v31, %v3538_v10  ;;  %v3632_v24 = vadd.f32 %v3521_v45, %v3370_v9  ;;  %2788 = vtanh.f32 %v1477_v33 }
  0xd3   : > { %5250 = vst [vmem:[#allocation42_spill] sm:$0xff] %v3587_v6  ;;  %v3598_v15 = vadd.f32 %v627_v34, %v3353_v2  ;;  %v1363_v34 = vadd.f32 %v1235_v23, %v3506_v11  ;;  %v1490_v17 = vmul.f32 0.7978846, %v1362_v40  ;;  %v1237_v13 = vmul.f32 0.044715, %v1109_v7 }
  0xd4   : > { %2685 = vmatmul.msk.bf16.gmra.mxu0 %vm529_vm0, %v3255_v28  ;;  %2693 = vmatmul.msk.bf16.gmra.mxu1 %vm529_vm0, %v3255_v28  ;;  %5251 = vst [vmem:[#allocation43_spill] sm:$0xff] %v3590_v47  ;;  %v994_v50 = vmul.f32 %v3590_v47, %v3590_v47  ;;  %v3618_v31 = vpop.eup %2782  ;;  %v1229_v60 = vmul.f32 0.044715, %v1101_v51 }
  0xd5   : > { %2701 = vmatmul.msk.bf16.gmra.mxu2 %vm529_vm0, %v3255_v28  ;;  %5252 = vst [vmem:[#allocation44_spill] sm:$0xff] %v3598_v15  ;;  %2790 = vtanh.f32 %v1490_v17 }
  0xd6   : > { %2709 = vmatmul.msk.bf16.gmra.mxu3 %vm529_vm0, %v3255_v28  ;;  %v980_v28 = vmul.f32 %v3541_v8, %v3541_v8  ;;  %5253 = vst [vmem:[#allocation45_spill] sm:$0xff] %v3600_v35  ;;  %v986_v35 = vmul.f32 %v3583_v25, %v3583_v25  ;;  %v1122_v45 = vmul.f32 %v994_v50, %v3590_v47 }
  0xd7   : > { %5254 = vst [vmem:[#allocation46_spill] sm:$0xff] %v3603_v37  ;;  %v989_v50 = vmul.f32 %v3632_v24, %v3632_v24 }
  0xd8   : > { %v676_v0 = vpop.f32.mrf.mxu2  ;;  %v1108_v32 = vmul.f32 %v980_v28, %v3541_v8  ;;  %5256 = vst [vmem:[#allocation48_spill] sm:$0xff] %v3618_v31  ;;  %v1228_v28 = vmul.f32 0.044715, %v1100_v12  ;;  %v3634_v12 = vpop.eup %2784  ;;  %v1114_v26 = vmul.f32 %v986_v35, %v3583_v25 }
  0xd9   : > { %v725_v56 = vpop.f32.mrf.mxu3  ;;  %v580_v54 = vpop.f32.mrf.mxu0  ;;  %v3609_v18 = vadd.f32 %v676_v0, %v3353_v2  ;;  %v995_v0 = vmul.f32 %v3598_v15, %v3598_v15  ;;  %5258 = vst [vmem:[#allocation50_spill] sm:$0xff] %v3628_v43 }
  0xda   : > { %v3592_v55 = vpop.f32.mrf.mxu1  ;;  %v3624_v49 = vadd.f32 %v725_v56, %v3353_v2  ;;  %v1236_v23 = vmul.f32 0.044715, %v1108_v32  ;;  %5259 = vst [vmem:[#allocation51_spill] sm:$0xff] %v3632_v24  ;;  %v1491_v32 = vmul.f32 0.7978846, %v1363_v34  ;;  %v1115_v2 = vmul.f32 %v987_v19, %v3587_v6  ;;  %v3644_v53 = vpop.eup %2786 }
  0xdb   : > { %5255 = vst [vmem:[#allocation47_spill] sm:$0xff] %v3609_v18  ;;  %v996_v56 = vmul.f32 %v3609_v18, %v3609_v18  ;;  %v3647_v33 = vadd.f32 %v1228_v28, %v3531_v61  ;;  %v1123_v40 = vmul.f32 %v995_v0, %v3598_v15  ;;  %v3653_v34 = vadd.f32 %v1229_v60, %v3538_v10  ;;  %v3675_v17 = vpop.eup %2788 }
  0xdc   : > { %5257 = vst [vmem:[#allocation49_spill] sm:$0xff] %v3624_v49  ;;  %v997_v48 = vmul.f32 %v3624_v49, %v3624_v49  ;;  %v1364_v35 = vadd.f32 %v1236_v23, %v3541_v8  ;;  %v988_v19 = vmul.f32 %v3628_v43, %v3628_v43  ;;  %v3664_v7 = vadd.f32 %v580_v54, %v3372_v14 }
  0xdd   : > { %5260 = vst [vmem:[#allocation52_spill] sm:$0xff] %v3634_v12  ;;  %v1124_v28 = vmul.f32 %v996_v56, %v3609_v18  ;;  %2792 = vtanh.f32 %v1491_v32  ;;  %v1242_v60 = vmul.f32 0.044715, %v1114_v26  ;;  %v1243_v23 = vmul.f32 0.044715, %v1115_v2 }
  0xde   : > { %5261 = vst [vmem:[#allocation53_spill] sm:$0xff] %v3637_v41  ;;  %v1250_v10 = vmul.f32 0.044715, %v1122_v45  ;;  %v1365_v54 = vadd.f32 %v1237_v13, %v3571_v27  ;;  %v1251_v56 = vmul.f32 0.044715, %v1123_v40  ;;  %v3681_v61 = vadd.f32 %v3592_v55, %v3372_v14 }
  0xdf   : > { %5262 = vst [vmem:[#allocation54_spill] sm:$0xff] %v3644_v53  ;;  %v1492_v53 = vmul.f32 0.7978846, %v1364_v35  ;;  %v1116_v32 = vmul.f32 %v988_v19, %v3628_v43  ;;  %v1117_v45 = vmul.f32 %v989_v50, %v3632_v24  ;;  %v1252_v13 = vmul.f32 0.044715, %v1124_v28 }
  0xe0   : > { %v678_v30 = vpop.f32.mrf.mxu2  ;;  %5263 = vst [vmem:[#allocation55_spill] sm:$0xff] %v3647_v33  ;;  %v3696_v35 = vadd.f32 %v1242_v60, %v3583_v25  ;;  %v1003_v27 = vmul.f32 %v3681_v61, %v3681_v61  ;;  %v1493_v8 = vmul.f32 0.7978846, %v1365_v54 }
  0xe1   : > { %v727_v51 = vpop.f32.mrf.mxu3  ;;  %v583_v46 = vpop.f32.mrf.mxu0  ;;  %5264 = vst [vmem:[#allocation56_spill] sm:$0xff] %v3653_v34  ;;  %v3685_v2 = vadd.f32 %v678_v30, %v3372_v14  ;;  %v3699_v30 = vadd.f32 %v1243_v23, %v3587_v6  ;;  %v1379_v34 = vadd.f32 %v1251_v56, %v3598_v15  ;;  %v1245_v42 = vmul.f32 0.044715, %v1117_v45 }
  0xe2   : > { %v632_v52 = vpop.f32.mrf.mxu1  ;;  %5265 = vst [vmem:[#allocation57_spill] sm:$0xff] %v3664_v7  ;;  %v3667_v0 = vadd.f32 %v583_v46, %v3357_v4  ;;  %v1125_v46 = vmul.f32 %v997_v48, %v3624_v49  ;;  %v1002_v48 = vmul.f32 %v3664_v7, %v3664_v7  ;;  %v3711_v60 = vadd.f32 %v727_v51, %v3372_v14 }
  0xe3   : > { %5266 = vst [vmem:[#allocation58_spill] sm:$0xff] %v3675_v17  ;;  %v3688_v26 = vadd.f32 %v632_v52, %v3357_v4  ;;  %v1378_v52 = vadd.f32 %v1250_v10, %v3590_v47  ;;  %v3705_v17 = vpop.eup %2790  ;;  %v1244_v10 = vmul.f32 0.044715, %v1116_v32  ;;  %v1380_v56 = vadd.f32 %v1252_v13, %v3609_v18 }
  0xe4   : > { %2686 = vmatmul.msk.bf16.gmra.mxu0 %vm529_vm0, %v3268_v29  ;;  %2694 = vmatmul.msk.bf16.gmra.mxu1 %vm529_vm0, %v3268_v29  ;;  %5267 = vst [vmem:[#allocation59_spill] sm:$0xff] %v3681_v61  ;;  %v1010_v55 = vmul.f32 %v3667_v0, %v3667_v0  ;;  %v1253_v33 = vmul.f32 0.044715, %v1125_v46  ;;  %v3713_v23 = vpop.eup %2792  ;;  %v1130_v46 = vmul.f32 %v1002_v48, %v3664_v7  ;;  %2794 = vtanh.f32 %v1492_v53 }
  0xe5   : > { %2702 = vmatmul.msk.bf16.gmra.mxu2 %vm529_vm0, %v3268_v29  ;;  %5268 = vst [vmem:[#allocation60_spill] sm:$0xff] %v3685_v2  ;;  %v1011_v12 = vmul.f32 %v3688_v26, %v3688_v26  ;;  %v1506_v51 = vmul.f32 0.7978846, %v1378_v52  ;;  %v1507_v32 = vmul.f32 0.7978846, %v1379_v34  ;;  %v1131_v37 = vmul.f32 %v1003_v27, %v3681_v61 }
  0xe6   : > { %2710 = vmatmul.msk.bf16.gmra.mxu3 %vm529_vm0, %v3268_v29  ;;  %5269 = vst [vmem:[#allocation61_spill] sm:$0xff] %v3688_v26  ;;  %v1138_v31 = vmul.f32 %v1010_v55, %v3667_v0  ;;  %v1381_v41 = vadd.f32 %v1253_v33, %v3624_v49  ;;  %v1005_v45 = vmul.f32 %v3711_v60, %v3711_v60  ;;  %2796 = vtanh.f32 %v1493_v8 }
  0xe7   : > { %5270 = vst [vmem:[#allocation62_spill] sm:$0xff] %v3696_v35  ;;  %v3732_v13 = vadd.f32 %v1244_v10, %v3628_v43  ;;  %v1139_v48 = vmul.f32 %v1011_v12, %v3688_v26  ;;  %v1508_v34 = vmul.f32 0.7978846, %v1380_v56  ;;  %v1258_v52 = vmul.f32 0.044715, %v1130_v46 }
  0xe8   : > { %v681_v29 = vpop.f32.mrf.mxu2  ;;  %5271 = vst [vmem:[#allocation63_spill] sm:$0xff] %v3699_v30  ;;  %v1266_v33 = vmul.f32 0.044715, %v1138_v31  ;;  %2798 = vtanh.f32 %v1506_v51  ;;  %v1509_v12 = vmul.f32 0.7978846, %v1381_v41 }
  0xe9   : > { %v730_v40 = vpop.f32.mrf.mxu3  ;;  %v3703_v19 = vadd.f32 %v681_v29, %v3357_v4  ;;  %v585_v50 = vpop.f32.mrf.mxu0  ;;  %5273 = vst [vmem:[#allocation65_spill] sm:$0xff] %v3705_v17  ;;  %v1004_v29 = vmul.f32 %v3685_v2, %v3685_v2  ;;  %2800 = vtanh.f32 %v1507_v32  ;;  %v1267_v46 = vmul.f32 0.044715, %v1139_v48 }
  0xea   : > { %v634_v28 = vpop.f32.mrf.mxu1  ;;  %5274 = vst [vmem:[#allocation66_spill] sm:$0xff] %v3711_v60  ;;  %v3725_v54 = vadd.f32 %v730_v40, %v3357_v4  ;;  %v3737_v40 = vadd.f32 %v1245_v42, %v3632_v24  ;;  %v3743_v10 = vadd.f32 %v585_v50, %v3382_v22  ;;  %v1133_v42 = vmul.f32 %v1005_v45, %v3711_v60  ;;  %v3746_v56 = vpop.eup %2794 }
  0xeb   : > { %5272 = vst [vmem:[#allocation64_spill] sm:$0xff] %v3703_v19  ;;  %v1012_v14 = vmul.f32 %v3703_v19, %v3703_v19  ;;  %v1132_v53 = vmul.f32 %v1004_v29, %v3685_v2  ;;  %2802 = vtanh.f32 %v1508_v34  ;;  %v3757_v50 = vadd.f32 %v1258_v52, %v3664_v7 }
  0xec   : > { %5275 = vst [vmem:[#allocation67_spill] sm:$0xff] %v3713_v23  ;;  %v1013_v8 = vmul.f32 %v3725_v54, %v3725_v54  ;;  %v3761_v41 = vadd.f32 %v634_v28, %v3382_v22  ;;  %2804 = vtanh.f32 %v1509_v12 }
  0xed   : > { %5276 = vst [vmem:[#allocation68_spill] sm:$0xff] %v3725_v54  ;;  %v1140_v27 = vmul.f32 %v1012_v14, %v3703_v19  ;;  %v1260_v31 = vmul.f32 0.044715, %v1132_v53  ;;  %v1018_v53 = vmul.f32 %v3743_v10, %v3743_v10 }
  0xee   : > { %5277 = vst [vmem:[#allocation69_spill] sm:$0xff] %v3732_v13  ;;  %v1259_v13 = vmul.f32 0.044715, %v1131_v37  ;;  %v1394_v37 = vadd.f32 %v1266_v33, %v3667_v0  ;;  %v1141_v45 = vmul.f32 %v1013_v8, %v3725_v54  ;;  %v1261_v8 = vmul.f32 0.044715, %v1133_v42 }
  0xef   : > { %5278 = vst [vmem:[#allocation70_spill] sm:$0xff] %v3737_v40  ;;  %v1268_v32 = vmul.f32 0.044715, %v1140_v27  ;;  %v3787_v27 = vadd.f32 %v1260_v31, %v3685_v2 }
  0xf0   : > { %v683_v55 = vpop.f32.mrf.mxu2  ;;  %5279 = vst [vmem:[#allocation71_spill] sm:$0xff] %v3743_v10  ;;  %v3777_v28 = vadd.f32 %v1259_v13, %v3681_v61  ;;  %v1522_v13 = vmul.f32 0.7978846, %v1394_v37  ;;  %v1269_v40 = vmul.f32 0.044715, %v1141_v45 }
  0xf1   : > { %v732_v4 = vpop.f32.mrf.mxu3  ;;  %v588_v29 = vpop.f32.mrf.mxu0  ;;  %5280 = vst [vmem:[#allocation72_spill] sm:$0xff] %v3746_v56  ;;  %v3780_v34 = vadd.f32 %v683_v55, %v3382_v22  ;;  %v1019_v55 = vmul.f32 %v3761_v41, %v3761_v41  ;;  %v1396_v42 = vadd.f32 %v1268_v32, %v3703_v19 }
  0xf2   : > { %v637_v43 = vpop.f32.mrf.mxu1  ;;  %v3749_v51 = vadd.f32 %v588_v29, %v3323_v57  ;;  %5281 = vst [vmem:[#allocation73_spill] sm:$0xff] %v3757_v50  ;;  %v1395_v29 = vadd.f32 %v1267_v46, %v3688_v26  ;;  %v1146_v46 = vmul.f32 %v1018_v53, %v3743_v10  ;;  %v1397_v11 = vadd.f32 %v1269_v40, %v3725_v54 }
  0xf3   : > { %v3752_v14 = vadd.f32 %v637_v43, %v3323_v57  ;;  %5282 = vst [vmem:[#allocation74_spill] sm:$0xff] %v3761_v41  ;;  %v3767_v43 = vpop.eup %2796  ;;  %2806 = vtanh.f32 %v1522_v13 }
  0xf4   : > { %2687 = vmatmul.msk.bf16.gmra.mxu0 %vm529_vm0, %v3285_v36  ;;  %2695 = vmatmul.msk.bf16.gmra.mxu1 %vm529_vm0, %v3285_v36  ;;  %5283 = vst [vmem:[#allocation75_spill] sm:$0xff] %v3767_v43  ;;  %v1026_v48 = vmul.f32 %v3749_v51, %v3749_v51  ;;  %v3784_v33 = vpop.eup %2798  ;;  %v3796_v43 = vadd.f32 %v732_v4, %v3382_v22  ;;  %v1523_v45 = vmul.f32 0.7978846, %v1395_v29  ;;  %v1666_v61 = vmul.f32 0.5, %v3749_v51 }
  0xf5   : > { %2703 = vmatmul.msk.bf16.gmra.mxu2 %vm529_vm0, %v3285_v36  ;;  %5284 = vst [vmem:[#allocation76_spill] sm:$0xff] %v3777_v28  ;;  %v1027_v52 = vmul.f32 %v3752_v14, %v3752_v14  ;;  %v3791_v24 = vpop.eup %2800  ;;  %v1020_v4 = vmul.f32 %v3780_v34, %v3780_v34  ;;  %v3830_v29 = vadd.f32 %v1261_v8, %v3711_v60 }
  0xf6   : > { %2711 = vmatmul.msk.bf16.gmra.mxu3 %vm529_vm0, %v3285_v36  ;;  %5285 = vst [vmem:[#allocation77_spill] sm:$0xff] %v3780_v34  ;;  %v1154_v36 = vmul.f32 %v1026_v48, %v3749_v51  ;;  %v3806_v2 = vpop.eup %2802  ;;  %2808 = vtanh.f32 %v1523_v45 }
  0xf7   : > { %5286 = vst [vmem:[#allocation78_spill] sm:$0xff] %v3784_v33  ;;  %v1155_v22 = vmul.f32 %v1027_v52, %v3752_v14  ;;  %v3821_v18 = vpop.eup %2804  ;;  %v1021_v52 = vmul.f32 %v3796_v43, %v3796_v43 }
  0xf8   : > { %5287 = vst [vmem:[#allocation79_spill] sm:$0xff] %v3787_v27  ;;  %v686_v12 = vpop.f32.mrf.mxu2  ;;  %v1282_v53 = vmul.f32 0.044715, %v1154_v36  ;;  %v1524_v36 = vmul.f32 0.7978846, %v1396_v42 }
  0xf9   : > { %5288 = vst [vmem:[#allocation80_spill] sm:$0xff] %v3791_v24  ;;  %v3799_v56 = vadd.f32 %v686_v12, %v3323_v57  ;;  %v735_v31 = vpop.f32.mrf.mxu3  ;;  %v590_v49 = vpop.f32.mrf.mxu0  ;;  %v1283_v27 = vmul.f32 0.044715, %v1155_v22  ;;  %v1149_v42 = vmul.f32 %v1021_v52, %v3796_v43 }
  0xfa   : > { %5289 = vst [vmem:[#allocation81_spill] sm:$0xff] %v3796_v43  ;;  %v3804_v48 = vadd.f32 %v735_v31, %v3323_v57  ;;  %v639_v37 = vpop.f32.mrf.mxu1  ;;  %v3814_v32 = vadd.f32 %v590_v49, %v3340_v63  ;;  %v1410_v23 = vadd.f32 %v1282_v53, %v3749_v51  ;;  %2810 = vtanh.f32 %v1524_v36 }
  0xfb   : > { %5290 = vst [vmem:[#allocation82_spill] sm:$0xff] %v3799_v56  ;;  %v1028_v12 = vmul.f32 %v3799_v56, %v3799_v56  ;;  %v3819_v57 = vadd.f32 %v639_v37, %v3340_v63  ;;  %v1274_v37 = vmul.f32 0.044715, %v1146_v46 }
  0xfc   : > { %5291 = vst [vmem:[#allocation83_spill] sm:$0xff] %v3804_v48  ;;  %v1029_v31 = vmul.f32 %v3804_v48, %v3804_v48  ;;  %v1034_v49 = vmul.f32 %v3814_v32, %v3814_v32 }
  0xfd   : > { %5292 = vst [vmem:[#allocation84_spill] sm:$0xff] %v3806_v2  ;;  %v1147_v2 = vmul.f32 %v1019_v55, %v3761_v41  ;;  %v1156_v6 = vmul.f32 %v1028_v12, %v3799_v56  ;;  %v1035_v25 = vmul.f32 %v3819_v57, %v3819_v57  ;;  %v3841_v22 = vadd.f32 %v1274_v37, %v3743_v10  ;;  %v3857_v37 = vpop.eup %2806 }
  0xfe   : > { %5293 = vst [vmem:[#allocation85_spill] sm:$0xff] %v3821_v18  ;;  %v1148_v18 = vmul.f32 %v1020_v4, %v3780_v34  ;;  %v1162_v55 = vmul.f32 %v1034_v49, %v3814_v32  ;;  %v1157_v12 = vmul.f32 %v1029_v31, %v3804_v48  ;;  %v1525_v4 = vmul.f32 0.7978846, %v1397_v11 }
  0xff   : > { %5294 = vst [vmem:[#allocation86_spill] sm:$0xff] %v3830_v29  ;;  %v1275_v60 = vmul.f32 0.044715, %v1147_v2  ;;  %v1284_v40 = vmul.f32 0.044715, %v1156_v6  ;;  %v1411_v29 = vadd.f32 %v1283_v27, %v3752_v14  ;;  %v1163_v11 = vmul.f32 %v1035_v25, %v3819_v57  ;;  %v3869_v25 = vpop.eup %2808 }
 0x100   : > { %v688_v8 = vpop.f32.mrf.mxu2  ;;  %v1290_v46 = vmul.f32 0.044715, %v1162_v55  ;;  %v1276_v49 = vmul.f32 0.044715, %v1148_v18  ;;  %v1538_v6 = vmul.f32 0.7978846, %v1410_v23  ;;  %2812 = vtanh.f32 %v1525_v4  ;;  %v3884_v4 = vpop.eup %2810 }
 0x101   : > { %v737_v13 = vpop.f32.mrf.mxu3  ;;  %v3844_v45 = vadd.f32 %v688_v8, %v3340_v63  ;;  %v593_v53 = vpop.f32.mrf.mxu0  ;;  %v1285_v55 = vmul.f32 0.044715, %v1157_v12  ;;  %5296 = vst [vmem:[#allocation88_spill] sm:$0xff] %v3857_v37  ;;  %v1277_v18 = vmul.f32 0.044715, %v1149_v42  ;;  %v1412_v27 = vadd.f32 %v1284_v40, %v3799_v56 }
 0x102   : > { %v642_v31 = vpop.f32.mrf.mxu1  ;;  %v1418_v2 = vadd.f32 %v1290_v46, %v3814_v32  ;;  %v3849_v52 = vadd.f32 %v593_v53, %v3355_v3  ;;  %v3861_v8 = vadd.f32 %v737_v13, %v3340_v63  ;;  %5298 = vst [vmem:[#allocation90_spill] sm:$0xff] %v3869_v25  ;;  %v3872_v12 = vadd.f32 %v1275_v60, %v3761_v41 }
 0x103   : > { %5295 = vst [vmem:[#allocation87_spill] sm:$0xff] %v3844_v45  ;;  %v3853_v36 = vadd.f32 %v642_v31, %v3355_v3  ;;  %v1036_v42 = vmul.f32 %v3844_v45, %v3844_v45  ;;  %v3881_v46 = vadd.f32 %v1276_v49, %v3780_v34  ;;  %v1539_v13 = vmul.f32 0.7978846, %v1411_v29 }
 0x104   : > { %2688 = vmatmul.msk.bf16.gmra.mxu0 %vm529_vm0, %v3305_v44  ;;  %5297 = vst [vmem:[#allocation89_spill] sm:$0xff] %v3861_v8  ;;  %v1042_v23 = vmul.f32 %v3849_v52, %v3849_v52  ;;  %2696 = vmatmul.msk.bf16.gmra.mxu1 %vm529_vm0, %v3305_v44  ;;  %v1546_v31 = vmul.f32 0.7978846, %v1418_v2  ;;  %2814 = vtanh.f32 %v1538_v6  ;;  %v1413_v60 = vadd.f32 %v1285_v55, %v3804_v48 }
 0x105   : > { %2704 = vmatmul.msk.bf16.gmra.mxu2 %vm529_vm0, %v3305_v44  ;;  %v1043_v40 = vmul.f32 %v3853_v36, %v3853_v36  ;;  %5299 = vst [vmem:[#allocation91_spill] sm:$0xff] %v3881_v46  ;;  %v1291_v63 = vmul.f32 0.044715, %v1163_v11  ;;  %v3889_v5 = vadd.f32 %v1277_v18, %v3796_v43  ;;  %v1037_v49 = vmul.f32 %v3861_v8, %v3861_v8 }
 0x106   : > { %2712 = vmatmul.msk.bf16.gmra.mxu3 %vm529_vm0, %v3305_v44  ;;  %v1170_v53 = vmul.f32 %v1042_v23, %v3849_v52  ;;  %5300 = vst [vmem:[#allocation92_spill] sm:$0xff] %v3884_v4  ;;  %v1540_v44 = vmul.f32 0.7978846, %v1412_v27  ;;  %v1164_v23 = vmul.f32 %v1036_v42, %v3844_v45  ;;  %2816 = vtanh.f32 %v1546_v31 }
 0x107   : > { %v1171_v9 = vmul.f32 %v1043_v40, %v3853_v36  ;;  %5301 = vst [vmem:[#allocation93_spill] sm:$0xff] %v3889_v5  ;;  %2818 = vtanh.f32 %v1539_v13  ;;  %v1541_v54 = vmul.f32 0.7978846, %v1413_v60  ;;  %v3907_v42 = vadd.f32 %v1291_v63, %v3819_v57 }
 0x108   : > { %v691_v17 = vpop.f32.mrf.mxu2  ;;  %v1298_v6 = vmul.f32 0.044715, %v1170_v53  ;;  %v1165_v31 = vmul.f32 %v1037_v49, %v3861_v8  ;;  %2820 = vtanh.f32 %v1540_v44  ;;  %v3927_v5 = vmul.f32 0.5, %v3853_v36 }
 0x109   : > { %v3894_v29 = vadd.f32 %v691_v17, %v3355_v3  ;;  %v740_v2 = vpop.f32.mrf.mxu3  ;;  %v595_v11 = vpop.f32.mrf.mxu0  ;;  %v1299_v30 = vmul.f32 0.044715, %v1171_v9  ;;  %2822 = vtanh.f32 %v1541_v54 }
 0x10a   : > { %v3898_v55 = vadd.f32 %v740_v2, %v3355_v3  ;;  %v644_v40 = vpop.f32.mrf.mxu1  ;;  %v596_v27 = vadd.f32 %v595_v11, %v3374_v16  ;;  %v3904_v17 = vpop.eup %2812  ;;  %v1292_v11 = vmul.f32 0.044715, %v1164_v23  ;;  %v1293_v44 = vmul.f32 0.044715, %v1165_v31 }
 0x10b   : > { %v1044_v18 = vmul.f32 %v3894_v29, %v3894_v29  ;;  %v645_v43 = vadd.f32 %v644_v40, %v3374_v16  ;;  %5302 = vst [vmem:[#allocation94_spill] sm:$0xff] %v3904_v17  ;;  %v2815_v35 = vpop.eup %2814  ;;  %v1426_v40 = vadd.f32 %v1298_v6, %v3849_v52  ;;  %v1427_v60 = vadd.f32 %v1299_v30, %v3853_v36 }
 0x10c   : > { %v1045_v53 = vmul.f32 %v3898_v55, %v3898_v55  ;;  %v1050_v2 = vmul.f32 %v596_v27, %v596_v27  ;;  %v2817_v4 = vpop.eup %2816  ;;  %v1922_v30 = vadd.f32 1.0, %v2815_v35  ;;  %v3931_v51 = vadd.f32 %v1292_v11, %v3844_v45 }
 0x10d   : > { %v1172_v9 = vmul.f32 %v1044_v18, %v3894_v29  ;;  %v1051_v3 = vmul.f32 %v645_v43, %v645_v43  ;;  %v3917_v18 = vmul.f32 0.5, %v3849_v52  ;;  %v1674_v52 = vmul.f32 0.5, %v3814_v32 }
 0x10e   : > { %v1173_v13 = vmul.f32 %v1045_v53, %v3898_v55  ;;  %v1178_v17 = vmul.f32 %v1050_v2, %v596_v27  ;;  %5303 = vst [vmem:[#allocation95_spill] sm:$0xff] %v3931_v51  ;;  %v1554_v31 = vmul.f32 0.7978846, %v1426_v40  ;;  %v1930_v32 = vadd.f32 1.0, %v2817_v4 }
 0x10f   : > { %v1300_v63 = vmul.f32 0.044715, %v1172_v9  ;;  %v1179_v34 = vmul.f32 %v1051_v3, %v645_v43  ;;  %v3924_v9 = vpop.eup %2818  ;;  %v3944_v36 = vadd.f32 %v1293_v44, %v3861_v8  ;;  %v3952_v40 = vmul.f32 %v1922_v30, %v1666_v61 }
 0x110   : > { %v1301_v19 = vmul.f32 0.044715, %v1173_v13  ;;  %v693_v49 = vpop.f32.mrf.mxu2  ;;  %v1306_v3 = vmul.f32 0.044715, %v1178_v17  ;;  %v3934_v24 = vpop.eup %2820  ;;  %v3958_v44 = vmul.f32 0.5, %v596_v27  ;;  %2824 = vtanh.f32 %v1554_v31 }
 0x111   : > { %v1428_v23 = vadd.f32 %v1300_v63, %v3894_v29  ;;  %v3922_v6 = vadd.f32 %v693_v49, %v3374_v16  ;;  %v742_v53 = vpop.f32.mrf.mxu3  ;;  %v1307_v2 = vmul.f32 0.044715, %v1179_v34  ;;  %v598_v54 = vpop.f32.mrf.mxu0  ;;  %v1555_v63 = vmul.f32 0.7978846, %v1427_v60  ;;  %5304 = vst [vmem:[#allocation96_spill] sm:$0xff] %v3934_v24 }
 0x112   : > { %v647_v13 = vpop.f32.mrf.mxu1  ;;  %v1429_v49 = vadd.f32 %v1301_v19, %v3898_v55  ;;  %v3937_v35 = vadd.f32 %v742_v53, %v3374_v16  ;;  %v599_v34 = vadd.f32 %v598_v54, %v3325_v59  ;;  %5305 = vst [vmem:[#allocation97_spill] sm:$0xff] %v3944_v36  ;;  %v3954_v60 = vpop.eup %2822  ;;  %v1434_v53 = vadd.f32 %v1306_v3, %v596_v27 }
 0x113   : > { %v648_v17 = vadd.f32 %v647_v13, %v3325_v59  ;;  %v1556_v11 = vmul.f32 0.7978846, %v1428_v23  ;;  %v1052_v19 = vmul.f32 %v3922_v6, %v3922_v6  ;;  %5306 = vst [vmem:[#allocation98_spill] sm:$0xff] %v3954_v60  ;;  %v1435_v54 = vadd.f32 %v1307_v2, %v645_v43 }
 0x114   : > { %2689 = vmatmul.msk.bf16.gmra.mxu0 %vm529_vm0, %v3336_v62  ;;  %2697 = vmatmul.msk.bf16.gmra.mxu1 %vm529_vm0, %v3336_v62  ;;  %v1058_v4 = vmul.f32 %v599_v34, %v599_v34  ;;  %v1557_v23 = vmul.f32 0.7978846, %v1429_v49  ;;  %v3960_v16 = vmul.f32 0.5, %v645_v43  ;;  %2826 = vtanh.f32 %v1555_v63 }
 0x115   : > { %2705 = vmatmul.msk.bf16.gmra.mxu2 %vm529_vm0, %v3336_v62  ;;  %v1059_v13 = vmul.f32 %v648_v17, %v648_v17  ;;  %v1053_v61 = vmul.f32 %v3937_v35, %v3937_v35  ;;  %v3964_v7 = vmul.f32 %v1930_v32, %v1674_v52  ;;  %2828 = vtanh.f32 %v1556_v11 }
 0x116   : > { %2713 = vmatmul.msk.bf16.gmra.mxu3 %vm529_vm0, %v3336_v62  ;;  %v1186_v30 = vmul.f32 %v1058_v4, %v599_v34  ;;  %v1180_v3 = vmul.f32 %v1052_v19, %v3922_v6  ;;  %v1562_v46 = vmul.f32 0.7978846, %v1434_v53  ;;  %v1563_v47 = vmul.f32 0.7978846, %v1435_v54 }
 0x117   : > { %v1187_v2 = vmul.f32 %v1059_v13, %v648_v17  ;;  %2830 = vtanh.f32 %v1557_v23  ;;  %v3984_v53 = vmul.f32 0.5, %v599_v34  ;;  %v3994_v8 = vmul.f32 0.5, %v648_v17 }
 0x118   : > { %v696_v15 = vpop.f32.mrf.mxu2  ;;  %v1314_v31 = vmul.f32 0.044715, %v1186_v30  ;;  %v2825_v30 = vpop.eup %2824  ;;  %2832 = vtanh.f32 %v1562_v46 }
 0x119   : > { %v3968_v62 = vadd.f32 %v696_v15, %v3325_v59  ;;  %v745_v27 = vpop.f32.mrf.mxu3  ;;  %v600_v63 = vpop.f32.mrf.mxu0  ;;  %v1315_v4 = vmul.f32 0.044715, %v1187_v2  ;;  %v1181_v15 = vmul.f32 %v1053_v61, %v3937_v35  ;;  %2834 = vtanh.f32 %v1563_v47 }
 0x11a   : > { %v3971_v43 = vadd.f32 %v745_v27, %v3325_v59  ;;  %v649_v49 = vpop.f32.mrf.mxu1  ;;  %v3976_v32 = vadd.f32 %v600_v63, %v3351_v1  ;;  %v1442_v11 = vadd.f32 %v1314_v31, %v599_v34  ;;  %v2827_v27 = vpop.eup %2826  ;;  %v1308_v63 = vmul.f32 0.044715, %v1180_v3 }
 0x11b   : > { %v1060_v52 = vmul.f32 %v3968_v62, %v3968_v62  ;;  %v3982_v13 = vadd.f32 %v649_v49, %v3351_v1  ;;  %v1443_v54 = vadd.f32 %v1315_v4, %v648_v17  ;;  %v3992_v33 = vpop.eup %2828 }
 0x11c   : > { %v1061_v19 = vmul.f32 %v3971_v43, %v3971_v43  ;;  %v1066_v2 = vmul.f32 %v3976_v32, %v3976_v32  ;;  %v1570_v59 = vmul.f32 0.7978846, %v1442_v11  ;;  %v4008_v46 = vadd.f32 %v1308_v63, %v3922_v6 }
 0x11d   : > { %v1188_v23 = vmul.f32 %v1060_v52, %v3968_v62  ;;  %v1067_v31 = vmul.f32 %v3982_v13, %v3982_v13  ;;  %v1571_v49 = vmul.f32 0.7978846, %v1443_v54  ;;  %v1309_v52 = vmul.f32 0.044715, %v1181_v15  ;;  %v3998_v3 = vpop.eup %2830 }
 0x11e   : > { %v1189_v61 = vmul.f32 %v1061_v19, %v3971_v43  ;;  %v1194_v4 = vmul.f32 %v1066_v2, %v3976_v32  ;;  %2836 = vtanh.f32 %v1570_v59  ;;  %v4041_v36 = vmul.f32 0.5, %v3971_v43 }
 0x11f   : > { %v1316_v34 = vmul.f32 0.044715, %v1188_v23  ;;  %v1195_v48 = vmul.f32 %v1067_v31, %v3982_v13  ;;  %2838 = vtanh.f32 %v1571_v49  ;;  %v4021_v49 = vadd.f32 1.0, %v2827_v27 }
 0x120   : > { %v1317_v28 = vmul.f32 0.044715, %v1189_v61  ;;  %v698_v45 = vpop.f32.mrf.mxu2  ;;  %v1322_v19 = vmul.f32 0.044715, %v1194_v4  ;;  %v1938_v61 = vadd.f32 1.0, %v2825_v30  ;;  %v1706_v41 = vmul.f32 0.5, %v3976_v32 }
 0x121   : > { %v1444_v11 = vadd.f32 %v1316_v34, %v3968_v62  ;;  %v4002_v50 = vadd.f32 %v698_v45, %v3351_v1  ;;  %v747_v54 = vpop.f32.mrf.mxu3  ;;  %v1323_v17 = vmul.f32 0.044715, %v1195_v48  ;;  %v759_v15 = vpop.f32.mrf.mxu0  ;;  %v1707_v51 = vmul.f32 0.5, %v3982_v13 }
 0x122   : > { %v4005_v23 = vadd.f32 %v747_v54, %v3351_v1  ;;  %v808_v2 = vpop.f32.mrf.mxu1  ;;  %v1450_v31 = vadd.f32 %v1322_v19, %v3976_v32  ;;  %v1445_v47 = vadd.f32 %v1317_v28, %v3971_v43  ;;  %v4019_v63 = vadd.f32 %v759_v15, %v3376_v21  ;;  %v2833_v19 = vpop.eup %2832 }
 0x123   : > { %v1068_v45 = vmul.f32 %v4002_v50, %v4002_v50  ;;  %v1572_v34 = vmul.f32 0.7978846, %v1444_v11  ;;  %v1451_v59 = vadd.f32 %v1323_v17, %v3982_v13  ;;  %v4024_v54 = vadd.f32 %v1309_v52, %v3937_v35  ;;  %v2835_v1 = vpop.eup %2834 }
 0x124   : > { %v1069_v48 = vmul.f32 %v4005_v23, %v4005_v23  ;;  %v1578_v4 = vmul.f32 0.7978846, %v1450_v31  ;;  %5307 = vst [vmem:[#allocation99_spill] sm:$0xff] %v4019_v63  ;;  %v4028_v17 = vadd.f32 %v808_v2, %v3376_v21  ;;  %v4031_v31 = vmul.f32 0.5, %v3968_v62  ;;  %v2837_v60 = vpop.eup %2836 }
 0x125   : > { %v1196_v30 = vmul.f32 %v1068_v45, %v4002_v50  ;;  %v1579_v11 = vmul.f32 0.7978846, %v1451_v59  ;;  %v950_v15 = vmul.f32 %v4019_v63, %v4019_v63  ;;  %v4036_v27 = vmul.f32 %v1938_v61, %v3917_v18  ;;  %v2839_v56 = vpop.eup %2838 }
 0x126   : > { %v1197_v28 = vmul.f32 %v1069_v48, %v4005_v23  ;;  %5308 = vst [vmem:[#allocation100_spill] sm:$0xff] %v4028_v17  ;;  %2840 = vtanh.f32 %v1572_v34  ;;  %v1573_v52 = vmul.f32 0.7978846, %v1445_v47  ;;  %v951_v48 = vmul.f32 %v4028_v17, %v4028_v17 }
 0x127   : > { %v1324_v45 = vmul.f32 0.044715, %v1196_v30  ;;  %2842 = vtanh.f32 %v1578_v4  ;;  %v1078_v62 = vmul.f32 %v950_v15, %v4019_v63  ;;  %v1946_v24 = vadd.f32 1.0, %v2833_v19 }
 0x128   : > { %v1325_v59 = vmul.f32 0.044715, %v1197_v28  ;;  %v857_v2 = vpop.f32.mrf.mxu2  ;;  %2844 = vtanh.f32 %v1579_v11  ;;  %v1079_v61 = vmul.f32 %v951_v48, %v4028_v17  ;;  %v1954_v48 = vadd.f32 1.0, %v2837_v60 }
 0x129   : > { %v4045_v30 = vadd.f32 %v857_v2, %v3376_v21  ;;  %v906_v18 = vpop.f32.mrf.mxu3  ;;  %v761_v47 = vpop.f32.mrf.mxu0  ;;  %v1452_v25 = vadd.f32 %v1324_v45, %v4002_v50  ;;  %v1206_v43 = vmul.f32 0.044715, %v1078_v62  ;;  %2846 = vtanh.f32 %v1573_v52 }
 0x12a   : > { %v4049_v34 = vadd.f32 %v906_v18, %v3376_v21  ;;  %v810_v28 = vpop.f32.mrf.mxu1  ;;  %v4055_v15 = vadd.f32 %v761_v47, %v3414_v38  ;;  %v1453_v11 = vadd.f32 %v1325_v59, %v4005_v23  ;;  %v1207_v2 = vmul.f32 0.044715, %v1079_v61 }
 0x12b   : > { %5309 = vst [vmem:[#allocation101_spill] sm:$0xff] %v4045_v30  ;;  %v952_v4 = vmul.f32 %v4045_v30, %v4045_v30  ;;  %v1955_v18 = vadd.f32 1.0, %v2839_v56  ;;  %v1334_v19 = vadd.f32 %v1206_v43, %v4019_v63  ;;  %v1580_v61 = vmul.f32 0.7978846, %v1452_v25 }
 0x12c   : > { %5310 = vst [vmem:[#allocation102_spill] sm:$0xff] %v4049_v34  ;;  %v953_v21 = vmul.f32 %v4049_v34, %v4049_v34  ;;  %v2841_v62 = vpop.eup %2840  ;;  %v1335_v47 = vadd.f32 %v1207_v2, %v4028_v17  ;;  %v958_v26 = vmul.f32 %v4055_v15, %v4055_v15  ;;  %v4069_v56 = vmul.f32 %v1946_v24, %v3958_v44 }
 0x12d   : > { %5311 = vst [vmem:[#allocation103_spill] sm:$0xff] %v4055_v15  ;;  %v1080_v45 = vmul.f32 %v952_v4, %v4045_v30  ;;  %v2843_v59 = vpop.eup %2842  ;;  %v1947_v60 = vadd.f32 1.0, %v2835_v1  ;;  %v4072_v4 = vmul.f32 0.5, %v4002_v50  ;;  %v1581_v32 = vmul.f32 0.7978846, %v1453_v11 }
 0x12e   : > { %v1081_v52 = vmul.f32 %v953_v21, %v4049_v34  ;;  %v2845_v43 = vpop.eup %2844  ;;  %v4075_v13 = vadd.f32 %v810_v28, %v3414_v38  ;;  %v4078_v21 = vmul.f32 0.5, %v4005_v23  ;;  %v1462_v25 = vmul.f32 0.7978846, %v1334_v19 }
 0x12f   : > { %v1208_v63 = vmul.f32 0.044715, %v1080_v45  ;;  %v2082_v10 = vmul.f32 %v1954_v48, %v3984_v53  ;;  %v2083_v24 = vmul.f32 %v1955_v18, %v3994_v8  ;;  %v2847_v1 = vpop.eup %2846  ;;  %v4082_v44 = vadd.f32 1.0, %v2841_v62 }
 0x130   : > { %5312 = vst [vmem:[#allocation104_spill] sm:$0xff] %v4075_v13  ;;  %v859_v2 = vpop.f32.mrf.mxu2  ;;  %v1463_v50 = vmul.f32 0.7978846, %v1335_v47  ;;  %v1209_v39 = vmul.f32 0.044715, %v1081_v52  ;;  %v1962_v37 = vadd.f32 1.0, %v2843_v59  ;;  %2848 = vtanh.f32 %v1580_v61 }
 0x131   : > { %v908_v17 = vpop.f32.mrf.mxu3  ;;  %v764_v11 = vpop.f32.mrf.mxu0  ;;  %v1086_v28 = vmul.f32 %v958_v26, %v4055_v15  ;;  %v1963_v19 = vadd.f32 1.0, %v2845_v43  ;;  %2850 = vtanh.f32 %v1581_v32  ;;  %v1336_v53 = vadd.f32 %v1208_v63, %v4045_v30  ;;  %v5372_v30 = vld [vmem:[#allocation27_spill] sm:$0xff] }
 0x132   : > { %v813_v45 = vpop.f32.mrf.mxu1  ;;  %v4086_v23 = vadd.f32 %v764_v11, %v3380_v58  ;;  %v959_v8 = vmul.f32 %v4075_v13, %v4075_v13  ;;  %v4094_v18 = vadd.f32 1.0, %v2847_v1  ;;  %2852 = vtanh.f32 %v1462_v25 }
 0x133   : > { %v4092_v48 = vadd.f32 %v813_v45, %v3380_v58  ;;  %v4097_v62 = vadd.f32 %v859_v2, %v3414_v38  ;;  %2854 = vtanh.f32 %v1463_v50  ;;  %v1337_v47 = vadd.f32 %v1209_v39, %v4049_v34 }
 0x134   : > { %5313 = vst [vmem:[#allocation105_spill] sm:$0xff] %v4086_v23  ;;  %v966_v26 = vmul.f32 %v4086_v23, %v4086_v23  ;;  %v2090_v52 = vmul.f32 %v1962_v37, %v1706_v41  ;;  %v4104_v59 = vmul.f32 0.044715, %v1086_v28  ;;  %v4107_v61 = vadd.f32 %v908_v17, %v3414_v38 }
 0x135   : > { %5314 = vst [vmem:[#allocation106_spill] sm:$0xff] %v4092_v48  ;;  %v967_v63 = vmul.f32 %v4092_v48, %v4092_v48  ;;  %v2091_v32 = vmul.f32 %v1963_v19, %v1707_v51  ;;  %v1464_v2 = vmul.f32 0.7978846, %v1336_v53  ;;  %v1087_v25 = vmul.f32 %v959_v8, %v4075_v13 }
 0x136   : > { %5315 = vst [vmem:[#allocation107_spill] sm:$0xff] %v4097_v62  ;;  %v1094_v43 = vmul.f32 %v966_v26, %v4086_v23  ;;  %v2154_v50 = vpack.c.bf16 %v2090_v52, %v2082_v10  ;;  %v2849_v39 = vpop.eup %2848  ;;  %v960_v45 = vmul.f32 %v4097_v62, %v4097_v62  ;;  %v1465_v26 = vmul.f32 0.7978846, %v1337_v47 }
 0x137   : > { %5316 = vst [vmem:[#allocation108_spill] sm:$0xff] %v4107_v61  ;;  %v1095_v1 = vmul.f32 %v967_v63, %v4092_v48  ;;  %v2155_v37 = vpack.c.bf16 %v2091_v32, %v2083_v24  ;;  %v2851_v17 = vpop.eup %2850  ;;  %v2146_v10 = vpack.c.bf16 %v4069_v56, %v4036_v27  ;;  %v2067_v52 = vmul.f32 %v4021_v49, %v3927_v5 }
 0x138   : > { %v862_v11 = vpop.f32.mrf.mxu2  ;;  %v1222_v41 = vmul.f32 0.044715, %v1094_v43  ;;  %2226 = vmatpush.bf16.msra.mxu0 %v2154_v50  ;;  %v4122_v63 = vpop.eup %2852  ;;  %v2075_v47 = vmul.f32 %v1947_v60, %v3960_v16  ;;  %v961_v50 = vmul.f32 %v4107_v61, %v4107_v61  ;;  %2856 = vtanh.f32 %v1464_v2 }
 0x139   : > { %v4115_v28 = vadd.f32 %v862_v11, %v3380_v58  ;;  %v911_v38 = vpop.f32.mrf.mxu3  ;;  %v1223_v51 = vmul.f32 0.044715, %v1095_v1  ;;  %v766_v53 = vpop.f32.mrf.mxu0  ;;  %5319 = vst [vmem:[#allocation111_spill] sm:$0xff] %v4122_v63  ;;  %2255 = vmatpush.bf16.msra.mxu1 %v2155_v37  ;;  %v1964_v1 = vadd.f32 1.0, %v2849_v39  ;;  %v1215_v60 = vmul.f32 0.044715, %v1087_v25 }
 0x13a   : > { %v4118_v19 = vadd.f32 %v911_v38, %v3380_v58  ;;  %v815_v8 = vpop.f32.mrf.mxu1  ;;  %v4130_v43 = vadd.f32 %v766_v53, %v3478_v20  ;;  %v4132_v58 = vpop.eup %2854  ;;  %v1350_v27 = vadd.f32 %v1222_v41, %v4086_v23  ;;  %v2147_v49 = vpack.c.bf16 %v2075_v47, %v2067_v52 }
 0x13b   : > { %5317 = vst [vmem:[#allocation109_spill] sm:$0xff] %v4115_v28  ;;  %v968_v24 = vmul.f32 %v4115_v28, %v4115_v28  ;;  %v4138_v32 = vadd.f32 %v815_v8, %v3478_v20  ;;  %v1351_v5 = vadd.f32 %v1223_v51, %v4092_v48  ;;  %v2084_v38 = vmul.f32 %v4082_v44, %v4031_v31 }
 0x13c   : > { %5318 = vst [vmem:[#allocation110_spill] sm:$0xff] %v4118_v19  ;;  %v969_v56 = vmul.f32 %v4118_v19, %v4118_v19  ;;  %2227 = vmatpush.bf16.msra.mxu0 %v2146_v10  ;;  %v974_v41 = vmul.f32 %v4130_v43, %v4130_v43  ;;  %v2092_v51 = vmul.f32 %v1964_v1, %v4072_v4  ;;  %v1478_v2 = vmul.f32 0.7978846, %v1350_v27 }
 0x13d   : > { %5320 = vst [vmem:[#allocation112_spill] sm:$0xff] %v4130_v43  ;;  %v1096_v16 = vmul.f32 %v968_v24, %v4115_v28  ;;  %2256 = vmatpush.bf16.msra.mxu1 %v2147_v49  ;;  %v975_v39 = vmul.f32 %v4138_v32, %v4138_v32  ;;  %v1088_v53 = vmul.f32 %v960_v45, %v4097_v62  ;;  %v1965_v8 = vadd.f32 1.0, %v2851_v17 }
 0x13e   : > { %5321 = vst [vmem:[#allocation113_spill] sm:$0xff] %v4132_v58  ;;  %v1097_v11 = vmul.f32 %v969_v56, %v4118_v19  ;;  %2858 = vtanh.f32 %v1465_v26  ;;  %v1479_v10 = vmul.f32 0.7978846, %v1351_v5  ;;  %v2156_v52 = vpack.c.bf16 %v2092_v51, %v2084_v38  ;;  %v4163_v26 = vpop.eup %2856 }
 0x13f   : > { %5322 = vst [vmem:[#allocation114_spill] sm:$0xff] %v4138_v32  ;;  %v1224_v37 = vmul.f32 0.044715, %v1096_v16  ;;  %v1089_v47 = vmul.f32 %v961_v50, %v4107_v61  ;;  %v2085_v56 = vmul.f32 %v4094_v18, %v4041_v36  ;;  %v2093_v16 = vmul.f32 %v1965_v8, %v4078_v21  ;;  %v5436_v61 = vld [vmem:[#allocation32_spill] sm:$0xff] }
 0x140   : > { %v1225_v25 = vmul.f32 0.044715, %v1097_v11  ;;  %v2138_v31 = vpack.c.bf16 %v3964_v7, %v3952_v40  ;;  %v1102_v44 = vmul.f32 %v974_v41, %v4130_v43  ;;  %v1103_v45 = vmul.f32 %v975_v39, %v4138_v32  ;;  %2284 = vmatpush.bf16.msra.mxu2 %v2156_v52  ;;  %5323 = vst [vmem:[#allocation115_spill] sm:$0xff] %v4163_v26 }
 0x141   : > { %v1352_v24 = vadd.f32 %v1224_v37, %v4115_v28  ;;  %v1547_v17 = vmul.f32 0.7978846, %v3907_v42  ;;  %v4167_v27 = vadd.f32 %v4104_v59, %v4055_v15  ;;  %2860 = vtanh.f32 %v1478_v2  ;;  %v864_v42 = vpop.f32.mrf.mxu2  ;;  %v913_v41 = vpop.f32.mrf.mxu3  ;;  %v5415_v15 = vld [vmem:[#allocation39_spill] sm:$0xff] }
 0x142   : > { %v1353_v36 = vadd.f32 %v1225_v25, %v4118_v19  ;;  %v2157_v21 = vpack.c.bf16 %v2093_v16, %v2085_v56  ;;  %2228 = vmatpush.bf16.msra.mxu0 %v2138_v31  ;;  %v4171_v7 = vadd.f32 %v1215_v60, %v4075_v13  ;;  %v4173_v40 = vmul.f32 0.044715, %v1088_v53  ;;  %v818_v8 = vpop.f32.mrf.mxu1  ;;  %v5335_v31 = vld [vmem:[#allocation17_spill] sm:$0xff]  ;;  %v5412_v13 = vld [vmem:[#allocation50_spill] sm:$0xff] }
 0x143   : > { %v1480_v4 = vmul.f32 0.7978846, %v1352_v24  ;;  %5324 = vst [vmem:[#allocation116_spill] sm:$0xff] %v4167_v27  ;;  %2862 = vtanh.f32 %v1479_v10  ;;  %v1564_v18 = vmul.f32 0.7978846, %v4008_v46  ;;  %v1923_v59 = vadd.f32 1.0, %v3924_v9 }
 0x144   : > { %5325 = vst [vmem:[#allocation117_spill] sm:$0xff] %v4171_v7  ;;  %v4176_v1 = vmul.f32 0.044715, %v1089_v47  ;;  %2313 = vmatpush.bf16.msra.mxu3 %v2157_v21  ;;  %v1565_v50 = vmul.f32 0.7978846, %v4024_v54  ;;  %v4180_v5 = vpop.eup %2858  ;;  %v1667_v11 = vmul.f32 0.5, %v3752_v14  ;;  %v4189_v39 = vadd.f32 %v864_v42, %v3478_v20 }
 0x145   : > { %5326 = vst [vmem:[#allocation118_spill] sm:$0xff] %v4173_v40  ;;  %2864 = vtanh.f32 %v1480_v4  ;;  %v4182_v49 = vmul.f32 0.044715, %v1102_v44  ;;  %v4184_v60 = vmul.f32 0.044715, %v1103_v45  ;;  %v1940_v37 = vadd.f32 1.0, %v3992_v33  ;;  %v769_v33 = vpop.f32.mrf.mxu0 }
 0x146   : > { %5327 = vst [vmem:[#allocation119_spill] sm:$0xff] %v4176_v1  ;;  %2866 = vtanh.f32 %v1547_v17  ;;  %v1481_v46 = vmul.f32 0.7978846, %v1353_v36  ;;  %v1675_v9 = vmul.f32 0.5, %v3819_v57  ;;  %v1941_v54 = vadd.f32 1.0, %v3998_v3  ;;  %v5338_v45 = vld [vmem:[#allocation71_spill] sm:$0xff] }
 0x147   : > { %5328 = vst [vmem:[#allocation120_spill] sm:$0xff] %v4180_v5  ;;  %2868 = vtanh.f32 %v1564_v18  ;;  %v1530_v38 = vmul.f32 0.7978846, %v3841_v22  ;;  %v4194_v51 = vpop.eup %2860  ;;  %v2051_v53 = vmul.f32 %v1923_v59, %v1667_v11  ;;  %v1684_v14 = vmul.f32 0.5, %v3894_v29  ;;  %v5339_v36 = vld [vmem:[#allocation61_spill] sm:$0xff] }
 0x148   : > { %5329 = vst [vmem:[#allocation121_spill] sm:$0xff] %v4189_v39  ;;  %2870 = vtanh.f32 %v1565_v50  ;;  %v1692_v2 = vmul.f32 0.5, %v3922_v6  ;;  %v4199_v25 = vadd.f32 %v913_v41, %v3478_v20  ;;  %v1685_v57 = vmul.f32 0.5, %v3898_v55  ;;  %v5334_v6 = vld [vmem:[#allocation88_spill] sm:$0xff]  ;;  %v5340_v50 = vld [vmem:[#allocation95_spill] sm:$0xff]  ;;  %v5447_v7 = vld [vmem:[#allocation45_spill] sm:$0xff] }
 0x149   : > { %5330 = vst [vmem:[#allocation122_spill] sm:$0xff] %v4194_v51  ;;  %v4201_v10 = vpop.eup %2862  ;;  %v1693_v3 = vmul.f32 0.5, %v3937_v35  ;;  %2872 = vtanh.f32 %v1530_v38  ;;  %v1531_v22 = vmul.f32 0.7978846, %v3872_v12  ;;  %v2068_v52 = vmul.f32 %v1940_v37, %v1684_v14 }
 0x14a   : > { %5331 = vst [vmem:[#allocation123_spill] sm:$0xff] %v4199_v25  ;;  %v976_v29 = vmul.f32 %v4189_v39, %v4189_v39  ;;  %v1650_v20 = vmul.f32 0.5, %v3667_v0  ;;  %v1906_v47 = vadd.f32 1.0, %v5334_v6  ;;  %v2069_v16 = vmul.f32 %v1941_v54, %v1685_v57 }
 0x14b   : > { %5332 = vst [vmem:[#allocation124_spill] sm:$0xff] %v4201_v10  ;;  %v4206_v24 = vpop.eup %2864  ;;  %2874 = vtanh.f32 %v1531_v22  ;;  %v4213_v55 = vadd.f32 %v769_v33, %v5335_v31  ;;  %v4216_v35 = vadd.f32 %v818_v8, %v5335_v31  ;;  %v977_v44 = vmul.f32 %v4199_v25, %v4199_v25  ;;  %v5341_v8 = vld [vmem:[#allocation74_spill] sm:$0xff] }
 0x14c   : > { %5333 = vst [vmem:[#allocation125_spill] sm:$0xff] %v4206_v24  ;;  %v2867_v56 = vpop.eup %2866  ;;  %v1658_v17 = vmul.f32 0.5, %v5338_v45  ;;  %v1651_v0 = vmul.f32 0.5, %v5339_v36  ;;  %v1548_v11 = vmul.f32 0.7978846, %v5340_v50  ;;  %v1104_v54 = vmul.f32 %v976_v29, %v4189_v39  ;;  %v5342_v36 = vld [vmem:[#allocation90_spill] sm:$0xff] }
 0x14d   : > { %5336 = vst [vmem:[#allocation88_spill] sm:$0xff] %v4213_v55  ;;  %v2869_v12 = vpop.eup %2868  ;;  %v1931_v4 = vadd.f32 1.0, %v2867_v56  ;;  %v982_v42 = vmul.f32 %v4213_v55, %v4213_v55  ;;  %v983_v59 = vmul.f32 %v4216_v35, %v4216_v35  ;;  %v2034_v38 = vmul.f32 %v1906_v47, %v1650_v20 }
 0x14e   : > { %5337 = vst [vmem:[#allocation17_spill] sm:$0xff] %v4216_v35  ;;  %v2871_v21 = vpop.eup %2870  ;;  %v1948_v18 = vadd.f32 1.0, %v2869_v12  ;;  %v1659_v57 = vmul.f32 0.5, %v5341_v8  ;;  %v1907_v34 = vadd.f32 1.0, %v5342_v36  ;;  %2876 = vtanh.f32 %v1548_v11  ;;  %v5352_v36 = vld [vmem:[#allocation89_spill] sm:$0xff] }
 0x14f   : > { %v2059_v41 = vmul.f32 %v1931_v4, %v1675_v9  ;;  %v1949_v37 = vadd.f32 1.0, %v2871_v21  ;;  %v2873_v14 = vpop.eup %2872  ;;  %v1110_v22 = vmul.f32 %v982_v42, %v4213_v55  ;;  %v1111_v6 = vmul.f32 %v983_v59, %v4216_v35 }
 0x150   : > { %v2076_v33 = vmul.f32 %v1948_v18, %v1692_v2  ;;  %v1914_v45 = vadd.f32 1.0, %v2873_v14  ;;  %v1105_v2 = vmul.f32 %v977_v44, %v4199_v25  ;;  %2878 = vtanh.f32 %v1481_v46  ;;  %v5345_v18 = vld [vmem:[#allocation97_spill] sm:$0xff]  ;;  %v5346_v46 = vld [vmem:[#allocation82_spill] sm:$0xff] }
 0x151   : > { %v2139_v56 = vpack.c.bf16 %v2059_v41, %v2051_v53  ;;  %v2077_v12 = vmul.f32 %v1949_v37, %v1693_v3  ;;  %v2875_v5 = vpop.eup %2874  ;;  %v1238_v9 = vmul.f32 0.044715, %v1110_v22  ;;  %v1239_v4 = vmul.f32 0.044715, %v1111_v6  ;;  %v5344_v53 = vld [vmem:[#allocation96_spill] sm:$0xff]  ;;  %v5347_v37 = vld [vmem:[#allocation98_spill] sm:$0xff] }
 0x152   : > { %v2148_v50 = vpack.c.bf16 %v2076_v33, %v2068_v52  ;;  %v2042_v20 = vmul.f32 %v1914_v45, %v1658_v17  ;;  %v1915_v47 = vadd.f32 1.0, %v2875_v5  ;;  %v4235_v21 = vadd.f32 %v4182_v49, %v4130_v43  ;;  %v5348_v33 = vld [vmem:[#allocation73_spill] sm:$0xff]  ;;  %v5350_v22 = vld [vmem:[#allocation83_spill] sm:$0xff]  ;;  %v5351_v6 = vld [vmem:[#allocation76_spill] sm:$0xff] }
 0x153   : > { %2257 = vmatpush.bf16.msra.mxu1 %v2139_v56  ;;  %v2149_v29 = vpack.c.bf16 %v2077_v12, %v2069_v16  ;;  %v1924_v3 = vadd.f32 1.0, %v5344_v53  ;;  %v1549_v42 = vmul.f32 0.7978846, %v5345_v18  ;;  %v2035_v59 = vmul.f32 %v1907_v34, %v1651_v0  ;;  %v5349_v34 = vld [vmem:[#allocation87_spill] sm:$0xff] }
 0x154   : > { %5343 = vst [vmem:[#allocation71_spill] sm:$0xff] %v4235_v21  ;;  %2285 = vmatpush.bf16.msra.mxu2 %v2148_v50  ;;  %v2130_v52 = vpack.c.bf16 %v2042_v20, %v2034_v38  ;;  %v2043_v11 = vmul.f32 %v1915_v47, %v1659_v57  ;;  %v1366_v16 = vadd.f32 %v1238_v9, %v4213_v55  ;;  %v4240_v41 = vmul.f32 0.044715, %v1104_v54  ;;  %v2877_v38 = vpop.eup %2876  ;;  %v5353_v9 = vld [vmem:[#allocation78_spill] sm:$0xff]  ;;  %v5355_v20 = vld [vmem:[#allocation43_spill] sm:$0xff] }
 0x155   : > { %2314 = vmatpush.bf16.msra.mxu3 %v2149_v29  ;;  %v1367_v5 = vadd.f32 %v1239_v4, %v4216_v35  ;;  %v1668_v44 = vmul.f32 0.5, %v5346_v46  ;;  %2880 = vtanh.f32 %v1549_v42  ;;  %v4244_v49 = vmul.f32 0.044715, %v1105_v2  ;;  %v5356_v53 = vld [vmem:[#allocation91_spill] sm:$0xff]  ;;  %v5358_v46 = vld [vmem:[#allocation44_spill] sm:$0xff] }
 0x156   : > { %2229 = vmatpush.bf16.msra.mxu0 %v2130_v52  ;;  %v2131_v17 = vpack.c.bf16 %v2043_v11, %v2035_v59  ;;  %v1925_v14 = vadd.f32 1.0, %v5347_v37  ;;  %v1514_v8 = vmul.f32 0.7978846, %v5348_v33  ;;  %v1676_v0 = vmul.f32 0.5, %v5349_v34  ;;  %v4255_v29 = vpop.eup %2878  ;;  %v5357_v52 = vld [vmem:[#allocation57_spill] sm:$0xff]  ;;  %v867_v11 = vpop.f32.mrf.mxu2 }
 0x157   : > { %v2052_v57 = vmul.f32 %v1924_v3, %v1668_v44  ;;  %v1669_v54 = vmul.f32 0.5, %v5350_v22  ;;  %v1515_v56 = vmul.f32 0.7978846, %v5351_v6  ;;  %v4251_v12 = vmul.f32 0.7978846, %v1366_v16  ;;  %5354 = vst [vmem:[#allocation61_spill] sm:$0xff] %v4255_v29 }
 0x158   : > { %2258 = vmatpush.bf16.msra.mxu1 %v2131_v17  ;;  %v1932_v45 = vadd.f32 1.0, %v2877_v38  ;;  %v1677_v50 = vmul.f32 0.5, %v5352_v36  ;;  %v1890_v4 = vadd.f32 1.0, %v5353_v9  ;;  %v4257_v2 = vmul.f32 0.7978846, %v1367_v5  ;;  %v5359_v17 = vld [vmem:[#allocation80_spill] sm:$0xff]  ;;  %v916_v38 = vpop.f32.mrf.mxu3 }
 0x159   : > { %v1634_v47 = vmul.f32 0.5, %v5355_v20  ;;  %2882 = vtanh.f32 %v1514_v8  ;;  %v1532_v3 = vmul.f32 0.7978846, %v5356_v53  ;;  %v2053_v42 = vmul.f32 %v1925_v14, %v1669_v54  ;;  %v5360_v33 = vld [vmem:[#allocation93_spill] sm:$0xff]  ;;  %v5361_v6 = vld [vmem:[#allocation59_spill] sm:$0xff]  ;;  %v5363_v54 = vld [vmem:[#allocation92_spill] sm:$0xff] }
 0x15a   : > { %v2060_v18 = vmul.f32 %v1932_v45, %v1676_v0  ;;  %v1642_v59 = vmul.f32 0.5, %v5357_v52  ;;  %2884 = vtanh.f32 %v1515_v56  ;;  %v1635_v44 = vmul.f32 0.5, %v5358_v46  ;;  %v5362_v0 = vld [vmem:[#allocation64_spill] sm:$0xff]  ;;  %v5365_v20 = vld [vmem:[#allocation77_spill] sm:$0xff] }
 0x15b   : > { %v2881_v16 = vpop.eup %2880  ;;  %v1891_v37 = vadd.f32 1.0, %v5359_v17  ;;  %2886 = vtanh.f32 %v1532_v3  ;;  %v1533_v5 = vmul.f32 0.7978846, %v5360_v33  ;;  %v2018_v8 = vmul.f32 %v1890_v4, %v1634_v47  ;;  %v5368_v52 = vld [vmem:[#allocation68_spill] sm:$0xff]  ;;  %v5369_v46 = vld [vmem:[#allocation81_spill] sm:$0xff] }
 0x15c   : > { %v2140_v34 = vpack.c.bf16 %v2060_v18, %v2052_v57  ;;  %v1933_v22 = vadd.f32 1.0, %v2881_v16  ;;  %v1643_v36 = vmul.f32 0.5, %v5361_v6  ;;  %v1652_v14 = vmul.f32 0.5, %v5362_v0  ;;  %v5367_v57 = vld [vmem:[#allocation62_spill] sm:$0xff]  ;;  %v5407_v29 = vld [vmem:[#allocation29_spill] sm:$0xff] }
 0x15d   : > { %v1908_v45 = vadd.f32 1.0, %v5363_v54  ;;  %2888 = vtanh.f32 %v1533_v5  ;;  %v4269_v56 = vadd.f32 %v867_v11, %v5335_v31  ;;  %v1660_v53 = vmul.f32 0.5, %v5365_v20  ;;  %v5371_v20 = vld [vmem:[#allocation94_spill] sm:$0xff] }
 0x15e   : > { %2286 = vmatpush.bf16.msra.mxu2 %v2140_v34  ;;  %v2061_v9 = vmul.f32 %v1933_v22, %v1677_v50  ;;  %v4273_v3 = vadd.f32 %v916_v38, %v5335_v31  ;;  %v1498_v18 = vmul.f32 0.7978846, %v5367_v57  ;;  %v2019_v47 = vmul.f32 %v1891_v37, %v1635_v44  ;;  %v5370_v44 = vld [vmem:[#allocation63_spill] sm:$0xff] }
 0x15f   : > { %5364 = vst [vmem:[#allocation95_spill] sm:$0xff] %v4269_v56  ;;  %v2883_v4 = vpop.eup %2882  ;;  %v1653_v16 = vmul.f32 0.5, %v5368_v52  ;;  %v1661_v17 = vmul.f32 0.5, %v5369_v46  ;;  %v984_v33 = vmul.f32 %v4269_v56, %v4269_v56  ;;  %v2036_v22 = vmul.f32 %v1908_v45, %v1652_v14 }
 0x160   : > { %5366 = vst [vmem:[#allocation74_spill] sm:$0xff] %v4273_v3  ;;  %v2885_v11 = vpop.eup %2884  ;;  %v2141_v5 = vpack.c.bf16 %v2061_v9, %v2053_v42  ;;  %v1898_v34 = vadd.f32 1.0, %v2883_v4  ;;  %v985_v50 = vmul.f32 %v4273_v3, %v4273_v3  ;;  %2890 = vtanh.f32 %v1498_v18  ;;  %v771_v42 = vpop.f32.mrf.mxu0 }
 0x161   : > { %v2887_v31 = vpop.eup %2886  ;;  %v1899_v38 = vadd.f32 1.0, %v2885_v11  ;;  %v1112_v6 = vmul.f32 %v984_v33, %v4269_v56  ;;  %v1499_v37 = vmul.f32 0.7978846, %v5370_v44  ;;  %v1909_v57 = vadd.f32 1.0, %v5371_v20  ;;  %v820_v11 = vpop.f32.mrf.mxu1 }
 0x162   : > { %2315 = vmatpush.bf16.msra.mxu3 %v2141_v5  ;;  %v2026_v0 = vmul.f32 %v1898_v34, %v1642_v59  ;;  %v1916_v54 = vadd.f32 1.0, %v2887_v31  ;;  %v1113_v52 = vmul.f32 %v985_v50, %v4273_v3  ;;  %v1618_v18 = vmul.f32 0.5, %v5372_v30  ;;  %v5373_v5 = vld [vmem:[#allocation65_spill] sm:$0xff] }
 0x163   : > { %v2889_v9 = vpop.eup %2888  ;;  %v2027_v4 = vmul.f32 %v1899_v38, %v1643_v36  ;;  %v1240_v46 = vmul.f32 0.044715, %v1112_v6  ;;  %2892 = vtanh.f32 %v1499_v37  ;;  %v1874_v34 = vadd.f32 1.0, %v5373_v5  ;;  %v5374_v31 = vld [vmem:[#allocation9_spill] sm:$0xff] }
 0x164   : > { %v2122_v14 = vpack.c.bf16 %v2026_v0, %v2018_v8  ;;  %v2044_v45 = vmul.f32 %v1916_v54, %v1660_v53  ;;  %v1917_v33 = vadd.f32 1.0, %v2889_v9  ;;  %v1241_v26 = vmul.f32 0.044715, %v1113_v52  ;;  %v5377_v53 = vld [vmem:[#allocation41_spill] sm:$0xff]  ;;  %v5378_v52 = vld [vmem:[#allocation67_spill] sm:$0xff] }
 0x165   : > { %v2123_v44 = vpack.c.bf16 %v2027_v4, %v2019_v47  ;;  %v1368_v59 = vadd.f32 %v1240_v46, %v4269_v56  ;;  %v4290_v20 = vadd.f32 %v771_v42, %v5374_v31  ;;  %v2037_v38 = vmul.f32 %v1909_v57, %v1653_v16 }
 0x166   : > { %v2891_v50 = vpop.eup %2890  ;;  %2230 = vmatpush.bf16.msra.mxu0 %v2122_v14  ;;  %v2132_v36 = vpack.c.bf16 %v2044_v45, %v2036_v22  ;;  %v2045_v6 = vmul.f32 %v1917_v33, %v1661_v17  ;;  %v4293_v30 = vadd.f32 %v820_v11, %v5374_v31  ;;  %v1369_v8 = vadd.f32 %v1241_v26, %v4273_v3  ;;  %v5379_v17 = vld [vmem:[#allocation79_spill] sm:$0xff]  ;;  %v5380_v11 = vld [vmem:[#allocation28_spill] sm:$0xff]  ;;  %v5381_v45 = vld [vmem:[#allocation42_spill] sm:$0xff] }
 0x167   : > { %5375 = vst [vmem:[#allocation90_spill] sm:$0xff] %v4290_v20  ;;  %2259 = vmatpush.bf16.msra.mxu1 %v2123_v44  ;;  %v1626_v47 = vmul.f32 0.5, %v5377_v53  ;;  %v1882_v37 = vadd.f32 1.0, %v2891_v50  ;;  %v990_v0 = vmul.f32 %v4290_v20, %v4290_v20  ;;  %v1875_v42 = vadd.f32 1.0, %v5378_v52  ;;  %v5384_v53 = vld [vmem:[#allocation84_spill] sm:$0xff]  ;;  %v4320_v52 = vpop.f32.mrf.mxu3  ;;  %v5435_v3 = vld [vmem:[#allocation25_spill] sm:$0xff] }
 0x168   : > { %5376 = vst [vmem:[#allocation96_spill] sm:$0xff] %v4293_v30  ;;  %2287 = vmatpush.bf16.msra.mxu2 %v2132_v36  ;;  %v2133_v54 = vpack.c.bf16 %v2045_v6, %v2037_v38  ;;  %v991_v16 = vmul.f32 %v4293_v30, %v4293_v30  ;;  %v1516_v22 = vmul.f32 0.7978846, %v5379_v17  ;;  %v1496_v9 = vmul.f32 0.7978846, %v1368_v59  ;;  %v5388_v17 = vld [vmem:[#allocation85_spill] sm:$0xff] }
 0x169   : > { %v2893_v57 = vpop.eup %2892  ;;  %v2002_v4 = vmul.f32 %v1874_v34, %v1618_v18  ;;  %v2010_v46 = vmul.f32 %v1882_v37, %v1626_v47  ;;  %v1118_v26 = vmul.f32 %v990_v0, %v4290_v20  ;;  %2894 = vtanh.f32 %v4251_v12  ;;  %v5382_v34 = vld [vmem:[#allocation86_spill] sm:$0xff] }
 0x16a   : > { %2316 = vmatpush.bf16.msra.mxu3 %v2133_v54  ;;  %v1619_v14 = vmul.f32 0.5, %v5380_v11  ;;  %v1627_v33 = vmul.f32 0.5, %v5381_v45  ;;  %v1883_v44 = vadd.f32 1.0, %v2893_v57  ;;  %v1497_v5 = vmul.f32 0.7978846, %v1369_v8  ;;  %v869_v54 = vpop.f32.mrf.mxu2 }
 0x16b   : > { %v2114_v50 = vpack.c.bf16 %v2010_v46, %v2002_v4  ;;  %v1119_v36 = vmul.f32 %v991_v16, %v4293_v30  ;;  %2896 = vtanh.f32 %v1516_v22  ;;  %v1517_v38 = vmul.f32 0.7978846, %v5382_v34  ;;  %v5392_v46 = vld [vmem:[#allocation53_spill] sm:$0xff]  ;;  %v5397_v34 = vld [vmem:[#allocation66_spill] sm:$0xff] }
 0x16c   : > { %2898 = vtanh.f32 %v4257_v2  ;;  %v2003_v59 = vmul.f32 %v1875_v42, %v1619_v14  ;;  %v2011_v18 = vmul.f32 %v1883_v44, %v1627_v33  ;;  %v4312_v12 = vadd.f32 %v4184_v60, %v4138_v32  ;;  %v5386_v2 = vld [vmem:[#allocation46_spill] sm:$0xff]  ;;  %v5387_v60 = vld [vmem:[#allocation47_spill] sm:$0xff]  ;;  %v5394_v33 = vld [vmem:[#allocation49_spill] sm:$0xff] }
 0x16d   : > { %2900 = vtanh.f32 %v1496_v9  ;;  %2231 = vmatpush.bf16.msra.mxu0 %v2114_v50  ;;  %v1246_v6 = vmul.f32 0.044715, %v1118_v26  ;;  %v1892_v47 = vadd.f32 1.0, %v5384_v53  ;;  %v4317_v8 = vadd.f32 %v4240_v41, %v4189_v39  ;;  %v5391_v41 = vld [vmem:[#allocation60_spill] sm:$0xff] }
 0x16e   : > { %5383 = vst [vmem:[#allocation97_spill] sm:$0xff] %v4312_v12  ;;  %v2115_v37 = vpack.c.bf16 %v2011_v18, %v2003_v59  ;;  %2902 = vtanh.f32 %v1517_v38  ;;  %v1482_v0 = vmul.f32 0.7978846, %v5386_v2  ;;  %v1247_v42 = vmul.f32 0.044715, %v1119_v36  ;;  %v4337_v36 = vpop.f32.mrf.mxu0  ;;  %v4339_v59 = vpop.f32.mrf.mxu1  ;;  %v5398_v53 = vld [vmem:[#allocation48_spill] sm:$0xff] }
 0x16f   : > { %5385 = vst [vmem:[#allocation82_spill] sm:$0xff] %v4317_v8  ;;  %2904 = vtanh.f32 %v1497_v5  ;;  %v1636_v16 = vmul.f32 0.5, %v5387_v60  ;;  %v1893_v22 = vadd.f32 1.0, %v5388_v17  ;;  %v4324_v57 = vpop.eup %2894  ;;  %v4328_v9 = vadd.f32 %v4244_v49, %v4199_v25  ;;  %v5395_v5 = vld [vmem:[#allocation69_spill] sm:$0xff] }
 0x170   : > { %5389 = vst [vmem:[#allocation98_spill] sm:$0xff] %v4324_v57  ;;  %2260 = vmatpush.bf16.msra.mxu1 %v2115_v37  ;;  %v1644_v4 = vmul.f32 0.5, %v5391_v41  ;;  %2906 = vtanh.f32 %v1482_v0  ;;  %v1483_v26 = vmul.f32 0.7978846, %v5392_v46  ;;  %v4333_v14 = vadd.f32 %v1246_v6, %v4290_v20  ;;  %v5401_v0 = vld [vmem:[#allocation70_spill] sm:$0xff] }
 0x171   : > { %5390 = vst [vmem:[#allocation73_spill] sm:$0xff] %v4328_v9  ;;  %v2897_v11 = vpop.eup %2896  ;;  %v2020_v45 = vmul.f32 %v1892_v47, %v1636_v16  ;;  %v1637_v44 = vmul.f32 0.5, %v5394_v33  ;;  %v1500_v50 = vmul.f32 0.7978846, %v5395_v5  ;;  %v1645_v38 = vmul.f32 0.5, %v5397_v34  ;;  %v5402_v41 = vld [vmem:[#allocation18_spill] sm:$0xff] }
 0x172   : > { %5393 = vst [vmem:[#allocation87_spill] sm:$0xff] %v4333_v14  ;;  %v4341_v49 = vpop.eup %2898  ;;  %v1900_v18 = vadd.f32 1.0, %v2897_v11  ;;  %v1858_v37 = vadd.f32 1.0, %v5398_v53  ;;  %2908 = vtanh.f32 %v1483_v26  ;;  %v4348_v6 = vadd.f32 %v1247_v42, %v4293_v30  ;;  %v5403_v33 = vld [vmem:[#allocation26_spill] sm:$0xff]  ;;  %v5404_v5 = vld [vmem:[#allocation52_spill] sm:$0xff] }
 0x173   : > { %5396 = vst [vmem:[#allocation83_spill] sm:$0xff] %v4341_v49  ;;  %v4345_v2 = vpop.eup %2900  ;;  %v2021_v47 = vmul.f32 %v1893_v22, %v1637_v44  ;;  %2910 = vtanh.f32 %v1500_v50  ;;  %v1501_v60 = vmul.f32 0.7978846, %v5401_v0  ;;  %v1602_v46 = vmul.f32 0.5, %v5402_v41  ;;  %v5406_v53 = vld [vmem:[#allocation20_spill] sm:$0xff] }
 0x174   : > { %5399 = vst [vmem:[#allocation76_spill] sm:$0xff] %v4345_v2  ;;  %v2903_v16 = vpop.eup %2902  ;;  %v2028_v17 = vmul.f32 %v1900_v18, %v1644_v4  ;;  %v1610_v11 = vmul.f32 0.5, %v5403_v33  ;;  %v1859_v34 = vadd.f32 1.0, %v5404_v5  ;;  %v1603_v19 = vmul.f32 0.5, %v5406_v53  ;;  %v5408_v0 = vld [vmem:[#allocation72_spill] sm:$0xff]  ;;  %v5409_v4 = vld [vmem:[#allocation30_spill] sm:$0xff] }
 0x175   : > { %5400 = vst [vmem:[#allocation89_spill] sm:$0xff] %v4348_v6  ;;  %v4354_v25 = vpop.eup %2904  ;;  %v1901_v26 = vadd.f32 1.0, %v2903_v16  ;;  %v1611_v42 = vmul.f32 0.5, %v5407_v29  ;;  %2912 = vtanh.f32 %v1501_v60  ;;  %v1986_v50 = vmul.f32 %v1858_v37, %v1602_v46  ;;  %v5410_v33 = vld [vmem:[#allocation33_spill] sm:$0xff]  ;;  %v5413_v60 = vld [vmem:[#allocation36_spill] sm:$0xff]  ;;  %v4366_v37 = vpop.f32.mrf.mxu2 }
 0x176   : > { %5405 = vst [vmem:[#allocation78_spill] sm:$0xff] %v4354_v25  ;;  %v2907_v22 = vpop.eup %2906  ;;  %v2124_v44 = vpack.c.bf16 %v2028_v17, %v2020_v45  ;;  %v1876_v39 = vadd.f32 1.0, %v5408_v0  ;;  %v1466_v18 = vmul.f32 0.7978846, %v5409_v4  ;;  %v1620_v24 = vmul.f32 0.5, %v5410_v33  ;;  %v4368_v17 = vpop.f32.mrf.mxu3  ;;  %v5414_v0 = vld [vmem:[#allocation75_spill] sm:$0xff] }
 0x177   : > { %v2029_v41 = vmul.f32 %v1901_v26, %v1645_v38  ;;  %v1866_v28 = vadd.f32 1.0, %v2907_v22  ;;  %v4362_v5 = vadd.f32 %v869_v54, %v5374_v31  ;;  %v1987_v53 = vmul.f32 %v1859_v34, %v1603_v19 }
 0x178   : > { %v2909_v16 = vpop.eup %2908  ;;  %2288 = vmatpush.bf16.msra.mxu2 %v2124_v44  ;;  %v1628_v29 = vmul.f32 0.5, %v5412_v13  ;;  %2914 = vtanh.f32 %v1466_v18  ;;  %v1467_v45 = vmul.f32 0.7978846, %v5413_v60  ;;  %v1877_v4 = vadd.f32 1.0, %v5414_v0  ;;  %v5417_v60 = vld [vmem:[#allocation51_spill] sm:$0xff] }
 0x179   : > { %5411 = vst [vmem:[#allocation43_spill] sm:$0xff] %v4362_v5  ;;  %v2911_v46 = vpop.eup %2910  ;;  %v2125_v38 = vpack.c.bf16 %v2029_v41, %v2021_v47  ;;  %v1994_v26 = vmul.f32 %v1866_v28, %v1610_v11  ;;  %v1867_v22 = vadd.f32 1.0, %v2909_v16  ;;  %v2004_v33 = vmul.f32 %v1876_v39, %v1620_v24  ;;  %v4379_v47 = vpop.f32.mrf.mxu0  ;;  %v5419_v16 = vld [vmem:[#allocation13_spill] sm:$0xff] }
 0x17a   : > { %v1884_v54 = vadd.f32 1.0, %v2911_v46  ;;  %v1621_v44 = vmul.f32 0.5, %v5415_v15  ;;  %v4374_v13 = vadd.f32 %v4320_v52, %v5374_v31  ;;  %v1629_v58 = vmul.f32 0.5, %v5417_v60  ;;  %v4381_v11 = vpop.f32.mrf.mxu1  ;;  %v5418_v15 = vld [vmem:[#allocation34_spill] sm:$0xff] }
 0x17b   : > { %v2913_v19 = vpop.eup %2912  ;;  %2317 = vmatpush.bf16.msra.mxu3 %v2125_v38  ;;  %v2106_v34 = vpack.c.bf16 %v1994_v26, %v1986_v50  ;;  %v1995_v18 = vmul.f32 %v1867_v22, %v1611_v42  ;;  %v992_v28 = vmul.f32 %v4362_v5, %v4362_v5  ;;  %v1842_v41 = vadd.f32 1.0, %v5418_v15  ;;  %v5420_v42 = vld [vmem:[#allocation6_spill] sm:$0xff] }
 0x17c   : > { %5416 = vst [vmem:[#allocation91_spill] sm:$0xff] %v4374_v13  ;;  %v2012_v39 = vmul.f32 %v1884_v54, %v1628_v29  ;;  %v1885_v24 = vadd.f32 1.0, %v2913_v19  ;;  %2916 = vtanh.f32 %v1467_v45  ;;  %v2005_v52 = vmul.f32 %v1877_v4, %v1621_v44  ;;  %v5423_v45 = vld [vmem:[#allocation19_spill] sm:$0xff] }
 0x17d   : > { %2232 = vmatpush.bf16.msra.mxu0 %v2106_v34  ;;  %v2107_v31 = vpack.c.bf16 %v1995_v18, %v1987_v53  ;;  %v1586_v50 = vmul.f32 0.5, %v5419_v16  ;;  %v4387_v46 = vadd.f32 %v4337_v36, %v5420_v42  ;;  %v993_v0 = vmul.f32 %v4374_v13, %v4374_v13  ;;  %v5424_v44 = vld [vmem:[#allocation55_spill] sm:$0xff]  ;;  %v4402_v18 = vpop.f32.mrf.mxu2 }
 0x17e   : > { %v2915_v38 = vpop.eup %2914  ;;  %v2116_v26 = vpack.c.bf16 %v2012_v39, %v2004_v33  ;;  %v2013_v22 = vmul.f32 %v1885_v24, %v1629_v58  ;;  %v4393_v29 = vadd.f32 %v4339_v59, %v5420_v42  ;;  %v1594_v53 = vmul.f32 0.5, %v5423_v45  ;;  %v4404_v59 = vpop.f32.mrf.mxu3  ;;  %v5425_v39 = vld [vmem:[#allocation35_spill] sm:$0xff] }
 0x17f   : > { %5421 = vst [vmem:[#allocation57_spill] sm:$0xff] %v4387_v46  ;;  %2261 = vmatpush.bf16.msra.mxu1 %v2107_v31  ;;  %v1850_v4 = vadd.f32 1.0, %v2915_v38  ;;  %v998_v54 = vmul.f32 %v4387_v46, %v4387_v46  ;;  %v1484_v36 = vmul.f32 0.7978846, %v5424_v44  ;;  %v1120_v58 = vmul.f32 %v992_v28, %v4362_v5  ;;  %v5426_v28 = vld [vmem:[#allocation14_spill] sm:$0xff] }
 0x180   : > { %5422 = vst [vmem:[#allocation44_spill] sm:$0xff] %v4393_v29  ;;  %2289 = vmatpush.bf16.msra.mxu2 %v2116_v26  ;;  %v2117_v19 = vpack.c.bf16 %v2013_v22, %v2005_v52  ;;  %v1970_v33 = vmul.f32 %v1842_v41, %v1586_v50  ;;  %v999_v34 = vmul.f32 %v4393_v29, %v4393_v29  ;;  %v1843_v24 = vadd.f32 1.0, %v5425_v39  ;;  %v5427_v50 = vld [vmem:[#allocation56_spill] sm:$0xff]  ;;  %v5428_v22 = vld [vmem:[#allocation21_spill] sm:$0xff] }
 0x181   : > { %v1978_v60 = vmul.f32 %v1850_v4, %v1594_v53  ;;  %v1126_v15 = vmul.f32 %v998_v54, %v4387_v46  ;;  %2918 = vtanh.f32 %v1484_v36  ;;  %v4409_v52 = vmul.f32 %v993_v0, %v4374_v13  ;;  %v4415_v44 = vpop.f32.mrf.mxu0  ;;  %v5431_v39 = vld [vmem:[#allocation37_spill] sm:$0xff] }
 0x182   : > { %v2917_v31 = vpop.eup %2916  ;;  %2318 = vmatpush.bf16.msra.mxu3 %v2117_v19  ;;  %v1587_v41 = vmul.f32 0.5, %v5426_v28  ;;  %v1127_v16 = vmul.f32 %v999_v34, %v4393_v29  ;;  %v1485_v38 = vmul.f32 0.7978846, %v5427_v50  ;;  %v1595_v45 = vmul.f32 0.5, %v5428_v22  ;;  %v4417_v54 = vpop.f32.mrf.mxu1  ;;  %v5430_v19 = vld [vmem:[#allocation54_spill] sm:$0xff] }
 0x183   : > { %v2098_v26 = vpack.c.bf16 %v1978_v60, %v1970_v33  ;;  %v1851_v53 = vadd.f32 1.0, %v2917_v31  ;;  %v1254_v4 = vmul.f32 0.044715, %v1126_v15  ;;  %v4419_v36 = vmul.f32 0.044715, %v1120_v58  ;;  %v4425_v34 = vld [vmem:[%s5096_s3] sm:$0xff] }
 0x184   : > { %v1860_v0 = vadd.f32 1.0, %v5430_v19  ;;  %2920 = vtanh.f32 %v1485_v38  ;;  %v1468_v33 = vmul.f32 0.7978846, %v5431_v39  ;;  %v1971_v60 = vmul.f32 %v1843_v24, %v1587_v41  ;;  %v5432_v28 = vld [vmem:[#allocation58_spill] sm:$0xff]  ;;  %v5434_v58 = vld [vmem:[#allocation31_spill] sm:$0xff] }
 0x185   : > { %5429 = vst [vmem:[#allocation80_spill] sm:$0xff] %v4419_v36  ;;  %2233 = vmatpush.bf16.msra.mxu0 %v2098_v26  ;;  %v1979_v31 = vmul.f32 %v1851_v53, %v1595_v45  ;;  %v1255_v15 = vmul.f32 0.044715, %v1127_v16  ;;  %v1861_v50 = vadd.f32 1.0, %v5432_v28  ;;  %v5433_v22 = vld [vmem:[#allocation22_spill] sm:$0xff]  ;;  %v1612_v9 = vmul.f32 0.5, %v5434_v58 }
 0x186   : > { %v1604_v63 = vmul.f32 0.5, %v5433_v22  ;;  %v1605_v19 = vmul.f32 0.5, %v5435_v3  ;;  %2922 = vtanh.f32 %v1468_v33  ;;  %v1382_v1 = vadd.f32 %v1254_v4, %v4387_v46  ;;  %v5437_v39 = vld [vmem:[#allocation38_spill] sm:$0xff]  ;;  %v5438_v16 = vld [vmem:[#allocation15_spill] sm:$0xff]  ;;  %v4438_v22 = vpop.f32.mrf.mxu2  ;;  %v4440_v3 = vpop.f32.mrf.mxu3 }
 0x187   : > { %v2919_v38 = vpop.eup %2918  ;;  %v2099_v8 = vpack.c.bf16 %v1979_v31, %v1971_v60  ;;  %v1613_v40 = vmul.f32 0.5, %v5436_v61  ;;  %v1469_v26 = vmul.f32 0.7978846, %v5437_v39  ;;  %v1588_v45 = vmul.f32 0.5, %v5438_v16  ;;  %v5439_v53 = vld [vmem:[#allocation23_spill] sm:$0xff]  ;;  %v5442_v31 = vld [vmem:[#allocation40_spill] sm:$0xff] }
 0x188   : > { %v1868_v24 = vadd.f32 1.0, %v2919_v38  ;;  %v1988_v41 = vmul.f32 %v1860_v0, %v1604_v63  ;;  %2234 = vmatmul.bf16.vlgmr.msra.gmra.mxu0 %v4425_v34  ;;  %v1596_v28 = vmul.f32 0.5, %v5439_v53  ;;  %v1383_v33 = vadd.f32 %v1255_v15, %v4393_v29  ;;  %v5443_v38 = vld [vmem:[#allocation10_spill] sm:$0xff]  ;;  %v5475_v29 = vld [vmem:[#allocation11_spill] sm:$0xff] }
 0x189   : > { %2262 = vmatpush.bf16.msra.mxu1 %v2099_v8  ;;  %v1989_v4 = vmul.f32 %v1861_v50, %v1605_v19  ;;  %v4445_v61 = vadd.f32 %v4366_v37, %v5420_v42  ;;  %v4449_v63 = vadd.f32 %v4368_v17, %v5420_v42  ;;  %v1844_v58 = vadd.f32 1.0, %v5442_v31  ;;  %v781_v17 = vpop.f32.mrf.mxu0 }
 0x18a   : > { %v2921_v0 = vpop.eup %2920  ;;  %v1996_v60 = vmul.f32 %v1868_v24, %v1612_v9  ;;  %v4454_v39 = vadd.f32 %v4379_v47, %v5443_v38  ;;  %v4458_v8 = vadd.f32 %v4381_v11, %v5443_v38  ;;  %v1510_v15 = vmul.f32 0.7978846, %v1382_v1  ;;  %v4462_v42 = vpop.f32.mrf.mxu1 }
 0x18b   : > { %5440 = vst [vmem:[#allocation93_spill] sm:$0xff] %v4445_v61  ;;  %v1869_v50 = vadd.f32 1.0, %v2921_v0  ;;  %2924 = vtanh.f32 %v1469_v26  ;;  %v1000_v37 = vmul.f32 %v4445_v61, %v4445_v61  ;;  %v1001_v47 = vmul.f32 %v4449_v63, %v4449_v63 }
 0x18c   : > { %5441 = vst [vmem:[#allocation59_spill] sm:$0xff] %v4449_v63  ;;  %v2923_v9 = vpop.eup %2922  ;;  %v2108_v19 = vpack.c.bf16 %v1996_v60, %v1988_v41  ;;  %2263 = vmatmul.bf16.vlgmr.msra.gmra.mxu1 %v4425_v34  ;;  %v1006_v11 = vmul.f32 %v4454_v39, %v4454_v39  ;;  %v1007_v1 = vmul.f32 %v4458_v8, %v4458_v8  ;;  %v1511_v41 = vmul.f32 0.7978846, %v1383_v33 }
 0x18d   : > { %5444 = vst [vmem:[#allocation64_spill] sm:$0xff] %v4454_v39  ;;  %v1997_v26 = vmul.f32 %v1869_v50, %v1613_v40  ;;  %v1852_v24 = vadd.f32 1.0, %v2923_v9  ;;  %v1128_v16 = vmul.f32 %v1000_v37, %v4445_v61  ;;  %v4474_v53 = vadd.f32 %v4402_v18, %v5443_v38  ;;  %v5449_v37 = vld [vmem:[#allocation16_spill] sm:$0xff] }
 0x18e   : > { %5445 = vst [vmem:[#allocation92_spill] sm:$0xff] %v4458_v8  ;;  %2290 = vmatpush.bf16.msra.mxu2 %v2108_v19  ;;  %v1972_v0 = vmul.f32 %v1844_v58, %v1588_v45  ;;  %v1129_v60 = vmul.f32 %v1001_v47, %v4449_v63  ;;  %v1134_v31 = vmul.f32 %v1006_v11, %v4454_v39  ;;  %v1845_v2 = vadd.f32 1.0, %v5447_v7  ;;  %v879_v45 = vpop.f32.mrf.mxu2  ;;  %v928_v58 = vpop.f32.mrf.mxu3  ;;  %v5451_v47 = vld [vmem:[#allocation8_spill] sm:$0xff] }
 0x18f   : > { %5446 = vst [vmem:[#allocation77_spill] sm:$0xff] %v4474_v53  ;;  %v2109_v62 = vpack.c.bf16 %v1997_v26, %v1989_v4  ;;  %v1980_v25 = vmul.f32 %v1852_v24, %v1596_v28  ;;  %v1135_v40 = vmul.f32 %v1007_v1, %v4458_v8  ;;  %v4481_v50 = vmul.f32 0.044715, %v4409_v52  ;;  %v5452_v11 = vld [vmem:[#allocation24_spill] sm:$0xff] }
 0x190   : > { %v1589_v9 = vmul.f32 0.5, %v5449_v37  ;;  %v1256_v18 = vmul.f32 0.044715, %v1128_v16  ;;  %v4486_v33 = vadd.f32 %v4404_v59, %v5443_v38  ;;  %v1257_v28 = vmul.f32 0.044715, %v1129_v60 }
 0x191   : > { %5448 = vst [vmem:[#allocation62_spill] sm:$0xff] %v4481_v50  ;;  %v2925_v19 = vpop.eup %2924  ;;  %2319 = vmatpush.bf16.msra.mxu3 %v2109_v62  ;;  %v2100_v4 = vpack.c.bf16 %v1980_v25, %v1972_v0  ;;  %v1008_v7 = vmul.f32 %v4474_v53, %v4474_v53  ;;  %v4492_v52 = vadd.f32 %v4415_v44, %v5451_v47  ;;  %2926 = vtanh.f32 %v1510_v15  ;;  %v784_v25 = vpop.f32.mrf.mxu0  ;;  %v4507_v15 = vld [vmem:[%s5096_s3 + $0x8] sm:$0xff] }
 0x192   : > { %5450 = vst [vmem:[#allocation68_spill] sm:$0xff] %v4486_v33  ;;  %v1597_v1 = vmul.f32 0.5, %v5452_v11  ;;  %v1853_v26 = vadd.f32 1.0, %v2925_v19  ;;  %v1262_v24 = vmul.f32 0.044715, %v1134_v31  ;;  %2928 = vtanh.f32 %v1511_v41  ;;  %v4497_v16 = vpop.f32.mrf.mxu1 }
 0x193   : > { %2291 = vmatpush.bf16.msra.mxu2 %v2100_v4  ;;  %v1973_v59 = vmul.f32 %v1845_v2, %v1589_v9  ;;  %v1263_v38 = vmul.f32 0.044715, %v1135_v40  ;;  %v1014_v62 = vmul.f32 %v4492_v52, %v4492_v52  ;;  %v1384_v60 = vadd.f32 %v1256_v18, %v4445_v61 }
 0x194   : > { %v1981_v0 = vmul.f32 %v1853_v26, %v1597_v1  ;;  %v4502_v44 = vadd.f32 %v4417_v54, %v5451_v47  ;;  %v4511_v2 = vadd.f32 %v4438_v22, %v5451_v47  ;;  %v4514_v41 = vadd.f32 %v1257_v28, %v4449_v63  ;;  %v5464_v63 = vld [vmem:[#allocation2_spill] sm:$0xff] }
 0x195   : > { %v4517_v31 = vmul.f32 %v1008_v7, %v4474_v53  ;;  %v4521_v40 = vmul.f32 %v4486_v33, %v4486_v33  ;;  %v1142_v54 = vmul.f32 %v1014_v62, %v4492_v52  ;;  %v4526_v9 = vadd.f32 %v1262_v24, %v4454_v39  ;;  %v5458_v7 = vld [vmem:[#allocation12_spill] sm:$0xff] }
 0x196   : > { %5453 = vst [vmem:[#allocation81_spill] sm:$0xff] %v4511_v2  ;;  %v2101_v37 = vpack.c.bf16 %v1981_v0, %v1973_v59  ;;  %2292 = vmatmul.bf16.vlgmr.msra.gmra.mxu2 %v4425_v34  ;;  %v1015_v22 = vmul.f32 %v4502_v44, %v4502_v44  ;;  %v1016_v18 = vmul.f32 %v4511_v2, %v4511_v2  ;;  %v4544_v26 = vmul.f32 0.7978846, %v1384_v60 }
 0x197   : > { %5454 = vst [vmem:[#allocation63_spill] sm:$0xff] %v4514_v41  ;;  %v4533_v19 = vadd.f32 %v1263_v38, %v4458_v8  ;;  %v1270_v4 = vmul.f32 0.044715, %v1142_v54  ;;  %v4537_v28 = vadd.f32 %v4440_v3, %v5451_v47  ;;  %v4540_v11 = vadd.f32 %v781_v17, %v5458_v7  ;;  %v4542_v1 = vpop.eup %2926  ;;  %v882_v3 = vpop.f32.mrf.mxu2 }
 0x198   : > { %5455 = vst [vmem:[#allocation94_spill] sm:$0xff] %v4526_v9  ;;  %2320 = vmatpush.bf16.msra.mxu3 %v2101_v37  ;;  %v1143_v24 = vmul.f32 %v1015_v22, %v4502_v44  ;;  %2239 = vmatmul.bf16.gmra.mxu0 %v4507_v15  ;;  %v1144_v59 = vmul.f32 %v1016_v18, %v4511_v2  ;;  %v931_v47 = vpop.f32.mrf.mxu3  ;;  %v4553_v62 = vpop.eup %2928 }
 0x199   : > { %5456 = vst [vmem:[#allocation27_spill] sm:$0xff] %v4533_v19  ;;  %v4551_v38 = vadd.f32 %v4462_v42, %v5458_v7  ;;  %v1398_v17 = vadd.f32 %v1270_v4, %v4492_v52  ;;  %v1017_v0 = vmul.f32 %v4537_v28, %v4537_v28  ;;  %v1022_v60 = vmul.f32 %v4540_v11, %v4540_v11 }
 0x19a   : > { %5457 = vst [vmem:[#allocation65_spill] sm:$0xff] %v4537_v28  ;;  %v4561_v54 = vadd.f32 %v879_v45, %v5458_v7  ;;  %v1271_v37 = vmul.f32 0.044715, %v1143_v24  ;;  %v1272_v22 = vmul.f32 0.044715, %v1144_v59  ;;  %v4566_v18 = vadd.f32 %v928_v58, %v5458_v7  ;;  %v786_v45 = vpop.f32.mrf.mxu0  ;;  %v835_v10 = vpop.f32.mrf.mxu1 }
 0x19b   : > { %5459 = vst [vmem:[#allocation9_spill] sm:$0xff] %v4542_v1  ;;  %v1023_v42 = vmul.f32 %v4551_v38, %v4551_v38  ;;  %2321 = vmatmul.bf16.vlgmr.msra.gmra.mxu3 %v4425_v34  ;;  %v1526_v4 = vmul.f32 0.7978846, %v1398_v17  ;;  %v1145_v27 = vmul.f32 %v1017_v0, %v4537_v28  ;;  %v1150_v56 = vmul.f32 %v1022_v60, %v4540_v11 }
 0x19c   : > { %5460 = vst [vmem:[#allocation41_spill] sm:$0xff] %v4544_v26  ;;  %v1024_v32 = vmul.f32 %v4561_v54, %v4561_v54  ;;  %v1399_v24 = vadd.f32 %v1271_v37, %v4502_v44  ;;  %2268 = vmatmul.bf16.gmra.mxu1 %v4507_v15  ;;  %v1400_v59 = vadd.f32 %v1272_v22, %v4511_v2 }
 0x19d   : > { %5461 = vst [vmem:[#allocation67_spill] sm:$0xff] %v4553_v62  ;;  %v1151_v58 = vmul.f32 %v1023_v42, %v4551_v38  ;;  %v1025_v34 = vmul.f32 %v4566_v18, %v4566_v18  ;;  %2930 = vtanh.f32 %v1526_v4  ;;  %v1273_v7 = vmul.f32 0.044715, %v1145_v27 }
 0x19e   : > { %5462 = vst [vmem:[#allocation79_spill] sm:$0xff] %v4561_v54  ;;  %v1278_v17 = vmul.f32 0.044715, %v1150_v56  ;;  %v1152_v0 = vmul.f32 %v1024_v32, %v4561_v54  ;;  %v1527_v60 = vmul.f32 0.7978846, %v1399_v24  ;;  %v4584_v42 = vadd.f32 %v784_v25, %v5464_v63 }
 0x19f   : > { %5463 = vst [vmem:[#allocation28_spill] sm:$0xff] %v4566_v18  ;;  %v1528_v48 = vmul.f32 0.7978846, %v1400_v59  ;;  %v1279_v43 = vmul.f32 0.044715, %v1151_v58  ;;  %v1153_v51 = vmul.f32 %v1025_v34, %v4566_v18  ;;  %v1401_v37 = vadd.f32 %v1273_v7, %v4537_v28  ;;  %v884_v56 = vpop.f32.mrf.mxu2 }
 0x1a0   : > { %v1406_v23 = vadd.f32 %v1278_v17, %v4540_v11  ;;  %v1280_v22 = vmul.f32 0.044715, %v1152_v0  ;;  %2932 = vtanh.f32 %v1527_v60  ;;  %v4589_v32 = vadd.f32 %v4497_v16, %v5464_v63  ;;  %v933_v24 = vpop.f32.mrf.mxu3 }
 0x1a1   : > { %v1407_v4 = vadd.f32 %v1279_v43, %v4551_v38  ;;  %v1281_v27 = vmul.f32 0.044715, %v1153_v51  ;;  %2934 = vtanh.f32 %v1528_v48  ;;  %v1529_v59 = vmul.f32 0.7978846, %v1401_v37 }
 0x1a2   : > { %v1534_v58 = vmul.f32 0.7978846, %v1406_v23  ;;  %v1408_v34 = vadd.f32 %v1280_v22, %v4561_v54  ;;  %v1030_v25 = vmul.f32 %v4584_v42, %v4584_v42  ;;  %v1031_v43 = vmul.f32 %v4589_v32, %v4589_v32  ;;  %v789_v48 = vpop.f32.mrf.mxu0 }
 0x1a3   : > { %v1535_v7 = vmul.f32 0.7978846, %v1407_v4  ;;  %v1409_v17 = vadd.f32 %v1281_v27, %v4566_v18  ;;  %v4597_v51 = vpop.eup %2930  ;;  %2936 = vtanh.f32 %v1529_v59  ;;  %v4600_v0 = vadd.f32 %v882_v3, %v5464_v63  ;;  %v4613_v4 = vld [vmem:[%s5096_s3 + $0x10] sm:$0xff]  ;;  %v838_v27 = vpop.f32.mrf.mxu1 }
 0x1a4   : > { %v1536_v16 = vmul.f32 0.7978846, %v1408_v34  ;;  %v4603_v23 = vadd.f32 %v931_v47, %v5464_v63  ;;  %v4606_v60 = vmul.f32 0.044715, %v4517_v31  ;;  %2938 = vtanh.f32 %v1534_v58  ;;  %v5467_v31 = vld [vmem:[#allocation4_spill] sm:$0xff] }
 0x1a5   : > { %v1158_v37 = vmul.f32 %v1030_v25, %v4584_v42  ;;  %v1159_v22 = vmul.f32 %v1031_v43, %v4589_v32  ;;  %v1537_v3 = vmul.f32 0.7978846, %v1409_v17  ;;  %v1032_v63 = vmul.f32 %v4600_v0, %v4600_v0 }
 0x1a6   : > { %5465 = vst [vmem:[#allocation42_spill] sm:$0xff] %v4603_v23  ;;  %v1033_v47 = vmul.f32 %v4603_v23, %v4603_v23  ;;  %v4620_v59 = vadd.f32 %v786_v45, %v5467_v31  ;;  %v4622_v58 = vpop.eup %2932  ;;  %2297 = vmatmul.bf16.gmra.mxu2 %v4507_v15  ;;  %2940 = vtanh.f32 %v1535_v7  ;;  %v4626_v43 = vadd.f32 %v835_v10, %v5467_v31 }
 0x1a7   : > { %5466 = vst [vmem:[#allocation86_spill] sm:$0xff] %v4606_v60  ;;  %v1286_v34 = vmul.f32 0.044715, %v1158_v37  ;;  %v1287_v25 = vmul.f32 0.044715, %v1159_v22  ;;  %v4628_v17 = vpop.eup %2934  ;;  %2942 = vtanh.f32 %v1536_v16  ;;  %v1160_v12 = vmul.f32 %v1032_v63, %v4600_v0  ;;  %v887_v16 = vpop.f32.mrf.mxu2 }
 0x1a8   : > { %5468 = vst [vmem:[#allocation84_spill] sm:$0xff] %v4628_v17  ;;  %v1161_v61 = vmul.f32 %v1033_v47, %v4603_v23  ;;  %v1038_v45 = vmul.f32 %v4620_v59, %v4620_v59  ;;  %2244 = vmatmul.bf16.gmra.mxu0 %v4613_v4  ;;  %v1039_v10 = vmul.f32 %v4626_v43, %v4626_v43  ;;  %v936_v37 = vpop.f32.mrf.mxu3  ;;  %2944 = vtanh.f32 %v1537_v3 }
 0x1a9   : > { %v1414_v30 = vadd.f32 %v1286_v34, %v4584_v42  ;;  %v1415_v35 = vadd.f32 %v1287_v25, %v4589_v32  ;;  %v4640_v7 = vadd.f32 %v884_v56, %v5467_v31  ;;  %v4642_v22 = vpop.eup %2936  ;;  %v1288_v63 = vmul.f32 0.044715, %v1160_v12 }
 0x1aa   : > { %5469 = vst [vmem:[#allocation46_spill] sm:$0xff] %v4642_v22  ;;  %v1289_v47 = vmul.f32 0.044715, %v1161_v61  ;;  %v1166_v21 = vmul.f32 %v1038_v45, %v4620_v59  ;;  %v4646_v34 = vadd.f32 %v933_v24, %v5467_v31  ;;  %v4648_v25 = vpop.eup %2938  ;;  %v1167_v55 = vmul.f32 %v1039_v10, %v4626_v43  ;;  %v791_v31 = vpop.f32.mrf.mxu0  ;;  %v5471_v10 = vld [vmem:[#allocation7_spill] sm:$0xff] }
 0x1ab   : > { %v1542_v20 = vmul.f32 0.7978846, %v1414_v30  ;;  %v1543_v49 = vmul.f32 0.7978846, %v1415_v35  ;;  %v1040_v56 = vmul.f32 %v4640_v7, %v4640_v7  ;;  %2326 = vmatmul.bf16.gmra.mxu3 %v4507_v15  ;;  %v1416_v50 = vadd.f32 %v1288_v63, %v4600_v0  ;;  %v840_v62 = vpop.f32.mrf.mxu1 }
 0x1ac   : > { %5470 = vst [vmem:[#allocation47_spill] sm:$0xff] %v4646_v34  ;;  %v1417_v12 = vadd.f32 %v1289_v47, %v4603_v23  ;;  %v1294_v61 = vmul.f32 0.044715, %v1166_v21  ;;  %v1041_v24 = vmul.f32 %v4646_v34, %v4646_v34  ;;  %v4658_v45 = vpop.eup %2940  ;;  %2273 = vmatmul.bf16.gmra.mxu1 %v4613_v4  ;;  %v1295_v35 = vmul.f32 0.044715, %v1167_v55 }
 0x1ad   : > { %v1168_v30 = vmul.f32 %v1040_v56, %v4640_v7  ;;  %v4663_v13 = vadd.f32 %v789_v48, %v5471_v10  ;;  %v4665_v15 = vpop.eup %2942  ;;  %2946 = vtanh.f32 %v1542_v20  ;;  %v1544_v63 = vmul.f32 0.7978846, %v1416_v50 }
 0x1ae   : > { %5472 = vst [vmem:[#allocation85_spill] sm:$0xff] %v4665_v15  ;;  %v1545_v21 = vmul.f32 0.7978846, %v1417_v12  ;;  %v1422_v47 = vadd.f32 %v1294_v61, %v4620_v59  ;;  %v1423_v8 = vadd.f32 %v1295_v35, %v4626_v43  ;;  %v1169_v3 = vmul.f32 %v1041_v24, %v4646_v34 }
 0x1af   : > { %v1296_v57 = vmul.f32 0.044715, %v1168_v30  ;;  %v1046_v55 = vmul.f32 %v4663_v13, %v4663_v13  ;;  %2948 = vtanh.f32 %v1543_v49  ;;  %v4673_v48 = vadd.f32 %v838_v27, %v5471_v10  ;;  %v889_v35 = vpop.f32.mrf.mxu2  ;;  %v4684_v27 = vpop.eup %2944 }
 0x1b0   : > { %v1550_v56 = vmul.f32 0.7978846, %v1422_v47  ;;  %v4676_v20 = vadd.f32 %v887_v16, %v5471_v10  ;;  %2950 = vtanh.f32 %v1544_v63  ;;  %v1551_v50 = vmul.f32 0.7978846, %v1423_v8  ;;  %5473 = vst [vmem:[#allocation60_spill] sm:$0xff] %v4684_v27  ;;  %v938_v63 = vpop.f32.mrf.mxu3 }
 0x1b1   : > { %v1424_v12 = vadd.f32 %v1296_v57, %v4640_v7  ;;  %v1297_v61 = vmul.f32 0.044715, %v1169_v3  ;;  %2952 = vtanh.f32 %v1545_v21  ;;  %v1174_v24 = vmul.f32 %v1046_v55, %v4663_v13 }
 0x1b2   : > { %v1047_v30 = vmul.f32 %v4673_v48, %v4673_v48  ;;  %v1048_v49 = vmul.f32 %v4676_v20, %v4676_v20  ;;  %v4688_v16 = vmul.f32 %v4521_v40, %v4486_v33  ;;  %2954 = vtanh.f32 %v1550_v56  ;;  %v4704_v56 = vld [vmem:[%s5096_s3 + $0x18] sm:$0xff] }
 0x1b3   : > { %v1425_v57 = vadd.f32 %v1297_v61, %v4646_v34  ;;  %v4692_v8 = vadd.f32 %v936_v37, %v5471_v10  ;;  %v4694_v21 = vpop.eup %2946  ;;  %v1302_v47 = vmul.f32 0.044715, %v1174_v24  ;;  %v4699_v39 = vadd.f32 %v791_v31, %v5475_v29  ;;  %v794_v61 = vpop.f32.mrf.mxu0 }
 0x1b4   : > { %5474 = vst [vmem:[#allocation53_spill] sm:$0xff] %v4688_v16  ;;  %v1175_v3 = vmul.f32 %v1047_v30, %v4673_v48  ;;  %v1176_v55 = vmul.f32 %v1048_v49, %v4676_v20  ;;  %2956 = vtanh.f32 %v1551_v50  ;;  %v1552_v40 = vmul.f32 0.7978846, %v1424_v12 }
 0x1b5   : > { %v1049_v37 = vmul.f32 %v4692_v8, %v4692_v8  ;;  %v4709_v10 = vadd.f32 %v840_v62, %v5475_v29  ;;  %v4711_v24 = vpop.eup %2948  ;;  %v1430_v30 = vadd.f32 %v1302_v47, %v4663_v13  ;;  %v1054_v50 = vmul.f32 %v4699_v39, %v4699_v39 }
 0x1b6   : > { %v1303_v31 = vmul.f32 0.044715, %v1175_v3  ;;  %v1304_v49 = vmul.f32 0.044715, %v1176_v55  ;;  %v4716_v12 = vpop.eup %2950  ;;  %2302 = vmatmul.bf16.gmra.mxu2 %v4613_v4  ;;  %v1553_v6 = vmul.f32 0.7978846, %v1425_v57  ;;  %v4723_v46 = vadd.f32 %v889_v35, %v5475_v29 }
 0x1b7   : > { %5476 = vst [vmem:[#allocation49_spill] sm:$0xff] %v4716_v12  ;;  %v1177_v1 = vmul.f32 %v1049_v37, %v4692_v8  ;;  %v1055_v62 = vmul.f32 %v4709_v10, %v4709_v10  ;;  %v4725_v33 = vpop.eup %2952  ;;  %v1558_v47 = vmul.f32 0.7978846, %v1430_v30  ;;  %v1182_v14 = vmul.f32 %v1054_v50, %v4699_v39  ;;  %v843_v30 = vpop.f32.mrf.mxu1 }
 0x1b8   : > { %5477 = vst [vmem:[#allocation69_spill] sm:$0xff] %v4725_v33  ;;  %v1431_v3 = vadd.f32 %v1303_v31, %v4673_v48  ;;  %v1432_v55 = vadd.f32 %v1304_v49, %v4676_v20  ;;  %v4730_v27 = vpop.eup %2954  ;;  %2249 = vmatmul.bf16.gmra.mxu0 %v4704_v56  ;;  %v1056_v35 = vmul.f32 %v4723_v46, %v4723_v46  ;;  %2958 = vtanh.f32 %v1552_v40  ;;  %v892_v28 = vpop.f32.mrf.mxu2 }
 0x1b9   : > { %v1305_v57 = vmul.f32 0.044715, %v1177_v1  ;;  %v1183_v37 = vmul.f32 %v1055_v62, %v4709_v10  ;;  %v4737_v22 = vadd.f32 %v938_v63, %v5475_v29  ;;  %v1310_v49 = vmul.f32 0.044715, %v1182_v14  ;;  %v5478_v63 = vld [vmem:[#allocation3_spill] sm:$0xff] }
 0x1ba   : > { %v1559_v31 = vmul.f32 0.7978846, %v1431_v3  ;;  %v1560_v18 = vmul.f32 0.7978846, %v1432_v55  ;;  %v4739_v50 = vpop.eup %2956  ;;  %v1184_v1 = vmul.f32 %v1056_v35, %v4723_v46  ;;  %2960 = vtanh.f32 %v1553_v6 }
 0x1bb   : > { %v1433_v15 = vadd.f32 %v1305_v57, %v4692_v8  ;;  %v1311_v17 = vmul.f32 0.044715, %v1183_v37  ;;  %v1057_v62 = vmul.f32 %v4737_v22, %v4737_v22  ;;  %2331 = vmatmul.bf16.gmra.mxu3 %v4613_v4  ;;  %v1438_v29 = vadd.f32 %v1310_v49, %v4699_v39  ;;  %v941_v37 = vpop.f32.mrf.mxu3  ;;  %v796_v2 = vpop.f32.mrf.mxu0 }
 0x1bc   : > { %v795_v40 = vadd.f32 %v794_v61, %v5478_v63  ;;  %v844_v14 = vadd.f32 %v843_v30, %v5478_v63  ;;  %2962 = vtanh.f32 %v1558_v47  ;;  %2278 = vmatmul.bf16.gmra.mxu1 %v4704_v56  ;;  %v1312_v57 = vmul.f32 0.044715, %v1184_v1 }
 0x1bd   : > { %v1561_v3 = vmul.f32 0.7978846, %v1433_v15  ;;  %v1439_v55 = vadd.f32 %v1311_v17, %v4709_v10  ;;  %2964 = vtanh.f32 %v1559_v31  ;;  %v1566_v35 = vmul.f32 0.7978846, %v1438_v29 }
 0x1be   : > { %v1185_v54 = vmul.f32 %v1057_v62, %v4737_v22  ;;  %v1062_v4 = vmul.f32 %v795_v40, %v795_v40  ;;  %2966 = vtanh.f32 %v1560_v18  ;;  %v1440_v49 = vadd.f32 %v1312_v57, %v4723_v46  ;;  %v4753_v30 = vpop.eup %2958  ;;  %v5481_v57 = vld [vmem:[#allocation5_spill] sm:$0xff] }
 0x1bf   : > { %v1567_v6 = vmul.f32 0.7978846, %v1439_v55  ;;  %v1063_v61 = vmul.f32 %v844_v14, %v844_v14  ;;  %5479 = vst [vmem:[#allocation66_spill] sm:$0xff] %v4753_v30  ;;  %2968 = vtanh.f32 %v1561_v3  ;;  %v4755_v16 = vmul.f32 0.5, %v795_v40 }
 0x1c0   : > { %v1313_v47 = vmul.f32 0.044715, %v1185_v54  ;;  %v1190_v15 = vmul.f32 %v1062_v4, %v795_v40  ;;  %2970 = vtanh.f32 %v1566_v35  ;;  %v1568_v17 = vmul.f32 0.7978846, %v1440_v49  ;;  %v4758_v62 = vpop.eup %2960  ;;  %v845_v35 = vpop.f32.mrf.mxu1 }
 0x1c1   : > { %v1191_v31 = vmul.f32 %v1063_v61, %v844_v14  ;;  %v893_v1 = vadd.f32 %v892_v28, %v5478_v63  ;;  %5480 = vst [vmem:[#allocation48_spill] sm:$0xff] %v4758_v62  ;;  %v942_v55 = vadd.f32 %v941_v37, %v5478_v63  ;;  %v797_v19 = vadd.f32 %v796_v2, %v5481_v57 }
 0x1c2   : > { %v1441_v18 = vadd.f32 %v1313_v47, %v4737_v22  ;;  %v1318_v29 = vmul.f32 0.044715, %v1190_v15  ;;  %v2963_v60 = vpop.eup %2962  ;;  %2972 = vtanh.f32 %v1567_v6  ;;  %v4763_v3 = vmul.f32 0.5, %v844_v14  ;;  %v894_v47 = vpop.f32.mrf.mxu2 }
 0x1c3   : > { %v1319_v54 = vmul.f32 0.044715, %v1191_v31  ;;  %v1064_v4 = vmul.f32 %v893_v1, %v893_v1  ;;  %v4765_v49 = vpop.eup %2964  ;;  %2974 = vtanh.f32 %v1568_v17  ;;  %v4767_v61 = vmul.f32 0.5, %v893_v1 }
 0x1c4   : > { %v1446_v28 = vadd.f32 %v1318_v29, %v795_v40  ;;  %v1065_v53 = vmul.f32 %v942_v55, %v942_v55  ;;  %v4769_v15 = vpop.eup %2966  ;;  %v1569_v63 = vmul.f32 0.7978846, %v1441_v18  ;;  %v1070_v36 = vmul.f32 %v797_v19, %v797_v19  ;;  %v943_v18 = vpop.f32.mrf.mxu3 }
 0x1c5   : > { %v1447_v37 = vadd.f32 %v1319_v54, %v844_v14  ;;  %v1192_v2 = vmul.f32 %v1064_v4, %v893_v1  ;;  %v4771_v6 = vpop.eup %2968  ;;  %v4773_v26 = vmul.f32 0.5, %v942_v55  ;;  %v846_v9 = vadd.f32 %v845_v35, %v5481_v57 }
 0x1c6   : > { %v1574_v31 = vmul.f32 0.7978846, %v1446_v28  ;;  %v1193_v5 = vmul.f32 %v1065_v53, %v942_v55  ;;  %v2971_v17 = vpop.eup %2970  ;;  %2307 = vmatmul.bf16.gmra.mxu2 %v4704_v56  ;;  %v1198_v41 = vmul.f32 %v1070_v36, %v797_v19  ;;  %v895_v62 = vadd.f32 %v894_v47, %v5481_v57 }
 0x1c7   : > { %v1575_v40 = vmul.f32 0.7978846, %v1447_v37  ;;  %v1320_v29 = vmul.f32 0.044715, %v1192_v2  ;;  %v4778_v54 = vmul.f32 0.5, %v797_v19  ;;  %v1071_v4 = vmul.f32 %v846_v9, %v846_v9 }
 0x1c8   : > { %2976 = vtanh.f32 %v1574_v31  ;;  %v1321_v14 = vmul.f32 0.044715, %v1193_v5  ;;  %v2973_v28 = vpop.eup %2972  ;;  %v1326_v33 = vmul.f32 0.044715, %v1198_v41  ;;  %v1072_v34 = vmul.f32 %v895_v62, %v895_v62 }
 0x1c9   : > { %2978 = vtanh.f32 %v1575_v40  ;;  %v1448_v53 = vadd.f32 %v1320_v29, %v893_v1  ;;  %v4780_v35 = vpop.eup %2974  ;;  %v1199_v37 = vmul.f32 %v1071_v4, %v846_v9  ;;  %v944_v36 = vadd.f32 %v943_v18, %v5481_v57 }
 0x1ca   : > { %2980 = vtanh.f32 %v1569_v63  ;;  %v1449_v23 = vadd.f32 %v1321_v14, %v942_v55  ;;  %v1454_v47 = vadd.f32 %v1326_v33, %v797_v19  ;;  %v4783_v30 = vmul.f32 0.5, %v846_v9 }
 0x1cb   : > { %v1576_v2 = vmul.f32 0.7978846, %v1448_v53  ;;  %v1200_v5 = vmul.f32 %v1072_v34, %v895_v62  ;;  %2336 = vmatmul.bf16.gmra.mxu3 %v4704_v56  ;;  %v1327_v12 = vmul.f32 0.044715, %v1199_v37  ;;  %v4786_v40 = vmul.f32 0.5, %v895_v62 }
 0x1cc   : > { %v1577_v31 = vmul.f32 0.7978846, %v1449_v23  ;;  %v1073_v41 = vmul.f32 %v944_v36, %v944_v36  ;;  %v1582_v1 = vmul.f32 0.7978846, %v1454_v47  ;;  %v1686_v55 = vmul.f32 0.5, %v4663_v13 }
 0x1cd   : > { %2982 = vtanh.f32 %v1576_v2  ;;  %v1328_v29 = vmul.f32 0.044715, %v1200_v5  ;;  %v1455_v57 = vadd.f32 %v1327_v12, %v846_v9  ;;  %v1942_v33 = vadd.f32 1.0, %v2963_v60 }
 0x1ce   : > { %v2977_v63 = vpop.eup %2976  ;;  %2984 = vtanh.f32 %v1577_v31  ;;  %v1201_v18 = vmul.f32 %v1073_v41, %v944_v36  ;;  %v1950_v56 = vadd.f32 1.0, %v2971_v17  ;;  %v1694_v2 = vmul.f32 0.5, %v4699_v39 }
 0x1cf   : > { %v2979_v19 = vpop.eup %2978  ;;  %v1958_v14 = vadd.f32 1.0, %v2977_v63  ;;  %2986 = vtanh.f32 %v1582_v1  ;;  %v1456_v34 = vadd.f32 %v1328_v29, %v895_v62  ;;  %v1583_v53 = vmul.f32 0.7978846, %v1455_v57 }
 0x1d0   : > { %v4789_v23 = vpop.eup %2980  ;;  %v1959_v4 = vadd.f32 1.0, %v2979_v19  ;;  %v1329_v37 = vmul.f32 0.044715, %v1201_v18  ;;  %v4792_v5 = vmul.f32 0.5, %v944_v36  ;;  %v4795_v9 = vmul.f32 %v1942_v33, %v1686_v55 }
 0x1d1   : > { %v1584_v47 = vmul.f32 0.7978846, %v1456_v34  ;;  %v2086_v13 = vmul.f32 %v1958_v14, %v4755_v16  ;;  %2988 = vtanh.f32 %v1583_v53  ;;  %v2078_v12 = vmul.f32 %v1950_v56, %v1694_v2 }
 0x1d2   : > { %v1457_v60 = vadd.f32 %v1329_v37, %v944_v36  ;;  %v1687_v62 = vmul.f32 0.5, %v4673_v48  ;;  %v1695_v31 = vmul.f32 0.5, %v4709_v10  ;;  %v1943_v41 = vadd.f32 1.0, %v4765_v49 }
 0x1d3   : > { %v2983_v17 = vpop.eup %2982  ;;  %2990 = vtanh.f32 %v1584_v47  ;;  %v1951_v1 = vadd.f32 1.0, %v2973_v28  ;;  %v2087_v57 = vmul.f32 %v1959_v4, %v4763_v3  ;;  %v1670_v16 = vmul.f32 0.5, %v4584_v42 }
 0x1d4   : > { %v2985_v39 = vpop.eup %2984  ;;  %v1960_v29 = vadd.f32 1.0, %v2983_v17  ;;  %v1585_v63 = vmul.f32 0.7978846, %v1457_v60  ;;  %v2071_v36 = vmul.f32 %v1943_v41, %v1687_v62  ;;  %v1926_v48 = vadd.f32 1.0, %v4694_v21 }
 0x1d5   : > { %v2987_v55 = vpop.eup %2986  ;;  %v1961_v18 = vadd.f32 1.0, %v2985_v39  ;;  %v2079_v33 = vmul.f32 %v1951_v1, %v1695_v31  ;;  %v1678_v10 = vmul.f32 0.5, %v4620_v59  ;;  %v1934_v49 = vadd.f32 1.0, %v4730_v27 }
 0x1d6   : > { %v1966_v19 = vadd.f32 1.0, %v2987_v55  ;;  %2992 = vtanh.f32 %v1585_v63  ;;  %v2150_v28 = vpack.c.bf16 %v2078_v12, %v4795_v9  ;;  %v2088_v34 = vmul.f32 %v1960_v29, %v4767_v61 }
 0x1d7   : > { %v2151_v14 = vpack.c.bf16 %v2079_v33, %v2071_v36  ;;  %v2089_v3 = vmul.f32 %v1961_v18, %v4773_v26  ;;  %v2989_v42 = vpop.eup %2988  ;;  %v2054_v4 = vmul.f32 %v1926_v48, %v1670_v16  ;;  %v2062_v53 = vmul.f32 %v1934_v49, %v1678_v10  ;;  %v5482_v48 = vld [vmem:[#allocation49_spill] sm:$0xff] }
 0x1d8   : > { %v2094_v56 = vmul.f32 %v1966_v19, %v4778_v54  ;;  %v1927_v21 = vadd.f32 1.0, %v4711_v24  ;;  %v1967_v2 = vadd.f32 1.0, %v2989_v42  ;;  %v1671_v59 = vmul.f32 0.5, %v4589_v32  ;;  %v5483_v19 = vld [vmem:[#allocation66_spill] sm:$0xff] }
 0x1d9   : > { %v2991_v37 = vpop.eup %2990  ;;  %v1679_v27 = vmul.f32 0.5, %v4626_v43  ;;  %v1935_v47 = vadd.f32 1.0, %v4739_v50  ;;  %v1688_v61 = vmul.f32 0.5, %v4676_v20  ;;  %v1696_v26 = vmul.f32 0.5, %v4723_v46 }
 0x1da   : > { %v1968_v9 = vadd.f32 1.0, %v2991_v37  ;;  %v2158_v60 = vpack.c.bf16 %v2094_v56, %v2086_v13  ;;  %v2095_v54 = vmul.f32 %v1967_v2, %v4783_v30  ;;  %v1944_v62 = vadd.f32 1.0, %v4769_v15  ;;  %v5487_v56 = vld [vmem:[#allocation48_spill] sm:$0xff]  ;;  %v5489_v37 = vld [vmem:[#allocation94_spill] sm:$0xff] }
 0x1db   : > { %v2063_v12 = vmul.f32 %v1935_v47, %v1679_v27  ;;  %v1952_v24 = vadd.f32 1.0, %v4780_v35  ;;  %v2142_v43 = vpack.c.bf16 %v2062_v53, %v2054_v4  ;;  %v2055_v31 = vmul.f32 %v1927_v21, %v1671_v59  ;;  %v5488_v4 = vld [vmem:[#allocation63_spill] sm:$0xff]  ;;  %v5490_v59 = vld [vmem:[#allocation41_spill] sm:$0xff] }
 0x1dc   : > { %v2993_v17 = vpop.eup %2992  ;;  %2342 = vmatpush.bf16.msrb.mxu0 %v2158_v60  ;;  %v2096_v32 = vmul.f32 %v1968_v9, %v4786_v40  ;;  %v1945_v50 = vadd.f32 1.0, %v4771_v6  ;;  %v2159_v41 = vpack.c.bf16 %v2095_v54, %v2087_v57  ;;  %v1689_v20 = vmul.f32 0.5, %v4692_v8  ;;  %v5491_v60 = vld [vmem:[#allocation43_spill] sm:$0xff]  ;;  %v5493_v54 = vld [vmem:[#allocation77_spill] sm:$0xff] }
 0x1dd   : > { %v1969_v13 = vadd.f32 1.0, %v2993_v17  ;;  %v1697_v46 = vmul.f32 0.5, %v4737_v22  ;;  %v2143_v1 = vpack.c.bf16 %v2063_v12, %v2055_v31  ;;  %v2080_v39 = vmul.f32 %v1952_v24, %v1696_v26  ;;  %v5494_v12 = vld [vmem:[#allocation86_spill] sm:$0xff]  ;;  %v5495_v24 = vld [vmem:[#allocation27_spill] sm:$0xff] }
 0x1de   : > { %v2160_v30 = vpack.c.bf16 %v2096_v32, %v2088_v34  ;;  %v1953_v15 = vadd.f32 1.0, %v4789_v23  ;;  %2371 = vmatpush.bf16.msrb.mxu1 %v2159_v41  ;;  %v2072_v29 = vmul.f32 %v1944_v62, %v1688_v61  ;;  %v1654_v40 = vmul.f32 0.5, %v4492_v52  ;;  %v5485_v34 = vld [vmem:[#allocation47_spill] sm:$0xff]  ;;  %v5492_v61 = vld [vmem:[#allocation80_spill] sm:$0xff]  ;;  %v5496_v32 = vld [vmem:[#allocation53_spill] sm:$0xff] }
 0x1df   : > { %v2097_v35 = vmul.f32 %v1969_v13, %v4792_v5  ;;  %v1910_v63 = vadd.f32 1.0, %v4597_v51  ;;  %v2073_v6 = vmul.f32 %v1945_v50, %v1689_v20  ;;  %v1662_v8 = vmul.f32 0.5, %v4540_v11  ;;  %v5497_v13 = vld [vmem:[#allocation81_spill] sm:$0xff]  ;;  %v5498_v20 = vld [vmem:[#allocation79_spill] sm:$0xff] }
 0x1e0   : > { %2343 = vmatpush.bf16.msrb.mxu0 %v2150_v28  ;;  %2400 = vmatpush.bf16.msrb.mxu2 %v2160_v30  ;;  %v2081_v57 = vmul.f32 %v1953_v15, %v1697_v46  ;;  %v1918_v22 = vadd.f32 1.0, %v4648_v25  ;;  %v2152_v55 = vpack.c.bf16 %v2080_v39, %v2072_v29  ;;  %v1655_v23 = vmul.f32 0.5, %v4502_v44  ;;  %v5484_v28 = vld [vmem:[#allocation42_spill] sm:$0xff]  ;;  %v5499_v30 = vld [vmem:[#allocation84_spill] sm:$0xff]  ;;  %v5500_v39 = vld [vmem:[#allocation85_spill] sm:$0xff] }
 0x1e1   : > { %v2161_v16 = vpack.c.bf16 %v2097_v35, %v2089_v3  ;;  %v2038_v18 = vmul.f32 %v1910_v63, %v1654_v40  ;;  %v1663_v5 = vmul.f32 0.5, %v4551_v38  ;;  %v1911_v52 = vadd.f32 1.0, %v4622_v58  ;;  %v5501_v35 = vld [vmem:[#allocation65_spill] sm:$0xff]  ;;  %v5502_v40 = vld [vmem:[#allocation28_spill] sm:$0xff] }
 0x1e2   : > { %v2046_v36 = vmul.f32 %v1918_v22, %v1662_v8  ;;  %v1919_v51 = vadd.f32 1.0, %v4658_v45  ;;  %2372 = vmatpush.bf16.msrb.mxu1 %v2151_v14  ;;  %v1672_v33 = vmul.f32 0.5, %v4600_v0  ;;  %v1680_v11 = vmul.f32 0.5, %v4640_v7  ;;  %v5486_v14 = vld [vmem:[#allocation69_spill] sm:$0xff] }
 0x1e3   : > { %2429 = vmatpush.bf16.msrb.mxu3 %v2161_v16  ;;  %v1928_v25 = vadd.f32 1.0, %v5482_v48  ;;  %v1936_v10 = vadd.f32 1.0, %v5483_v19  ;;  %v2153_v44 = vpack.c.bf16 %v2081_v57, %v2073_v6  ;;  %v1673_v38 = vmul.f32 0.5, %v5484_v28  ;;  %v5503_v6 = vld [vmem:[#allocation46_spill] sm:$0xff]  ;;  %v5504_v16 = vld [vmem:[#allocation60_spill] sm:$0xff] }
 0x1e4   : > { %2344 = vmatpush.bf16.msrb.mxu0 %v2142_v43  ;;  %2401 = vmatpush.bf16.msrb.mxu2 %v2152_v55  ;;  %v2047_v49 = vmul.f32 %v1919_v51, %v1663_v5  ;;  %v1681_v58 = vmul.f32 0.5, %v5485_v34  ;;  %v1929_v42 = vadd.f32 1.0, %v5486_v14  ;;  %v1937_v0 = vadd.f32 1.0, %v5487_v56  ;;  %v5506_v5 = vld [vmem:[#allocation68_spill] sm:$0xff]  ;;  %v5507_v51 = vld [vmem:[#allocation57_spill] sm:$0xff]  ;;  %v5512_v14 = vld [vmem:[#allocation67_spill] sm:$0xff] }
 0x1e5   : > { %v2056_v3 = vmul.f32 %v1928_v25, %v1672_v33  ;;  %v2064_v45 = vmul.f32 %v1936_v10, %v1680_v11  ;;  %v1513_v7 = vmul.f32 0.7978846, %v5488_v4  ;;  %v2134_v53 = vpack.c.bf16 %v2046_v36, %v2038_v18  ;;  %v5505_v18 = vld [vmem:[#allocation87_spill] sm:$0xff]  ;;  %v5508_v11 = vld [vmem:[#allocation9_spill] sm:$0xff]  ;;  %v5513_v4 = vld [vmem:[#allocation98_spill] sm:$0xff] }
 0x1e6   : > { %v2039_v21 = vmul.f32 %v1911_v52, %v1655_v23  ;;  %v1518_v2 = vmul.f32 0.7978846, %v5489_v37  ;;  %2994 = vtanh.f32 %v5490_v59  ;;  %2373 = vmatpush.bf16.msrb.mxu1 %v2143_v1  ;;  %v2057_v47 = vmul.f32 %v1929_v42, %v1673_v38  ;;  %v5510_v38 = vld [vmem:[#allocation64_spill] sm:$0xff] }
 0x1e7   : > { %2430 = vmatpush.bf16.msrb.mxu3 %v2153_v44  ;;  %v2144_v27 = vpack.c.bf16 %v2064_v45, %v2056_v3  ;;  %v2065_v9 = vmul.f32 %v1937_v0, %v1681_v58  ;;  %v4845_v26 = vadd.f32 %v5492_v61, %v5491_v60  ;;  %v1392_v62 = vadd.f32 %v5494_v12, %v5493_v54  ;;  %v5511_v3 = vld [vmem:[#allocation44_spill] sm:$0xff]  ;;  %v5516_v61 = vld [vmem:[#allocation62_spill] sm:$0xff] }
 0x1e8   : > { %2345 = vmatpush.bf16.msrb.mxu0 %v2134_v53  ;;  %2996 = vtanh.f32 %v1518_v2  ;;  %v1519_v17 = vmul.f32 0.7978846, %v5495_v24  ;;  %v1265_v43 = vmul.f32 0.044715, %v5496_v32  ;;  %v2135_v31 = vpack.c.bf16 %v2047_v49, %v2039_v21  ;;  %v5509_v49 = vld [vmem:[#allocation89_spill] sm:$0xff]  ;;  %v5514_v59 = vld [vmem:[#allocation92_spill] sm:$0xff] }
 0x1e9   : > { %2402 = vmatpush.bf16.msrb.mxu2 %v2144_v27  ;;  %v2145_v50 = vpack.c.bf16 %v2065_v9, %v2057_v47  ;;  %v1656_v41 = vmul.f32 0.5, %v5497_v13  ;;  %v1664_v46 = vmul.f32 0.5, %v5498_v20  ;;  %v1912_v1 = vadd.f32 1.0, %v5499_v30  ;;  %v5515_v9 = vld [vmem:[#allocation91_spill] sm:$0xff]  ;;  %v5517_v24 = vld [vmem:[#allocation88_spill] sm:$0xff]  ;;  %v5519_v20 = vld [vmem:[#allocation90_spill] sm:$0xff] }
 0x1ea   : > { %2998 = vtanh.f32 %v1519_v17  ;;  %v1920_v15 = vadd.f32 1.0, %v5500_v39  ;;  %2374 = vmatpush.bf16.msrb.mxu1 %v2135_v31  ;;  %v1657_v29 = vmul.f32 0.5, %v5501_v35  ;;  %v1665_v63 = vmul.f32 0.5, %v5502_v40  ;;  %v5518_v13 = vld [vmem:[#allocation83_spill] sm:$0xff] }
 0x1eb   : > { %3000 = vtanh.f32 %v1513_v7  ;;  %2431 = vmatpush.bf16.msrb.mxu3 %v2145_v50  ;;  %v1913_v57 = vadd.f32 1.0, %v5503_v6  ;;  %v2040_v8 = vmul.f32 %v1912_v1, %v1656_v41  ;;  %v1921_v55 = vadd.f32 1.0, %v5504_v16  ;;  %v5520_v1 = vld [vmem:[#allocation71_spill] sm:$0xff] }
 0x1ec   : > { %v2048_v22 = vmul.f32 %v1920_v15, %v1664_v46  ;;  %v1502_v23 = vmul.f32 0.7978846, %v5505_v18  ;;  %v2995_v36 = vpop.eup %2994  ;;  %v1393_v52 = vadd.f32 %v1265_v43, %v5506_v5  ;;  %v1638_v33 = vmul.f32 0.5, %v5507_v51 }
 0x1ed   : > { %v1894_v48 = vadd.f32 1.0, %v5508_v11  ;;  %v2041_v25 = vmul.f32 %v1913_v57, %v1657_v29  ;;  %v2049_v44 = vmul.f32 %v1921_v55, %v1665_v63  ;;  %v1503_v28 = vmul.f32 0.7978846, %v5509_v49  ;;  %v5521_v29 = vld [vmem:[#allocation17_spill] sm:$0xff]  ;;  %v5522_v63 = vld [vmem:[#allocation96_spill] sm:$0xff] }
 0x1ee   : > { %v2997_v19 = vpop.eup %2996  ;;  %v2136_v10 = vpack.c.bf16 %v2048_v22, %v2040_v8  ;;  %3002 = vtanh.f32 %v1502_v23  ;;  %v1646_v34 = vmul.f32 0.5, %v5510_v38  ;;  %v1639_v45 = vmul.f32 0.5, %v5511_v3  ;;  %v5523_v8 = vld [vmem:[#allocation93_spill] sm:$0xff] }
 0x1ef   : > { %v1902_v58 = vadd.f32 1.0, %v2997_v19  ;;  %v1895_v42 = vadd.f32 1.0, %v5512_v14  ;;  %v2137_v0 = vpack.c.bf16 %v2049_v44, %v2041_v25  ;;  %v1878_v7 = vadd.f32 1.0, %v5513_v4  ;;  %v5524_v55 = vld [vmem:[#allocation97_spill] sm:$0xff] }
 0x1f0   : > { %v2999_v56 = vpop.eup %2998  ;;  %2403 = vmatpush.bf16.msrb.mxu2 %v2136_v10  ;;  %3004 = vtanh.f32 %v1503_v28  ;;  %v1520_v53 = vmul.f32 0.7978846, %v1392_v62  ;;  %v2022_v37 = vmul.f32 %v1894_v48, %v1638_v33  ;;  %v1647_v27 = vmul.f32 0.5, %v5514_v59  ;;  %v5525_v48 = vld [vmem:[#allocation59_spill] sm:$0xff] }
 0x1f1   : > { %v3001_v21 = vpop.eup %3000  ;;  %v2030_v2 = vmul.f32 %v1902_v58, %v1646_v34  ;;  %v1903_v47 = vadd.f32 1.0, %v2999_v56  ;;  %v1377_v12 = vadd.f32 %v5516_v61, %v5515_v9  ;;  %2432 = vmatpush.bf16.msrb.mxu3 %v2137_v0  ;;  %v1622_v17 = vmul.f32 0.5, %v5517_v24  ;;  %v5526_v58 = vld [vmem:[#allocation105_spill] sm:$0xff] }
 0x1f2   : > { %3006 = vtanh.f32 %v1520_v53  ;;  %v1521_v32 = vmul.f32 0.7978846, %v1393_v52  ;;  %v2023_v31 = vmul.f32 %v1895_v42, %v1639_v45  ;;  %v1879_v41 = vadd.f32 1.0, %v5518_v13  ;;  %v5527_v45 = vld [vmem:[#allocation122_spill] sm:$0xff] }
 0x1f3   : > { %v2126_v43 = vpack.c.bf16 %v2030_v2, %v2022_v37  ;;  %v2031_v50 = vmul.f32 %v1903_v47, %v1647_v27  ;;  %v1630_v46 = vmul.f32 0.5, %v5519_v20  ;;  %v2006_v30 = vmul.f32 %v1878_v7, %v1622_v17  ;;  %v5530_v2 = vld [vmem:[#allocation124_spill] sm:$0xff]  ;;  %v5531_v17 = vld [vmem:[#allocation114_spill] sm:$0xff] }
 0x1f4   : > { %v3003_v62 = vpop.eup %3002  ;;  %3008 = vtanh.f32 %v1521_v32  ;;  %v1486_v39 = vmul.f32 0.7978846, %v5520_v1  ;;  %v1623_v40 = vmul.f32 0.5, %v5521_v29  ;;  %v1631_v6 = vmul.f32 0.5, %v5522_v63  ;;  %v5534_v20 = vld [vmem:[#allocation76_spill] sm:$0xff] }
 0x1f5   : > { %2346 = vmatpush.bf16.msrb.mxu0 %v2126_v43  ;;  %v2127_v15 = vpack.c.bf16 %v2031_v50, %v2023_v31  ;;  %v1886_v35 = vadd.f32 1.0, %v3003_v62  ;;  %v1640_v22 = vmul.f32 0.5, %v5523_v8  ;;  %v1896_v16 = vadd.f32 1.0, %v2995_v36  ;;  %v5532_v43 = vld [vmem:[#allocation95_spill] sm:$0xff] }
 0x1f6   : > { %v3005_v57 = vpop.eup %3004  ;;  %3010 = vtanh.f32 %v1486_v39  ;;  %v1487_v18 = vmul.f32 0.7978846, %v5524_v55  ;;  %v2007_v51 = vmul.f32 %v1879_v41, %v1623_v40  ;;  %v1648_v33 = vmul.f32 0.5, %v5493_v54  ;;  %v5537_v8 = vld [vmem:[#allocation107_spill] sm:$0xff]  ;;  %v5539_v55 = vld [vmem:[#allocation108_spill] sm:$0xff] }
 0x1f7   : > { %2375 = vmatpush.bf16.msrb.mxu1 %v2127_v15  ;;  %v2014_v23 = vmul.f32 %v1886_v35, %v1630_v46  ;;  %v1887_v52 = vadd.f32 1.0, %v3005_v57  ;;  %v1641_v25 = vmul.f32 0.5, %v5525_v48  ;;  %v1897_v19 = vadd.f32 1.0, %v3001_v21  ;;  %v5529_v21 = vld [vmem:[#allocation106_spill] sm:$0xff]  ;;  %v5535_v15 = vld [vmem:[#allocation117_spill] sm:$0xff] }
 0x1f8   : > { %v3007_v11 = vpop.eup %3006  ;;  %3012 = vtanh.f32 %v1487_v18  ;;  %v1504_v10 = vmul.f32 0.7978846, %v4845_v26  ;;  %v1649_v36 = vmul.f32 0.5, %v5506_v5  ;;  %v2024_v34 = vmul.f32 %v1896_v16, %v1640_v22  ;;  %v5528_v26 = vld [vmem:[#allocation112_spill] sm:$0xff]  ;;  %v5538_v22 = vld [vmem:[#allocation118_spill] sm:$0xff]  ;;  %v5540_v18 = vld [vmem:[#allocation119_spill] sm:$0xff] }
 0x1f9   : > { %v2118_v44 = vpack.c.bf16 %v2014_v23, %v2006_v30  ;;  %v2015_v49 = vmul.f32 %v1887_v52, %v1631_v6  ;;  %v1904_v28 = vadd.f32 1.0, %v3007_v11  ;;  %v1606_v3 = vmul.f32 0.5, %v5526_v58  ;;  %v5536_v6 = vld [vmem:[#allocation78_spill] sm:$0xff] }
 0x1fa   : > { %v3009_v38 = vpop.eup %3008  ;;  %v1862_v14 = vadd.f32 1.0, %v5527_v45  ;;  %3014 = vtanh.f32 %v1504_v10  ;;  %v1505_v0 = vmul.f32 0.7978846, %v1377_v12  ;;  %v2025_v7 = vmul.f32 %v1897_v19, %v1641_v25  ;;  %v5533_v12 = vld [vmem:[#allocation116_spill] sm:$0xff]  ;;  %v5541_v52 = vld [vmem:[#allocation82_spill] sm:$0xff] }
 0x1fb   : > { %2347 = vmatpush.bf16.msrb.mxu0 %v2118_v44  ;;  %v2119_v54 = vpack.c.bf16 %v2015_v49, %v2007_v51  ;;  %v2032_v42 = vmul.f32 %v1904_v28, %v1648_v33  ;;  %v1905_v56 = vadd.f32 1.0, %v3009_v38  ;;  %v1614_v53 = vmul.f32 0.5, %v5528_v26  ;;  %v5542_v25 = vld [vmem:[#allocation74_spill] sm:$0xff]  ;;  %v5543_v49 = vld [vmem:[#allocation73_spill] sm:$0xff]  ;;  %v5547_v26 = vld [vmem:[#allocation103_spill] sm:$0xff] }
 0x1fc   : > { %v3011_v4 = vpop.eup %3010  ;;  %v1607_v37 = vmul.f32 0.5, %v5529_v21  ;;  %v1863_v5 = vadd.f32 1.0, %v5530_v2  ;;  %3016 = vtanh.f32 %v1505_v0  ;;  %v1990_v24 = vmul.f32 %v1862_v14, %v1606_v3  ;;  %v5545_v3 = vld [vmem:[#allocation111_spill] sm:$0xff] }
 0x1fd   : > { %2376 = vmatpush.bf16.msrb.mxu1 %v2119_v54  ;;  %v2128_v59 = vpack.c.bf16 %v2032_v42, %v2024_v34  ;;  %v2033_v27 = vmul.f32 %v1905_v56, %v1649_v36  ;;  %v1870_v47 = vadd.f32 1.0, %v3011_v4  ;;  %v1615_v32 = vmul.f32 0.5, %v5531_v17  ;;  %v5544_v34 = vld [vmem:[#allocation99_spill] sm:$0xff]  ;;  %v4905_v54 = vpop.permute.xlu1 %2164  ;;  %v5546_v56 = vld [vmem:[#allocation113_spill] sm:$0xff] }
 0x1fe   : > { %v3013_v61 = vpop.eup %3012  ;;  %v1624_v31 = vmul.f32 0.5, %v5532_v43  ;;  %v1470_v50 = vmul.f32 0.7978846, %v5533_v12  ;;  %v1880_v46 = vadd.f32 1.0, %v5534_v20  ;;  %v1991_v1 = vmul.f32 %v1863_v5, %v1607_v37  ;;  %v5548_v37 = vld [vmem:[#allocation100_spill] sm:$0xff]  ;;  %v5552_v20 = vld [vmem:[#allocation121_spill] sm:$0xff] }
 0x1ff   : > { %2404 = vmatpush.bf16.msrb.mxu2 %v2128_v59  ;;  %v2129_v13 = vpack.c.bf16 %v2033_v27, %v2025_v7  ;;  %v1998_v41 = vmul.f32 %v1870_v47, %v1614_v53  ;;  %v1871_v62 = vadd.f32 1.0, %v3013_v61  ;;  %v1632_v39 = vmul.f32 0.5, %v5491_v60  ;;  %v5549_v27 = vld [vmem:[#allocation104_spill] sm:$0xff]  ;;  %v5550_v61 = vld [vmem:[#allocation125_spill] sm:$0xff] }
 0x200   : > { %v3015_v30 = vpop.eup %3014  ;;  %3018 = vtanh.f32 %v1470_v50  ;;  %v1471_v35 = vmul.f32 0.7978846, %v5535_v15  ;;  %v1881_v57 = vadd.f32 1.0, %v5536_v6  ;;  %v1344_v16 = vadd.f32 %v5538_v22, %v5537_v8  ;;  %v5554_v6 = vld [vmem:[#allocation110_spill] sm:$0xff]  ;;  %v5555_v22 = vld [vmem:[#allocation123_spill] sm:$0xff] }
 0x201   : > { %2433 = vmatpush.bf16.msrb.mxu3 %v2129_v13  ;;  %v2110_v29 = vpack.c.bf16 %v1998_v41, %v1990_v24  ;;  %v1999_v40 = vmul.f32 %v1871_v62, %v1615_v32  ;;  %v1888_v63 = vadd.f32 1.0, %v3015_v30  ;;  %v1345_v23 = vadd.f32 %v5540_v18, %v5539_v55  ;;  %v5551_v41 = vld [vmem:[#allocation109_spill] sm:$0xff] }
 0x202   : > { %3020 = vtanh.f32 %v1471_v35  ;;  %v1488_v51 = vmul.f32 0.7978846, %v5541_v52  ;;  %v3017_v33 = vpop.eup %3016  ;;  %v2008_v11 = vmul.f32 %v1880_v46, %v1624_v31  ;;  %v1625_v19 = vmul.f32 0.5, %v5542_v25  ;;  %v5553_v30 = vld [vmem:[#allocation61_spill] sm:$0xff] }
 0x203   : > { %2348 = vmatpush.bf16.msrb.mxu0 %v2110_v29  ;;  %v2111_v60 = vpack.c.bf16 %v1999_v40, %v1991_v1  ;;  %v2016_v48 = vmul.f32 %v1888_v63, %v1632_v39  ;;  %v1633_v10 = vmul.f32 0.5, %v5515_v9  ;;  %v1889_v44 = vadd.f32 1.0, %v3017_v33  ;;  %v5557_v25 = vld [vmem:[#allocation101_spill] sm:$0xff] }
 0x204   : > { %3022 = vtanh.f32 %v1488_v51  ;;  %v1489_v28 = vmul.f32 0.7978846, %v5543_v49  ;;  %v2009_v38 = vmul.f32 %v1881_v57, %v1625_v19  ;;  %v1590_v58 = vmul.f32 0.5, %v5544_v34  ;;  %v5556_v51 = vld [vmem:[#allocation115_spill] sm:$0xff]  ;;  %v3030_v34 = vld [vmem:[%s5096_s3] sm:$0xff] }
 0x205   : > { %2377 = vmatpush.bf16.msrb.mxu1 %v2111_v60  ;;  %v2120_v36 = vpack.c.bf16 %v2016_v48, %v2008_v11  ;;  %v1846_v45 = vadd.f32 1.0, %v5545_v3  ;;  %v2017_v42 = vmul.f32 %v1889_v44, %v1633_v10  ;;  %v2235_v9 = vpop.f32.mrf.mxu0  ;;  %v1847_v0 = vadd.f32 1.0, %v5546_v56  ;;  %v4929_v11 = vpop.permute.xlu2 %2169 }
 0x206   : > { %v3019_v14 = vpop.eup %3018  ;;  %3024 = vtanh.f32 %v1489_v28  ;;  %v1472_v4 = vmul.f32 0.7978846, %v1344_v16  ;;  %v2236_v7 = vadd.f32 %v2235_v9, %v4905_v54  ;;  %v1598_v53 = vmul.f32 0.5, %v5547_v26  ;;  %v5559_v9 = vld [vmem:[#allocation102_spill] sm:$0xff] }
 0x207   : > { %2405 = vmatpush.bf16.msrb.mxu2 %v2120_v36  ;;  %v1854_v21 = vadd.f32 1.0, %v3019_v14  ;;  %v1591_v2 = vmul.f32 0.5, %v5548_v37  ;;  %v2121_v59 = vpack.c.bf16 %v2017_v42, %v2009_v38  ;;  %v1599_v47 = vmul.f32 0.5, %v5549_v27  ;;  %v5558_v14 = vld [vmem:[#allocation120_spill] sm:$0xff] }
 0x208   : > { %v3021_v5 = vpop.eup %3020  ;;  %v1864_v24 = vadd.f32 1.0, %v5550_v61  ;;  %3026 = vtanh.f32 %v1472_v4  ;;  %2458 = vst [vmem:[%s4912_s16] sm:$0xff] %v2236_v7  ;;  %v1974_v17 = vmul.f32 %v1846_v45, %v1590_v58  ;;  %v1473_v31 = vmul.f32 0.7978846, %v1345_v23 }
 0x209   : > { %v1982_v32 = vmul.f32 %v1854_v21, %v1598_v53  ;;  %v1855_v43 = vadd.f32 1.0, %v3021_v5  ;;  %2434 = vmatpush.bf16.msrb.mxu3 %v2121_v59  ;;  %v2264_v50 = vpop.f32.mrf.mxu1  ;;  %v1975_v13 = vmul.f32 %v1847_v0, %v1591_v2  ;;  %v1608_v62 = vmul.f32 0.5, %v5551_v41  ;;  %v4943_v2 = vpop.permute.xlu0 %2174 }
 0x20a   : > { %v3023_v12 = vpop.eup %3022  ;;  %v1616_v46 = vmul.f32 0.5, %v5552_v20  ;;  %v1865_v1 = vadd.f32 1.0, %v5553_v30  ;;  %v2265_v39 = vadd.f32 %v2264_v50, %v4905_v54  ;;  %v1609_v57 = vmul.f32 0.5, %v5554_v6  ;;  %v3031_v50 = vld [vmem:[%s5096_s3 + $0x8] sm:$0xff] }
 0x20b   : > { %v2102_v15 = vpack.c.bf16 %v1982_v32, %v1974_v17  ;;  %v1983_v35 = vmul.f32 %v1855_v43, %v1599_v47  ;;  %v1872_v29 = vadd.f32 1.0, %v3023_v12  ;;  %v1992_v63 = vmul.f32 %v1864_v24, %v1608_v62  ;;  %v4950_v17 = vpop.permute.xlu1 %2179 }
 0x20c   : > { %v3025_v40 = vpop.eup %3024  ;;  %v1617_v16 = vmul.f32 0.5, %v5555_v22  ;;  %3028 = vtanh.f32 %v1473_v31  ;;  %2459 = vst [vmem:[%s4912_s16 + $0x8] sm:$0xff] %v2265_v39  ;;  %v1848_v33 = vadd.f32 1.0, %v5556_v51  ;;  %v1993_v48 = vmul.f32 %v1865_v1, %v1609_v57 }
 0x20d   : > { %2349 = vmatpush.bf16.msrb.mxu0 %v2102_v15  ;;  %v2103_v18 = vpack.c.bf16 %v1983_v35, %v1975_v13  ;;  %v2000_v23 = vmul.f32 %v1872_v29, %v1616_v46  ;;  %v1873_v52 = vadd.f32 1.0, %v3025_v40  ;;  %v1592_v19 = vmul.f32 0.5, %v5557_v25  ;;  %v2237_v44 = vpop.f32.mrf.mxu0  ;;  %v4963_v46 = vpop.permute.xlu2 %2184 }
 0x20e   : > { %v3027_v60 = vpop.eup %3026  ;;  %v1600_v10 = vmul.f32 0.5, %v5537_v8  ;;  %v2238_v38 = vadd.f32 %v2237_v44, %v4929_v11  ;;  %v1849_v42 = vadd.f32 1.0, %v5558_v14  ;;  %v1593_v56 = vmul.f32 0.5, %v5559_v9 }
 0x20f   : > { %2378 = vmatpush.bf16.msrb.mxu1 %v2103_v18  ;;  %v2112_v49 = vpack.c.bf16 %v2000_v23, %v1992_v63  ;;  %v2001_v28 = vmul.f32 %v1873_v52, %v1617_v16  ;;  %v1856_v36 = vadd.f32 1.0, %v3027_v60  ;;  %v1976_v3 = vmul.f32 %v1848_v33, %v1592_v19  ;;  %v3032_v23 = vld [vmem:[%s5096_s3 + $0x10] sm:$0xff] }
 0x210   : > { %2350 = vmatmul.bf16.vlgmr.msrb.gmra.mxu0 %v3030_v34  ;;  %2466 = vst [vmem:[%s4912_s16 + $0x40] sm:$0xff] %v2238_v38  ;;  %v1601_v7 = vmul.f32 0.5, %v5539_v55  ;;  %v1977_v21 = vmul.f32 %v1849_v42, %v1593_v56  ;;  %v3033_v42 = vld [vmem:[%s5096_s3 + $0x18] sm:$0xff] }
 0x211   : > { %2406 = vmatpush.bf16.msrb.mxu2 %v2112_v49  ;;  %v2113_v58 = vpack.c.bf16 %v2001_v28, %v1993_v48  ;;  %v1984_v45 = vmul.f32 %v1856_v36, %v1600_v10  ;;  %v2266_v0 = vpop.f32.mrf.mxu1  ;;  %v4973_v6 = vpop.permute.xlu0 %2189 }
 0x212   : > { %v3029_v8 = vpop.eup %3028  ;;  %2379 = vmatmul.bf16.vlgmr.msrb.gmra.mxu1 %v3030_v34  ;;  %v2267_v53 = vadd.f32 %v2266_v0, %v4929_v11 }
 0x213   : > { %2435 = vmatpush.bf16.msrb.mxu3 %v2113_v58  ;;  %v2104_v4 = vpack.c.bf16 %v1984_v45, %v1976_v3  ;;  %v1857_v26 = vadd.f32 1.0, %v3029_v8  ;;  %v4986_v48 = vpop.permute.xlu1 %2194 }
 0x214   : > { %2467 = vst [vmem:[%s4912_s16 + $0x48] sm:$0xff] %v2267_v53 }
 0x215   : > { %2407 = vmatpush.bf16.msrb.mxu2 %v2104_v4  ;;  %v1985_v37 = vmul.f32 %v1857_v26, %v1601_v7  ;;  %v2240_v5 = vpop.f32.mrf.mxu0 }
 0x216   : > { %v2241_v27 = vadd.f32 %v2240_v5, %v4943_v2 }
 0x217   : > { %v2105_v59 = vpack.c.bf16 %v1985_v37, %v1977_v21 }
 0x218   : > { %2408 = vmatmul.bf16.vlgmr.msrb.gmra.mxu2 %v3030_v34  ;;  %2474 = vst [vmem:[%s4912_s16 + $0x80] sm:$0xff] %v2241_v27 }
 0x219   : > { %2436 = vmatpush.bf16.msrb.mxu3 %v2105_v59  ;;  %v2293_v55 = vpop.f32.mrf.mxu2  ;;  %v2269_v47 = vpop.f32.mrf.mxu1 }
 0x21a   : > { %v2294_v61 = vadd.f32 %v2293_v55, %v4905_v54  ;;  %v2270_v24 = vadd.f32 %v2269_v47, %v4943_v2 }
 0x21c   : > { %2437 = vmatmul.bf16.vlgmr.msrb.gmra.mxu3 %v3030_v34  ;;  %2460 = vst [vmem:[%s4912_s16 + $0x10] sm:$0xff] %v2294_v61  ;;  %v4996_v34 = vpop.permute.xlu2 %2199 }
 0x21d   : > { %2475 = vst [vmem:[%s4912_s16 + $0x88] sm:$0xff] %v2270_v24  ;;  %v2242_v32 = vpop.f32.mrf.mxu0 }
 0x21e   : > { %v2322_v43 = vpop.f32.mrf.mxu3  ;;  %v2243_v31 = vadd.f32 %v2242_v32, %v4950_v17 }
 0x21f   : > { %v2323_v12 = vadd.f32 %v2322_v43, %v4905_v54 }
 0x220   : > { %2355 = vmatmul.bf16.gmra.mxu0 %v3031_v50  ;;  %2482 = vst [vmem:[%s4912_s16 + $0xc0] sm:$0xff] %v2243_v31 }
 0x221   : > { %2461 = vst [vmem:[%s4912_s16 + $0x18] sm:$0xff] %v2323_v12  ;;  %v2295_v13 = vpop.f32.mrf.mxu2  ;;  %v2271_v41 = vpop.f32.mrf.mxu1 }
 0x222   : > { %2384 = vmatmul.bf16.gmra.mxu1 %v3031_v50  ;;  %v2296_v62 = vadd.f32 %v2295_v13, %v4929_v11  ;;  %v2272_v20 = vadd.f32 %v2271_v41, %v4950_v17 }
 0x224   : > { %2468 = vst [vmem:[%s4912_s16 + $0x50] sm:$0xff] %v2296_v62 }
 0x225   : > { %2483 = vst [vmem:[%s4912_s16 + $0xc8] sm:$0xff] %v2272_v20  ;;  %v2245_v30 = vpop.f32.mrf.mxu0 }
 0x226   : > { %v2324_v1 = vpop.f32.mrf.mxu3  ;;  %v2246_v39 = vadd.f32 %v2245_v30, %v4963_v46 }
 0x227   : > { %v2325_v15 = vadd.f32 %v2324_v1, %v4929_v11 }
 0x228   : > { %2413 = vmatmul.bf16.gmra.mxu2 %v3031_v50  ;;  %2490 = vst [vmem:[%s4912_s16 + $0x100] sm:$0xff] %v2246_v39 }
 0x229   : > { %2469 = vst [vmem:[%s4912_s16 + $0x58] sm:$0xff] %v2325_v15  ;;  %v2298_v35 = vpop.f32.mrf.mxu2  ;;  %v2274_v29 = vpop.f32.mrf.mxu1 }
 0x22a   : > { %v2299_v40 = vadd.f32 %v2298_v35, %v4943_v2  ;;  %v2275_v63 = vadd.f32 %v2274_v29, %v4963_v46 }
 0x22c   : > { %2442 = vmatmul.bf16.gmra.mxu3 %v3031_v50  ;;  %2476 = vst [vmem:[%s4912_s16 + $0x90] sm:$0xff] %v2299_v40 }
 0x22d   : > { %2491 = vst [vmem:[%s4912_s16 + $0x108] sm:$0xff] %v2275_v63  ;;  %v2247_v57 = vpop.f32.mrf.mxu0 }
 0x22e   : > { %v2327_v22 = vpop.f32.mrf.mxu3  ;;  %v2248_v16 = vadd.f32 %v2247_v57, %v4973_v6 }
 0x22f   : > { %v2328_v18 = vadd.f32 %v2327_v22, %v4943_v2 }
 0x230   : > { %2360 = vmatmul.bf16.gmra.mxu0 %v3032_v23  ;;  %2498 = vst [vmem:[%s4912_s16 + $0x140] sm:$0xff] %v2248_v16 }
 0x231   : > { %2477 = vst [vmem:[%s4912_s16 + $0x98] sm:$0xff] %v2328_v18  ;;  %v2300_v52 = vpop.f32.mrf.mxu2  ;;  %v2276_v51 = vpop.f32.mrf.mxu1 }
 0x232   : > { %2389 = vmatmul.bf16.gmra.mxu1 %v3032_v23  ;;  %v2301_v33 = vadd.f32 %v2300_v52, %v4950_v17  ;;  %v2277_v60 = vadd.f32 %v2276_v51, %v4973_v6 }
 0x234   : > { %2484 = vst [vmem:[%s4912_s16 + $0xd0] sm:$0xff] %v2301_v33 }
 0x235   : > { %2499 = vst [vmem:[%s4912_s16 + $0x148] sm:$0xff] %v2277_v60  ;;  %v2250_v25 = vpop.f32.mrf.mxu0 }
 0x236   : > { %v2329_v19 = vpop.f32.mrf.mxu3  ;;  %v2251_v10 = vadd.f32 %v2250_v25, %v4986_v48 }
 0x237   : > { %v2330_v44 = vadd.f32 %v2329_v19, %v4950_v17 }
 0x238   : > { %2418 = vmatmul.bf16.gmra.mxu2 %v3032_v23  ;;  %2506 = vst [vmem:[%s4912_s16 + $0x180] sm:$0xff] %v2251_v10 }
 0x239   : > { %2485 = vst [vmem:[%s4912_s16 + $0xd8] sm:$0xff] %v2330_v44  ;;  %v2303_v49 = vpop.f32.mrf.mxu2  ;;  %v2279_v28 = vpop.f32.mrf.mxu1 }
 0x23a   : > { %v2304_v36 = vadd.f32 %v2303_v49, %v4963_v46  ;;  %v2280_v38 = vadd.f32 %v2279_v28, %v4986_v48 }
 0x23c   : > { %2447 = vmatmul.bf16.gmra.mxu3 %v3032_v23  ;;  %2492 = vst [vmem:[%s4912_s16 + $0x110] sm:$0xff] %v2304_v36 }
 0x23d   : > { %2507 = vst [vmem:[%s4912_s16 + $0x188] sm:$0xff] %v2280_v38  ;;  %v2252_v58 = vpop.f32.mrf.mxu0 }
 0x23e   : > { %v2332_v3 = vpop.f32.mrf.mxu3  ;;  %v2253_v45 = vadd.f32 %v2252_v58, %v4996_v34 }
 0x23f   : > { %v2333_v14 = vadd.f32 %v2332_v3, %v4963_v46 }
 0x240   : > { %2365 = vmatmul.bf16.gmra.mxu0 %v3033_v42  ;;  %2514 = vst [vmem:[%s4912_s16 + $0x1c0] sm:$0xff] %v2253_v45 }
 0x241   : > { %2493 = vst [vmem:[%s4912_s16 + $0x118] sm:$0xff] %v2333_v14  ;;  %v2305_v8 = vpop.f32.mrf.mxu2  ;;  %v2281_v9 = vpop.f32.mrf.mxu1 }
 0x242   : > { %2394 = vmatmul.bf16.gmra.mxu1 %v3033_v42  ;;  %v2306_v56 = vadd.f32 %v2305_v8, %v4973_v6  ;;  %v2282_v0 = vadd.f32 %v2281_v9, %v4996_v34 }
 0x244   : > { %2500 = vst [vmem:[%s4912_s16 + $0x150] sm:$0xff] %v2306_v56 }
 0x245   : > { %2515 = vst [vmem:[%s4912_s16 + $0x1c8] sm:$0xff] %v2282_v0 }
 0x246   : > { %v2334_v4 = vpop.f32.mrf.mxu3 }
 0x247   : > { %v2335_v7 = vadd.f32 %v2334_v4, %v4973_v6 }
 0x248   : > { %2423 = vmatmul.bf16.gmra.mxu2 %v3033_v42 }
 0x249   : > { %2501 = vst [vmem:[%s4912_s16 + $0x158] sm:$0xff] %v2335_v7  ;;  %v2308_v26 = vpop.f32.mrf.mxu2 }
 0x24a   : > { %v2309_v53 = vadd.f32 %v2308_v26, %v4986_v48 }
 0x24c   : > { %2452 = vmatmul.bf16.gmra.mxu3 %v3033_v42  ;;  %2508 = vst [vmem:[%s4912_s16 + $0x190] sm:$0xff] %v2309_v53 }
 0x24e   : > { %v2337_v21 = vpop.f32.mrf.mxu3 }
 0x24f   : > { %v2338_v37 = vadd.f32 %v2337_v21, %v4986_v48 }
 0x251   : > { %2509 = vst [vmem:[%s4912_s16 + $0x198] sm:$0xff] %v2338_v37  ;;  %v2310_v5 = vpop.f32.mrf.mxu2 }
 0x252   : > { %v2311_v59 = vadd.f32 %v2310_v5, %v4996_v34 }
 0x254   : > { %2516 = vst [vmem:[%s4912_s16 + $0x1d0] sm:$0xff] %v2311_v59 }
 0x256   : > { %v2339_v27 = vpop.f32.mrf.mxu3 }
 0x257   : > { %v2340_v55 = vadd.f32 %v2339_v27, %v4996_v34 }
 0x259   : > { %2517 = vst [vmem:[%s4912_s16 + $0x1d8] sm:$0xff] %v2340_v55 }
 0x28d   : > { %v2351_v47 = vpop.f32.mrf.mxu0 }
 0x28e   : > { %v2352_v61 = vadd.f32 %v2351_v47, %v4905_v54 }
 0x28f   : > { %v2380_v24 = vpop.f32.mrf.mxu1 }
 0x290   : > { %2462 = vst [vmem:[%s4912_s16 + $0x20] sm:$0xff] %v2352_v61  ;;  %v2381_v32 = vadd.f32 %v2380_v24, %v4905_v54 }
 0x292   : > { %2463 = vst [vmem:[%s4912_s16 + $0x28] sm:$0xff] %v2381_v32 }
 0x295   : > { %v2353_v43 = vpop.f32.mrf.mxu0 }
 0x296   : > { %v2354_v31 = vadd.f32 %v2353_v43, %v4929_v11 }
 0x297   : > { %v2382_v12 = vpop.f32.mrf.mxu1 }
 0x298   : > { %2470 = vst [vmem:[%s4912_s16 + $0x60] sm:$0xff] %v2354_v31  ;;  %v2383_v50 = vadd.f32 %v2382_v12, %v4929_v11 }
 0x29a   : > { %2471 = vst [vmem:[%s4912_s16 + $0x68] sm:$0xff] %v2383_v50 }
 0x29b   : > { %v2409_v13 = vpop.f32.mrf.mxu2 }
 0x29c   : > { %v2410_v41 = vadd.f32 %v2409_v13, %v4905_v54 }
 0x29d   : > { %v2356_v62 = vpop.f32.mrf.mxu0 }
 0x29e   : > { %2464 = vst [vmem:[%s4912_s16 + $0x30] sm:$0xff] %v2410_v41  ;;  %v2357_v20 = vadd.f32 %v2356_v62, %v4943_v2 }
 0x29f   : > { %v2438_v30 = vpop.f32.mrf.mxu3  ;;  %v2385_v1 = vpop.f32.mrf.mxu1 }
 0x2a0   : > { %v2439_v39 = vadd.f32 %v2438_v30, %v4905_v54  ;;  %2478 = vst [vmem:[%s4912_s16 + $0xa0] sm:$0xff] %v2357_v20  ;;  %v2386_v15 = vadd.f32 %v2385_v1, %v4943_v2 }
 0x2a2   : > { %2465 = vst [vmem:[%s4912_s16 + $0x38] sm:$0xff] %v2439_v39 }
 0x2a3   : > { %2479 = vst [vmem:[%s4912_s16 + $0xa8] sm:$0xff] %v2386_v15  ;;  %v2411_v35 = vpop.f32.mrf.mxu2 }
 0x2a4   : > { %v2412_v29 = vadd.f32 %v2411_v35, %v4929_v11 }
 0x2a5   : > { %v2358_v40 = vpop.f32.mrf.mxu0 }
 0x2a6   : > { %2472 = vst [vmem:[%s4912_s16 + $0x70] sm:$0xff] %v2412_v29  ;;  %v2359_v63 = vadd.f32 %v2358_v40, %v4950_v17 }
 0x2a7   : > { %v2440_v57 = vpop.f32.mrf.mxu3  ;;  %v2387_v22 = vpop.f32.mrf.mxu1 }
 0x2a8   : > { %v2441_v54 = vadd.f32 %v2440_v57, %v4929_v11  ;;  %2486 = vst [vmem:[%s4912_s16 + $0xe0] sm:$0xff] %v2359_v63  ;;  %v2388_v16 = vadd.f32 %v2387_v22, %v4950_v17 }
 0x2aa   : > { %2473 = vst [vmem:[%s4912_s16 + $0x78] sm:$0xff] %v2441_v54 }
 0x2ab   : > { %2487 = vst [vmem:[%s4912_s16 + $0xe8] sm:$0xff] %v2388_v16  ;;  %v2414_v18 = vpop.f32.mrf.mxu2 }
 0x2ac   : > { %v2415_v23 = vadd.f32 %v2414_v18, %v4943_v2 }
 0x2ad   : > { %v2361_v52 = vpop.f32.mrf.mxu0 }
 0x2ae   : > { %2480 = vst [vmem:[%s4912_s16 + $0xb0] sm:$0xff] %v2415_v23  ;;  %v2362_v51 = vadd.f32 %v2361_v52, %v4963_v46 }
 0x2af   : > { %v2443_v33 = vpop.f32.mrf.mxu3  ;;  %v2390_v60 = vpop.f32.mrf.mxu1 }
 0x2b0   : > { %v2444_v11 = vadd.f32 %v2443_v33, %v4943_v2  ;;  %2494 = vst [vmem:[%s4912_s16 + $0x120] sm:$0xff] %v2362_v51  ;;  %v2391_v25 = vadd.f32 %v2390_v60, %v4963_v46 }
 0x2b2   : > { %2481 = vst [vmem:[%s4912_s16 + $0xb8] sm:$0xff] %v2444_v11 }
 0x2b3   : > { %2495 = vst [vmem:[%s4912_s16 + $0x128] sm:$0xff] %v2391_v25  ;;  %v2416_v19 = vpop.f32.mrf.mxu2 }
 0x2b4   : > { %v2417_v10 = vadd.f32 %v2416_v19, %v4950_v17 }
 0x2b5   : > { %v2363_v44 = vpop.f32.mrf.mxu0 }
 0x2b6   : > { %2488 = vst [vmem:[%s4912_s16 + $0xf0] sm:$0xff] %v2417_v10  ;;  %v2364_v49 = vadd.f32 %v2363_v44, %v4973_v6 }
 0x2b7   : > { %v2445_v28 = vpop.f32.mrf.mxu3  ;;  %v2392_v36 = vpop.f32.mrf.mxu1 }
 0x2b8   : > { %v2446_v2 = vadd.f32 %v2445_v28, %v4950_v17  ;;  %2502 = vst [vmem:[%s4912_s16 + $0x160] sm:$0xff] %v2364_v49  ;;  %v2393_v38 = vadd.f32 %v2392_v36, %v4973_v6 }
 0x2ba   : > { %2489 = vst [vmem:[%s4912_s16 + $0xf8] sm:$0xff] %v2446_v2 }
 0x2bb   : > { %2503 = vst [vmem:[%s4912_s16 + $0x168] sm:$0xff] %v2393_v38  ;;  %v2419_v58 = vpop.f32.mrf.mxu2 }
 0x2bc   : > { %v2420_v3 = vadd.f32 %v2419_v58, %v4963_v46 }
 0x2bd   : > { %v2366_v45 = vpop.f32.mrf.mxu0 }
 0x2be   : > { %2496 = vst [vmem:[%s4912_s16 + $0x130] sm:$0xff] %v2420_v3  ;;  %v2367_v14 = vadd.f32 %v2366_v45, %v4986_v48 }
 0x2bf   : > { %v2448_v42 = vpop.f32.mrf.mxu3  ;;  %v2395_v8 = vpop.f32.mrf.mxu1 }
 0x2c0   : > { %v2449_v17 = vadd.f32 %v2448_v42, %v4963_v46  ;;  %2510 = vst [vmem:[%s4912_s16 + $0x1a0] sm:$0xff] %v2367_v14  ;;  %v2396_v9 = vadd.f32 %v2395_v8, %v4986_v48 }
 0x2c2   : > { %2497 = vst [vmem:[%s4912_s16 + $0x138] sm:$0xff] %v2449_v17 }
 0x2c3   : > { %2511 = vst [vmem:[%s4912_s16 + $0x1a8] sm:$0xff] %v2396_v9  ;;  %v2421_v56 = vpop.f32.mrf.mxu2 }
 0x2c4   : > { %v2422_v0 = vadd.f32 %v2421_v56, %v4973_v6 }
 0x2c5   : > { %v2368_v4 = vpop.f32.mrf.mxu0 }
 0x2c6   : > { %2504 = vst [vmem:[%s4912_s16 + $0x170] sm:$0xff] %v2422_v0  ;;  %v2369_v7 = vadd.f32 %v2368_v4, %v4996_v34 }
 0x2c7   : > { %v2450_v26 = vpop.f32.mrf.mxu3  ;;  %v2397_v53 = vpop.f32.mrf.mxu1 }
 0x2c8   : > { %v2451_v46 = vadd.f32 %v2450_v26, %v4973_v6  ;;  %2518 = vst [vmem:[%s4912_s16 + $0x1e0] sm:$0xff] %v2369_v7  ;;  %v2398_v21 = vadd.f32 %v2397_v53, %v4996_v34 }
 0x2ca   : > { %2505 = vst [vmem:[%s4912_s16 + $0x178] sm:$0xff] %v2451_v46 }
 0x2cb   : > { %2519 = vst [vmem:[%s4912_s16 + $0x1e8] sm:$0xff] %v2398_v21  ;;  %v2424_v37 = vpop.f32.mrf.mxu2 }
 0x2cc   : > { %v2425_v5 = vadd.f32 %v2424_v37, %v4986_v48 }
 0x2ce   : > { %2512 = vst [vmem:[%s4912_s16 + $0x1b0] sm:$0xff] %v2425_v5 }
 0x2cf   : > { %v2453_v59 = vpop.f32.mrf.mxu3 }
 0x2d0   : > { %v2454_v27 = vadd.f32 %v2453_v59, %v4986_v48 }
 0x2d2   : > { %2513 = vst [vmem:[%s4912_s16 + $0x1b8] sm:$0xff] %v2454_v27 }
 0x2d3   : > { %v2426_v55 = vpop.f32.mrf.mxu2 }
 0x2d4   : > { %v2427_v47 = vadd.f32 %v2426_v55, %v4996_v34 }
 0x2d6   : > { %2520 = vst [vmem:[%s4912_s16 + $0x1f0] sm:$0xff] %v2427_v47 }
 0x2d7   : > { %v2455_v61 = vpop.f32.mrf.mxu3 }
 0x2d8   : > { %v2456_v6 = vadd.f32 %v2455_v61, %v4996_v34 }
 0x2da   : > { %2521 = vst [vmem:[%s4912_s16 + $0x1f8] sm:$0xff] %v2456_v6 }
 0x2db PF: > { %s15_s20 = sadd.s32 1, %s3056_s20   ;;  %s5560_s18 = smov %s3052_s19 }
 0x2dc   : > { %p12_p5 = scmp.ge.s32.totalorder %s15_s20, 4   ;;  %s5561_s19 = smov %s5563_s21 }
 0x2de   :  { %14 = sbr.rel (!%p12_p5) target bundleno = 2 (0x2), region = 70 }

</bundles_post_ra>
